<compile_context>
chip_gen: v7x
topology: tpu7x:2x2x1
jax: 0.10.0
libtpu: 0.0.40
codegen_flags: <defaults>
</compile_context>

<pallas_src>
import functools

import jax
import jax.numpy as jnp
from jax.experimental import pallas as pl
from jax.experimental.pallas import tpu as pltpu


IN_DIM = 2500        # fixed by the PyTorch module (2500 -> ... -> 2500)


def _round_up(x, m):
    return (x + m - 1) // m * m


def _act(y, activation):
    if activation == "leaky_relu":
        # PyTorch nn.LeakyReLU default negative_slope = 0.01;
        # max(y, 0.01*y) == leaky_relu(y) for finite y.
        return jnp.maximum(y, jnp.float32(0.01) * y)
    elif activation == "tanh":
        return jnp.tanh(y)
    raise ValueError("Activation function not supported")


# ----------------------------------------------------------------------------
# Fused Pallas kernel: full 14-layer forward, activations stay on-chip.
# ----------------------------------------------------------------------------
def _fused_ae_kernel(x_ref, w_in_ref, b_in_ref, w_mid_ref, b_mid_ref,
                     w_out_ref, b_out_ref, o_ref, *, activation, n_mid):
    # Encoder layer 0: (Bt, 2500) @ (2500, F) + (1, F)
    h = _act(
        jnp.dot(x_ref[...], w_in_ref[...],
                preferred_element_type=jnp.float32) + b_in_ref[...],
        activation)

    # 12 middle layers (encoder 1..6, decoder 0..5), all zero-padded to
    # (F, F) with F = 128-multiple. Static unroll; h (Bt, F) stays on-chip.
    for i in range(n_mid):
        h = _act(
            jnp.dot(h, w_mid_ref[i],
                    preferred_element_type=jnp.float32) + b_mid_ref[i],
            activation)

    # Decoder final layer (+ final activation, as in the PyTorch Sequential):
    # (Bt, F) @ (F, 2500) + (1, 2500), written at native width 2500.
    y = jnp.dot(h, w_out_ref[...],
                preferred_element_type=jnp.float32) + b_out_ref[...]
    o_ref[...] = _act(y, activation).astype(o_ref.dtype)


# ----------------------------------------------------------------------------
# Parameter init (mimics nn.Linear uniform +-1/sqrt(fan_in)), stored (in, out)
# ----------------------------------------------------------------------------
def init_flux_ae_params(key, latent_dim, layer_size):
    L = layer_size
    enc_dims = [(IN_DIM, L), (L, L), (L, L), (L, L), (L, L), (L, L), (L, latent_dim)]
    dec_dims = [(latent_dim, L), (L, L), (L, L), (L, L), (L, L), (L, L), (L, IN_DIM)]

    def make_layers(key, dims):
        layers = []
        for (fan_in, fan_out) in dims:
            key, kw, kb = jax.random.split(key, 3)
            bound = 1.0 / (fan_in ** 0.5)
            w = jax.random.uniform(kw, (fan_in, fan_out), jnp.float32, -bound, bound)
            b = jax.random.uniform(kb, (fan_out,), jnp.float32, -bound, bound)
            layers.append((w, b))
        return key, layers

    key, enc = make_layers(key, enc_dims)
    key, dec = make_layers(key, dec_dims)
    return {"encoder": enc, "decoder": dec}


# ----------------------------------------------------------------------------
# Packing (call ONCE, outside the per-forward path): zero-pad only the hidden
# feature dims to a lane-dense width; the 2500-wide I/O dims stay unpadded.
# ----------------------------------------------------------------------------
def pack_flux_ae_params(params):
    layers = list(params["encoder"]) + list(params["decoder"])   # 14 layers
    w0, b0 = layers[0]          # (2500, L)
    wl, bl = layers[-1]         # (L, 2500)
    mids = layers[1:-1]         # 12 hidden layers

    feat = max(w.shape[1] for (w, _) in layers[:-1])   # max hidden/latent width
    feat_pad = _round_up(feat, 128)

    def pad_w(w, rows, cols):
        return jnp.pad(w, ((0, rows - w.shape[0]), (0, cols - w.shape[1])))

    def pad_b(b, cols):
        return jnp.pad(b, (0, cols - b.shape[0])).reshape(1, cols)

    # Zero padding is exact: padded lanes of the running activation stay 0
    # through leaky_relu/tanh (act(0)=0) and padded weight rows are 0.
    w_in = pad_w(w0, IN_DIM, feat_pad)                                    # (2500, F)
    b_in = pad_b(b0, feat_pad)                                            # (1, F)
    w_mid = jnp.stack([pad_w(w, feat_pad, feat_pad) for (w, _) in mids])  # (12, F, F)
    b_mid = jnp.stack([pad_b(b, feat_pad) for (_, b) in mids])            # (12, 1, F)
    w_out = pad_w(wl, feat_pad, IN_DIM)                                   # (F, 2500)
    b_out = pad_b(bl, IN_DIM)                                             # (1, 2500)
    return {"w_in": w_in, "b_in": b_in, "w_mid": w_mid, "b_mid": b_mid,
            "w_out": w_out, "b_out": b_out}


# ----------------------------------------------------------------------------
# Forward: single fused pallas_call over a batch-tiled ("parallel") grid.
# ----------------------------------------------------------------------------
def flux_ae_forward(packed, flux, activation):
    """flux: (B, 2500) f32 -> reconstructed (B, 2500) f32."""
    B, D = flux.shape
    assert D == IN_DIM
    w_in, b_in = packed["w_in"], packed["b_in"]
    w_mid, b_mid = packed["w_mid"], packed["b_mid"]
    w_out, b_out = packed["w_out"], packed["b_out"]
    n_mid = int(w_mid.shape[0])
    feat_pad = int(w_in.shape[1])

    # ---- batch tile selection -------------------------------------------
    b_pad_min = _round_up(B, 8)               # f32 sublane tile
    b_tile = min(b_pad_min, 256)              # fill the 256-row MXU at large B
    if b_pad_min // b_tile < 2 and B >= 16:
        # Guarantee >= 2 grid steps so ("parallel",) can use both v7x cores.
        b_tile = _round_up((b_pad_min + 1) // 2, 8)
    b_pad = _round_up(B, b_tile)

    # Only the batch dim is ever padded (and only when needed); no column pad,
    # no full-array output crop for aligned batches.
    x = flux if b_pad == B else jnp.pad(flux, ((0, b_pad - B), (0, 0)))

    # ---- VMEM budget: double-buffered blocks + slack ---------------------
    blk_elems = (b_tile * IN_DIM              # x block
                 + b_tile * IN_DIM            # out block
                 + IN_DIM * feat_pad          # w_in
                 + feat_pad                   # b_in
                 + n_mid * feat_pad * feat_pad
                 + n_mid * feat_pad
                 + feat_pad * IN_DIM          # w_out
                 + IN_DIM)                    # b_out
    vmem_limit = int(2 * 4 * blk_elems + (4 << 20))   # ~21 MiB at b_tile=256

    kernel = functools.partial(_fused_ae_kernel,
                               activation=activation, n_mid=n_mid)
    out = pl.pallas_call(
        kernel,
        out_shape=jax.ShapeDtypeStruct((b_pad, IN_DIM), jnp.float32),
        grid_spec=pltpu.PrefetchScalarGridSpec(
            num_scalar_prefetch=0,
            grid=(b_pad // b_tile,),
            in_specs=[
                pl.BlockSpec((b_tile, IN_DIM), lambda b: (b, 0)),          # x
                pl.BlockSpec((IN_DIM, feat_pad), lambda b: (0, 0)),        # w_in
                pl.BlockSpec((1, feat_pad), lambda b: (0, 0)),             # b_in
                pl.BlockSpec((n_mid, feat_pad, feat_pad),
                             lambda b: (0, 0, 0)),                         # w_mid
                pl.BlockSpec((n_mid, 1, feat_pad), lambda b: (0, 0, 0)),   # b_mid
                pl.BlockSpec((feat_pad, IN_DIM), lambda b: (0, 0)),        # w_out
                pl.BlockSpec((1, IN_DIM), lambda b: (0, 0)),               # b_out
            ],
            out_specs=pl.BlockSpec((b_tile, IN_DIM), lambda b: (b, 0)),
        ),
        compiler_params=pltpu.CompilerParams(
            dimension_semantics=("parallel",),
            vmem_limit_bytes=vmem_limit),
    )(x, w_in, b_in, w_mid, b_mid, w_out, b_out)

    return out if b_pad == B else out[:B]


# ----------------------------------------------------------------------------
# main
# ----------------------------------------------------------------------------
if __name__ == "__main__":
    latent_dim = 8
    layer_size = 32
    batch = 2

    key = jax.random.PRNGKey(0)
    key, kparams, kx, kx2 = jax.random.split(key, 4)
    params = init_flux_ae_params(kparams, latent_dim, layer_size)
    packed = pack_flux_ae_params(params)     # pack ONCE, outside the jit path
    flux = jax.random.normal(kx, (batch, IN_DIM), jnp.float32)

    # Plain-JAX reference (unpadded, per-layer) for correctness.
    def ref_forward(params, x, activation):
        def act(y):
            if activation == "leaky_relu":
                return jnp.where(y >= 0, y, 0.01 * y)
            return jnp.tanh(y)
        for (w, b) in list(params["encoder"]) + list(params["decoder"]):
            x = act(x @ w + b)
        return x

    # Validate both activation variants of the module.
    for activation in ("leaky_relu", "tanh"):
        fwd = jax.jit(functools.partial(flux_ae_forward, activation=activation))
        out = fwd(packed, flux)
        jax.block_until_ready(out)
        assert out.shape == (batch, IN_DIM), out.shape
        assert out.dtype == jnp.float32
        ref = ref_forward(params, flux, activation)
        assert jnp.allclose(out, ref, atol=1e-5, rtol=1e-5), (
            activation, float(jnp.max(jnp.abs(out - ref))))

    # Also exercise the multi-step, batch-padded grid path (>= 2 grid steps).
    flux2 = jax.random.normal(kx2, (20, IN_DIM), jnp.float32)
    fwd2 = jax.jit(functools.partial(flux_ae_forward, activation="leaky_relu"))
    out2 = fwd2(packed, flux2)
    jax.block_until_ready(out2)
    ref2 = ref_forward(params, flux2, "leaky_relu")
    assert out2.shape == (20, IN_DIM)
    assert jnp.allclose(out2, ref2, atol=1e-5, rtol=1e-5), (
        float(jnp.max(jnp.abs(out2 - ref2))))

    print("KERNEL_OK")
</pallas_src>

<mosaic_0001>
module attributes {stable_mosaic.version = 11 : i64} {
  func.func @_fused_ae_kernel(%arg0: i32, %arg1: memref<8x2500xf32, #tpu.memory_space<vmem>>, %arg2: memref<2500x128xf32, #tpu.memory_space<vmem>>, %arg3: memref<1x128xf32, #tpu.memory_space<vmem>>, %arg4: memref<12x128x128xf32, #tpu.memory_space<vmem>>, %arg5: memref<12x1x128xf32, #tpu.memory_space<vmem>>, %arg6: memref<128x2500xf32, #tpu.memory_space<vmem>>, %arg7: memref<1x2500xf32, #tpu.memory_space<vmem>>, %arg8: memref<8x2500xf32, #tpu.memory_space<vmem>>) attributes {dimension_semantics = [#tpu.dimension_semantics<parallel>], iteration_bounds = array<i64: 1>, scalar_prefetch = 0 : i64, scratch_operands = 0 : i64, tpu.core_type = #tpu.core_type<tc>, window_params = [{transform_indices = @transform_0, window_bounds = array<i64: 8, 2500>}, {pipeline_mode = #tpu.pipeline_mode<synchronous>, transform_indices = @transform_1, window_bounds = array<i64: 2500, 128>}, {pipeline_mode = #tpu.pipeline_mode<synchronous>, transform_indices = @transform_2, window_bounds = array<i64: 1, 128>}, {pipeline_mode = #tpu.pipeline_mode<synchronous>, transform_indices = @transform_3, window_bounds = array<i64: 12, 128, 128>}, {pipeline_mode = #tpu.pipeline_mode<synchronous>, transform_indices = @transform_4, window_bounds = array<i64: 12, 1, 128>}, {pipeline_mode = #tpu.pipeline_mode<synchronous>, transform_indices = @transform_5, window_bounds = array<i64: 128, 2500>}, {pipeline_mode = #tpu.pipeline_mode<synchronous>, transform_indices = @transform_6, window_bounds = array<i64: 1, 2500>}, {transform_indices = @transform_7, window_bounds = array<i64: 8, 2500>}]} {
    %c0 = arith.constant 0 : index
    %c0_0 = arith.constant 0 : index
    %0 = vector.load %arg1[%c0, %c0_0] : memref<8x2500xf32, #tpu.memory_space<vmem>>, vector<8x2500xf32>
    %c0_1 = arith.constant 0 : index
    %c0_2 = arith.constant 0 : index
    %1 = vector.load %arg2[%c0_1, %c0_2] : memref<2500x128xf32, #tpu.memory_space<vmem>>, vector<2500x128xf32>
    %cst = arith.constant dense<0.000000e+00> : vector<8x128xf32>
    %2 = tpu.matmul %0, %1, %cst {dimension_numbers = #tpu.dot_dimension_numbers<[1], [0], [0], [1], [0, 0, 1, 1], [], []>} : vector<8x2500xf32>, vector<2500x128xf32>, vector<8x128xf32> -> vector<8x128xf32>
    %c0_3 = arith.constant 0 : index
    %c0_4 = arith.constant 0 : index
    %3 = vector.load %arg3[%c0_3, %c0_4] : memref<1x128xf32, #tpu.memory_space<vmem>>, vector<1x128xf32>
    %4 = vector.broadcast %3 : vector<1x128xf32> to vector<8x128xf32>
    %5 = arith.addf %2, %4 : vector<8x128xf32>
    %cst_5 = arith.constant 0.00999999977 : f32
    %6 = vector.broadcast %cst_5 : f32 to vector<8x128xf32>
    %7 = arith.mulf %6, %5 : vector<8x128xf32>
    %8 = arith.maximumf %5, %7 : vector<8x128xf32>
    %c0_6 = arith.constant 0 : index
    %c0_7 = arith.constant 0 : index
    %c0_8 = arith.constant 0 : index
    %9 = vector.load %arg4[%c0_6, %c0_7, %c0_8] : memref<12x128x128xf32, #tpu.memory_space<vmem>>, vector<1x128x128xf32>
    %10 = vector.shape_cast %9 : vector<1x128x128xf32> to vector<128x128xf32>
    %cst_9 = arith.constant dense<0.000000e+00> : vector<8x128xf32>
    %11 = tpu.matmul %8, %10, %cst_9 {dimension_numbers = #tpu.dot_dimension_numbers<[1], [0], [0], [1], [0, 0, 1, 1], [], []>} : vector<8x128xf32>, vector<128x128xf32>, vector<8x128xf32> -> vector<8x128xf32>
    %c0_10 = arith.constant 0 : index
    %c0_11 = arith.constant 0 : index
    %c0_12 = arith.constant 0 : index
    %12 = vector.load %arg5[%c0_10, %c0_11, %c0_12] : memref<12x1x128xf32, #tpu.memory_space<vmem>>, vector<1x1x128xf32>
    %13 = vector.shape_cast %12 : vector<1x1x128xf32> to vector<1x128xf32>
    %14 = vector.broadcast %13 : vector<1x128xf32> to vector<8x128xf32>
    %15 = arith.addf %11, %14 : vector<8x128xf32>
    %cst_13 = arith.constant 0.00999999977 : f32
    %16 = vector.broadcast %cst_13 : f32 to vector<8x128xf32>
    %17 = arith.mulf %16, %15 : vector<8x128xf32>
    %18 = arith.maximumf %15, %17 : vector<8x128xf32>
    %c1 = arith.constant 1 : index
    %c0_14 = arith.constant 0 : index
    %c0_15 = arith.constant 0 : index
    %19 = vector.load %arg4[%c1, %c0_14, %c0_15] : memref<12x128x128xf32, #tpu.memory_space<vmem>>, vector<1x128x128xf32>
    %20 = vector.shape_cast %19 : vector<1x128x128xf32> to vector<128x128xf32>
    %cst_16 = arith.constant dense<0.000000e+00> : vector<8x128xf32>
    %21 = tpu.matmul %18, %20, %cst_16 {dimension_numbers = #tpu.dot_dimension_numbers<[1], [0], [0], [1], [0, 0, 1, 1], [], []>} : vector<8x128xf32>, vector<128x128xf32>, vector<8x128xf32> -> vector<8x128xf32>
    %c1_17 = arith.constant 1 : index
    %c0_18 = arith.constant 0 : index
    %c0_19 = arith.constant 0 : index
    %22 = vector.load %arg5[%c1_17, %c0_18, %c0_19] : memref<12x1x128xf32, #tpu.memory_space<vmem>>, vector<1x1x128xf32>
    %23 = vector.shape_cast %22 : vector<1x1x128xf32> to vector<1x128xf32>
    %24 = vector.broadcast %23 : vector<1x128xf32> to vector<8x128xf32>
    %25 = arith.addf %21, %24 : vector<8x128xf32>
    %cst_20 = arith.constant 0.00999999977 : f32
    %26 = vector.broadcast %cst_20 : f32 to vector<8x128xf32>
    %27 = arith.mulf %26, %25 : vector<8x128xf32>
    %28 = arith.maximumf %25, %27 : vector<8x128xf32>
    %c2 = arith.constant 2 : index
    %c0_21 = arith.constant 0 : index
    %c0_22 = arith.constant 0 : index
    %29 = vector.load %arg4[%c2, %c0_21, %c0_22] : memref<12x128x128xf32, #tpu.memory_space<vmem>>, vector<1x128x128xf32>
    %30 = vector.shape_cast %29 : vector<1x128x128xf32> to vector<128x128xf32>
    %cst_23 = arith.constant dense<0.000000e+00> : vector<8x128xf32>
    %31 = tpu.matmul %28, %30, %cst_23 {dimension_numbers = #tpu.dot_dimension_numbers<[1], [0], [0], [1], [0, 0, 1, 1], [], []>} : vector<8x128xf32>, vector<128x128xf32>, vector<8x128xf32> -> vector<8x128xf32>
    %c2_24 = arith.constant 2 : index
    %c0_25 = arith.constant 0 : index
    %c0_26 = arith.constant 0 : index
    %32 = vector.load %arg5[%c2_24, %c0_25, %c0_26] : memref<12x1x128xf32, #tpu.memory_space<vmem>>, vector<1x1x128xf32>
    %33 = vector.shape_cast %32 : vector<1x1x128xf32> to vector<1x128xf32>
    %34 = vector.broadcast %33 : vector<1x128xf32> to vector<8x128xf32>
    %35 = arith.addf %31, %34 : vector<8x128xf32>
    %cst_27 = arith.constant 0.00999999977 : f32
    %36 = vector.broadcast %cst_27 : f32 to vector<8x128xf32>
    %37 = arith.mulf %36, %35 : vector<8x128xf32>
    %38 = arith.maximumf %35, %37 : vector<8x128xf32>
    %c3 = arith.constant 3 : index
    %c0_28 = arith.constant 0 : index
    %c0_29 = arith.constant 0 : index
    %39 = vector.load %arg4[%c3, %c0_28, %c0_29] : memref<12x128x128xf32, #tpu.memory_space<vmem>>, vector<1x128x128xf32>
    %40 = vector.shape_cast %39 : vector<1x128x128xf32> to vector<128x128xf32>
    %cst_30 = arith.constant dense<0.000000e+00> : vector<8x128xf32>
    %41 = tpu.matmul %38, %40, %cst_30 {dimension_numbers = #tpu.dot_dimension_numbers<[1], [0], [0], [1], [0, 0, 1, 1], [], []>} : vector<8x128xf32>, vector<128x128xf32>, vector<8x128xf32> -> vector<8x128xf32>
    %c3_31 = arith.constant 3 : index
    %c0_32 = arith.constant 0 : index
    %c0_33 = arith.constant 0 : index
    %42 = vector.load %arg5[%c3_31, %c0_32, %c0_33] : memref<12x1x128xf32, #tpu.memory_space<vmem>>, vector<1x1x128xf32>
    %43 = vector.shape_cast %42 : vector<1x1x128xf32> to vector<1x128xf32>
    %44 = vector.broadcast %43 : vector<1x128xf32> to vector<8x128xf32>
    %45 = arith.addf %41, %44 : vector<8x128xf32>
    %cst_34 = arith.constant 0.00999999977 : f32
    %46 = vector.broadcast %cst_34 : f32 to vector<8x128xf32>
    %47 = arith.mulf %46, %45 : vector<8x128xf32>
    %48 = arith.maximumf %45, %47 : vector<8x128xf32>
    %c4 = arith.constant 4 : index
    %c0_35 = arith.constant 0 : index
    %c0_36 = arith.constant 0 : index
    %49 = vector.load %arg4[%c4, %c0_35, %c0_36] : memref<12x128x128xf32, #tpu.memory_space<vmem>>, vector<1x128x128xf32>
    %50 = vector.shape_cast %49 : vector<1x128x128xf32> to vector<128x128xf32>
    %cst_37 = arith.constant dense<0.000000e+00> : vector<8x128xf32>
    %51 = tpu.matmul %48, %50, %cst_37 {dimension_numbers = #tpu.dot_dimension_numbers<[1], [0], [0], [1], [0, 0, 1, 1], [], []>} : vector<8x128xf32>, vector<128x128xf32>, vector<8x128xf32> -> vector<8x128xf32>
    %c4_38 = arith.constant 4 : index
    %c0_39 = arith.constant 0 : index
    %c0_40 = arith.constant 0 : index
    %52 = vector.load %arg5[%c4_38, %c0_39, %c0_40] : memref<12x1x128xf32, #tpu.memory_space<vmem>>, vector<1x1x128xf32>
    %53 = vector.shape_cast %52 : vector<1x1x128xf32> to vector<1x128xf32>
    %54 = vector.broadcast %53 : vector<1x128xf32> to vector<8x128xf32>
    %55 = arith.addf %51, %54 : vector<8x128xf32>
    %cst_41 = arith.constant 0.00999999977 : f32
    %56 = vector.broadcast %cst_41 : f32 to vector<8x128xf32>
    %57 = arith.mulf %56, %55 : vector<8x128xf32>
    %58 = arith.maximumf %55, %57 : vector<8x128xf32>
    %c5 = arith.constant 5 : index
    %c0_42 = arith.constant 0 : index
    %c0_43 = arith.constant 0 : index
    %59 = vector.load %arg4[%c5, %c0_42, %c0_43] : memref<12x128x128xf32, #tpu.memory_space<vmem>>, vector<1x128x128xf32>
    %60 = vector.shape_cast %59 : vector<1x128x128xf32> to vector<128x128xf32>
    %cst_44 = arith.constant dense<0.000000e+00> : vector<8x128xf32>
    %61 = tpu.matmul %58, %60, %cst_44 {dimension_numbers = #tpu.dot_dimension_numbers<[1], [0], [0], [1], [0, 0, 1, 1], [], []>} : vector<8x128xf32>, vector<128x128xf32>, vector<8x128xf32> -> vector<8x128xf32>
    %c5_45 = arith.constant 5 : index
    %c0_46 = arith.constant 0 : index
    %c0_47 = arith.constant 0 : index
    %62 = vector.load %arg5[%c5_45, %c0_46, %c0_47] : memref<12x1x128xf32, #tpu.memory_space<vmem>>, vector<1x1x128xf32>
    %63 = vector.shape_cast %62 : vector<1x1x128xf32> to vector<1x128xf32>
    %64 = vector.broadcast %63 : vector<1x128xf32> to vector<8x128xf32>
    %65 = arith.addf %61, %64 : vector<8x128xf32>
    %cst_48 = arith.constant 0.00999999977 : f32
    %66 = vector.broadcast %cst_48 : f32 to vector<8x128xf32>
    %67 = arith.mulf %66, %65 : vector<8x128xf32>
    %68 = arith.maximumf %65, %67 : vector<8x128xf32>
    %c6 = arith.constant 6 : index
    %c0_49 = arith.constant 0 : index
    %c0_50 = arith.constant 0 : index
    %69 = vector.load %arg4[%c6, %c0_49, %c0_50] : memref<12x128x128xf32, #tpu.memory_space<vmem>>, vector<1x128x128xf32>
    %70 = vector.shape_cast %69 : vector<1x128x128xf32> to vector<128x128xf32>
    %cst_51 = arith.constant dense<0.000000e+00> : vector<8x128xf32>
    %71 = tpu.matmul %68, %70, %cst_51 {dimension_numbers = #tpu.dot_dimension_numbers<[1], [0], [0], [1], [0, 0, 1, 1], [], []>} : vector<8x128xf32>, vector<128x128xf32>, vector<8x128xf32> -> vector<8x128xf32>
    %c6_52 = arith.constant 6 : index
    %c0_53 = arith.constant 0 : index
    %c0_54 = arith.constant 0 : index
    %72 = vector.load %arg5[%c6_52, %c0_53, %c0_54] : memref<12x1x128xf32, #tpu.memory_space<vmem>>, vector<1x1x128xf32>
    %73 = vector.shape_cast %72 : vector<1x1x128xf32> to vector<1x128xf32>
    %74 = vector.broadcast %73 : vector<1x128xf32> to vector<8x128xf32>
    %75 = arith.addf %71, %74 : vector<8x128xf32>
    %cst_55 = arith.constant 0.00999999977 : f32
    %76 = vector.broadcast %cst_55 : f32 to vector<8x128xf32>
    %77 = arith.mulf %76, %75 : vector<8x128xf32>
    %78 = arith.maximumf %75, %77 : vector<8x128xf32>
    %c7 = arith.constant 7 : index
    %c0_56 = arith.constant 0 : index
    %c0_57 = arith.constant 0 : index
    %79 = vector.load %arg4[%c7, %c0_56, %c0_57] : memref<12x128x128xf32, #tpu.memory_space<vmem>>, vector<1x128x128xf32>
    %80 = vector.shape_cast %79 : vector<1x128x128xf32> to vector<128x128xf32>
    %cst_58 = arith.constant dense<0.000000e+00> : vector<8x128xf32>
    %81 = tpu.matmul %78, %80, %cst_58 {dimension_numbers = #tpu.dot_dimension_numbers<[1], [0], [0], [1], [0, 0, 1, 1], [], []>} : vector<8x128xf32>, vector<128x128xf32>, vector<8x128xf32> -> vector<8x128xf32>
    %c7_59 = arith.constant 7 : index
    %c0_60 = arith.constant 0 : index
    %c0_61 = arith.constant 0 : index
    %82 = vector.load %arg5[%c7_59, %c0_60, %c0_61] : memref<12x1x128xf32, #tpu.memory_space<vmem>>, vector<1x1x128xf32>
    %83 = vector.shape_cast %82 : vector<1x1x128xf32> to vector<1x128xf32>
    %84 = vector.broadcast %83 : vector<1x128xf32> to vector<8x128xf32>
    %85 = arith.addf %81, %84 : vector<8x128xf32>
    %cst_62 = arith.constant 0.00999999977 : f32
    %86 = vector.broadcast %cst_62 : f32 to vector<8x128xf32>
    %87 = arith.mulf %86, %85 : vector<8x128xf32>
    %88 = arith.maximumf %85, %87 : vector<8x128xf32>
    %c8 = arith.constant 8 : index
    %c0_63 = arith.constant 0 : index
    %c0_64 = arith.constant 0 : index
    %89 = vector.load %arg4[%c8, %c0_63, %c0_64] : memref<12x128x128xf32, #tpu.memory_space<vmem>>, vector<1x128x128xf32>
    %90 = vector.shape_cast %89 : vector<1x128x128xf32> to vector<128x128xf32>
    %cst_65 = arith.constant dense<0.000000e+00> : vector<8x128xf32>
    %91 = tpu.matmul %88, %90, %cst_65 {dimension_numbers = #tpu.dot_dimension_numbers<[1], [0], [0], [1], [0, 0, 1, 1], [], []>} : vector<8x128xf32>, vector<128x128xf32>, vector<8x128xf32> -> vector<8x128xf32>
    %c8_66 = arith.constant 8 : index
    %c0_67 = arith.constant 0 : index
    %c0_68 = arith.constant 0 : index
    %92 = vector.load %arg5[%c8_66, %c0_67, %c0_68] : memref<12x1x128xf32, #tpu.memory_space<vmem>>, vector<1x1x128xf32>
    %93 = vector.shape_cast %92 : vector<1x1x128xf32> to vector<1x128xf32>
    %94 = vector.broadcast %93 : vector<1x128xf32> to vector<8x128xf32>
    %95 = arith.addf %91, %94 : vector<8x128xf32>
    %cst_69 = arith.constant 0.00999999977 : f32
    %96 = vector.broadcast %cst_69 : f32 to vector<8x128xf32>
    %97 = arith.mulf %96, %95 : vector<8x128xf32>
    %98 = arith.maximumf %95, %97 : vector<8x128xf32>
    %c9 = arith.constant 9 : index
    %c0_70 = arith.constant 0 : index
    %c0_71 = arith.constant 0 : index
    %99 = vector.load %arg4[%c9, %c0_70, %c0_71] : memref<12x128x128xf32, #tpu.memory_space<vmem>>, vector<1x128x128xf32>
    %100 = vector.shape_cast %99 : vector<1x128x128xf32> to vector<128x128xf32>
    %cst_72 = arith.constant dense<0.000000e+00> : vector<8x128xf32>
    %101 = tpu.matmul %98, %100, %cst_72 {dimension_numbers = #tpu.dot_dimension_numbers<[1], [0], [0], [1], [0, 0, 1, 1], [], []>} : vector<8x128xf32>, vector<128x128xf32>, vector<8x128xf32> -> vector<8x128xf32>
    %c9_73 = arith.constant 9 : index
    %c0_74 = arith.constant 0 : index
    %c0_75 = arith.constant 0 : index
    %102 = vector.load %arg5[%c9_73, %c0_74, %c0_75] : memref<12x1x128xf32, #tpu.memory_space<vmem>>, vector<1x1x128xf32>
    %103 = vector.shape_cast %102 : vector<1x1x128xf32> to vector<1x128xf32>
    %104 = vector.broadcast %103 : vector<1x128xf32> to vector<8x128xf32>
    %105 = arith.addf %101, %104 : vector<8x128xf32>
    %cst_76 = arith.constant 0.00999999977 : f32
    %106 = vector.broadcast %cst_76 : f32 to vector<8x128xf32>
    %107 = arith.mulf %106, %105 : vector<8x128xf32>
    %108 = arith.maximumf %105, %107 : vector<8x128xf32>
    %c10 = arith.constant 10 : index
    %c0_77 = arith.constant 0 : index
    %c0_78 = arith.constant 0 : index
    %109 = vector.load %arg4[%c10, %c0_77, %c0_78] : memref<12x128x128xf32, #tpu.memory_space<vmem>>, vector<1x128x128xf32>
    %110 = vector.shape_cast %109 : vector<1x128x128xf32> to vector<128x128xf32>
    %cst_79 = arith.constant dense<0.000000e+00> : vector<8x128xf32>
    %111 = tpu.matmul %108, %110, %cst_79 {dimension_numbers = #tpu.dot_dimension_numbers<[1], [0], [0], [1], [0, 0, 1, 1], [], []>} : vector<8x128xf32>, vector<128x128xf32>, vector<8x128xf32> -> vector<8x128xf32>
    %c10_80 = arith.constant 10 : index
    %c0_81 = arith.constant 0 : index
    %c0_82 = arith.constant 0 : index
    %112 = vector.load %arg5[%c10_80, %c0_81, %c0_82] : memref<12x1x128xf32, #tpu.memory_space<vmem>>, vector<1x1x128xf32>
    %113 = vector.shape_cast %112 : vector<1x1x128xf32> to vector<1x128xf32>
    %114 = vector.broadcast %113 : vector<1x128xf32> to vector<8x128xf32>
    %115 = arith.addf %111, %114 : vector<8x128xf32>
    %cst_83 = arith.constant 0.00999999977 : f32
    %116 = vector.broadcast %cst_83 : f32 to vector<8x128xf32>
    %117 = arith.mulf %116, %115 : vector<8x128xf32>
    %118 = arith.maximumf %115, %117 : vector<8x128xf32>
    %c11 = arith.constant 11 : index
    %c0_84 = arith.constant 0 : index
    %c0_85 = arith.constant 0 : index
    %119 = vector.load %arg4[%c11, %c0_84, %c0_85] : memref<12x128x128xf32, #tpu.memory_space<vmem>>, vector<1x128x128xf32>
    %120 = vector.shape_cast %119 : vector<1x128x128xf32> to vector<128x128xf32>
    %cst_86 = arith.constant dense<0.000000e+00> : vector<8x128xf32>
    %121 = tpu.matmul %118, %120, %cst_86 {dimension_numbers = #tpu.dot_dimension_numbers<[1], [0], [0], [1], [0, 0, 1, 1], [], []>} : vector<8x128xf32>, vector<128x128xf32>, vector<8x128xf32> -> vector<8x128xf32>
    %c11_87 = arith.constant 11 : index
    %c0_88 = arith.constant 0 : index
    %c0_89 = arith.constant 0 : index
    %122 = vector.load %arg5[%c11_87, %c0_88, %c0_89] : memref<12x1x128xf32, #tpu.memory_space<vmem>>, vector<1x1x128xf32>
    %123 = vector.shape_cast %122 : vector<1x1x128xf32> to vector<1x128xf32>
    %124 = vector.broadcast %123 : vector<1x128xf32> to vector<8x128xf32>
    %125 = arith.addf %121, %124 : vector<8x128xf32>
    %cst_90 = arith.constant 0.00999999977 : f32
    %126 = vector.broadcast %cst_90 : f32 to vector<8x128xf32>
    %127 = arith.mulf %126, %125 : vector<8x128xf32>
    %128 = arith.maximumf %125, %127 : vector<8x128xf32>
    %c0_91 = arith.constant 0 : index
    %c0_92 = arith.constant 0 : index
    %129 = vector.load %arg6[%c0_91, %c0_92] : memref<128x2500xf32, #tpu.memory_space<vmem>>, vector<128x2500xf32>
    %cst_93 = arith.constant dense<0.000000e+00> : vector<8x2500xf32>
    %130 = tpu.matmul %128, %129, %cst_93 {dimension_numbers = #tpu.dot_dimension_numbers<[1], [0], [0], [1], [0, 0, 1, 1], [], []>} : vector<8x128xf32>, vector<128x2500xf32>, vector<8x2500xf32> -> vector<8x2500xf32>
    %c0_94 = arith.constant 0 : index
    %c0_95 = arith.constant 0 : index
    %131 = vector.load %arg7[%c0_94, %c0_95] : memref<1x2500xf32, #tpu.memory_space<vmem>>, vector<1x2500xf32>
    %132 = vector.broadcast %131 : vector<1x2500xf32> to vector<8x2500xf32>
    %133 = arith.addf %130, %132 : vector<8x2500xf32>
    %cst_96 = arith.constant 0.00999999977 : f32
    %134 = vector.broadcast %cst_96 : f32 to vector<8x2500xf32>
    %135 = arith.mulf %134, %133 : vector<8x2500xf32>
    %136 = arith.maximumf %133, %135 : vector<8x2500xf32>
    %c0_97 = arith.constant 0 : index
    %c0_98 = arith.constant 0 : index
    %137 = vector.load %arg8[%c0_97, %c0_98] : memref<8x2500xf32, #tpu.memory_space<vmem>>, vector<8x2500xf32>
    tpu.vector_store %arg8[%c0_97, %c0_98], %136 {strides = array<i32>} : memref<8x2500xf32, #tpu.memory_space<vmem>>, vector<8x2500xf32>,
    return
  }
  func.func @transform_0(%arg0: i32) -> (i32, i32) {
    %c0_i32 = arith.constant 0 : i32
    %c0_i32_0 = arith.constant 0 : i32
    return %arg0, %c0_i32 : i32, i32
  }
  func.func @transform_1(%arg0: i32) -> (i32, i32) {
    %c0_i32 = arith.constant 0 : i32
    %c0_i32_0 = arith.constant 0 : i32
    %c0_i32_1 = arith.constant 0 : i32
    return %c0_i32, %c0_i32_0 : i32, i32
  }
  func.func @transform_2(%arg0: i32) -> (i32, i32) {
    %c0_i32 = arith.constant 0 : i32
    %c0_i32_0 = arith.constant 0 : i32
    %c0_i32_1 = arith.constant 0 : i32
    return %c0_i32, %c0_i32_0 : i32, i32
  }
  func.func @transform_3(%arg0: i32) -> (i32, i32, i32) {
    %c0_i32 = arith.constant 0 : i32
    %c0_i32_0 = arith.constant 0 : i32
    %c0_i32_1 = arith.constant 0 : i32
    %c0_i32_2 = arith.constant 0 : i32
    return %c0_i32, %c0_i32_0, %c0_i32_1 : i32, i32, i32
  }
  func.func @transform_4(%arg0: i32) -> (i32, i32, i32) {
    %c0_i32 = arith.constant 0 : i32
    %c0_i32_0 = arith.constant 0 : i32
    %c0_i32_1 = arith.constant 0 : i32
    %c0_i32_2 = arith.constant 0 : i32
    return %c0_i32, %c0_i32_0, %c0_i32_1 : i32, i32, i32
  }
  func.func @transform_5(%arg0: i32) -> (i32, i32) {
    %c0_i32 = arith.constant 0 : i32
    %c0_i32_0 = arith.constant 0 : i32
    %c0_i32_1 = arith.constant 0 : i32
    return %c0_i32, %c0_i32_0 : i32, i32
  }
  func.func @transform_6(%arg0: i32) -> (i32, i32) {
    %c0_i32 = arith.constant 0 : i32
    %c0_i32_0 = arith.constant 0 : i32
    %c0_i32_1 = arith.constant 0 : i32
    return %c0_i32, %c0_i32_0 : i32, i32
  }
  func.func @transform_7(%arg0: i32) -> (i32, i32) {
    %c0_i32 = arith.constant 0 : i32
    %c0_i32_0 = arith.constant 0 : i32
    return %arg0, %c0_i32 : i32, i32
  }
}

</mosaic_0001>

<bundles_post_ra>
// kernel: flux_ae_forward.1
= control target key start
LH: loop header
LB: loop body
LE: loop exit
PB: predicated region body
PF: predicated region fallthrough
CT: control target
= control target key end

     0   :  { %vm366_vm0 = vcmask 556032   ;;  %vm370_vm1 = vcmask 1043456   ;;  %vm5516_vm2 = vmmov 0   ;;  %s8387_s1 = inlined_call_operand.vmem [shape: f32[2500,128], index: 1, kind: input, shape index: {}]   ;;  %s8388_s0 = inlined_call_operand.vmem [shape: f32[8,2500], index: 0, kind: input, shape index: {}]   ;;  %s8389_s3 = inlined_call_operand.vmem [shape: f32[12,128,128], index: 3, kind: input, shape index: {}]   ;;  %s8390_s2 = inlined_call_operand.vmem [shape: f32[1,128], index: 2, kind: input, shape index: {}]   ;;  %s8391_s4 = inlined_call_operand.vmem [shape: f32[12,1,128], index: 4, kind: input, shape index: {}]   ;;  %s8392_s5 = inlined_call_operand.vmem [shape: f32[128,2500], index: 5, kind: input, shape index: {}]   ;;  %s8393_s6 = inlined_call_operand.vmem [shape: f32[1,2500], index: 6, kind: input, shape index: {}]   ;;  %s8394_s7 = inlined_call_operand.vmem [shape: f32[8,2500], index: 7, kind: output, shape index: {}]  }
   0x1   :  { %v62_v0 = vld [vmem:[%s8387_s1 + $0x80] sm:$0xff]  ;;  %v63_v1 = vld [vmem:[%s8387_s1 + $0x88] sm:$0xff]  ;;  %v64_v11 = vld [vmem:[%s8387_s1 + $0x90] sm:$0xff] }
   0x2   :  { %v94_v2 = vld [vmem:[%s8387_s1 + $0x180] sm:$0xff]  ;;  %v4579_v3 = vpack.c.bf16 %v63_v1, %v62_v0  ;;  %v95_v4 = vld [vmem:[%s8387_s1 + $0x188] sm:$0xff]  ;;  %v65_v13 = vld [vmem:[%s8387_s1 + $0x98] sm:$0xff] }
   0x3   :  { %v46_v5 = vld [vmem:[%s8387_s1] sm:$0xff]  ;;  %v47_v6 = vld [vmem:[%s8387_s1 + $0x8] sm:$0xff]  ;;  %v4611_v7 = vpack.c.bf16 %v95_v4, %v94_v2  ;;  %v96_v14 = vld [vmem:[%s8387_s1 + $0x190] sm:$0xff]  ;;  %v4583_v16 = vpack.c.bf16 %v65_v13, %v64_v11 }
   0x4   :  { %v4581_v8 = vpack.c.bf16 %v47_v6, %v46_v5  ;;  %v78_v9 = vld [vmem:[%s8387_s1 + $0x100] sm:$0xff]  ;;  %v79_v10 = vld [vmem:[%s8387_s1 + $0x108] sm:$0xff]  ;;  %4580 = vmatprep.subr.bf16.mxu0 %v4579_v3  ;;  %v97_v15 = vld [vmem:[%s8387_s1 + $0x198] sm:$0xff] }
   0x5   :  { %v4613_v12 = vpack.c.bf16 %v79_v10, %v78_v9  ;;  %4612 = vmatprep.subr.bf16.mxu1 %v4611_v7  ;;  %v4615_v17 = vpack.c.bf16 %v97_v15, %v96_v14  ;;  %v48_v18 = vld [vmem:[%s8387_s1 + $0x10] sm:$0xff]  ;;  %v49_v19 = vld [vmem:[%s8387_s1 + $0x18] sm:$0xff]  ;;  %v66_v23 = vld [vmem:[%s8387_s1 + $0xa0] sm:$0xff] }
   0x6   :  { %4582 = vmatpush3.bf16.msra.mxu0 %v4581_v8  ;;  %v80_v20 = vld [vmem:[%s8387_s1 + $0x110] sm:$0xff]  ;;  %v4585_v21 = vpack.c.bf16 %v49_v19, %v48_v18  ;;  %v81_v22 = vld [vmem:[%s8387_s1 + $0x118] sm:$0xff]  ;;  %v67_v24 = vld [vmem:[%s8387_s1 + $0xa8] sm:$0xff] }
   0x7   :  { %4614 = vmatpush3.bf16.msra.mxu1 %v4613_v12  ;;  %4584 = vmatprep.subr.bf16.mxu0 %v4583_v16  ;;  %v4617_v25 = vpack.c.bf16 %v81_v22, %v80_v20  ;;  %v4587_v26 = vpack.c.bf16 %v67_v24, %v66_v23  ;;  %v98_v27 = vld [vmem:[%s8387_s1 + $0x1a0] sm:$0xff]  ;;  %v99_v28 = vld [vmem:[%s8387_s1 + $0x1a8] sm:$0xff]  ;;  %v68_v35 = vld [vmem:[%s8387_s1 + $0xb0] sm:$0xff] }
   0x8   :  { %4616 = vmatprep.subr.bf16.mxu1 %v4615_v17  ;;  %v50_v29 = vld [vmem:[%s8387_s1 + $0x20] sm:$0xff]  ;;  %v4619_v30 = vpack.c.bf16 %v99_v28, %v98_v27  ;;  %v51_v31 = vld [vmem:[%s8387_s1 + $0x28] sm:$0xff]  ;;  %v69_v36 = vld [vmem:[%s8387_s1 + $0xb8] sm:$0xff] }
   0x9   :  { %v82_v32 = vld [vmem:[%s8387_s1 + $0x120] sm:$0xff]  ;;  %v83_v33 = vld [vmem:[%s8387_s1 + $0x128] sm:$0xff]  ;;  %v4589_v34 = vpack.c.bf16 %v51_v31, %v50_v29  ;;  %v100_v37 = vld [vmem:[%s8387_s1 + $0x1b0] sm:$0xff]  ;;  %v4591_v39 = vpack.c.bf16 %v69_v36, %v68_v35 }
   0xa   :  { %4586 = vmatpush3.bf16.msra.mxu0 %v4585_v21  ;;  %v4621_v38 = vpack.c.bf16 %v83_v33, %v82_v32  ;;  %v101_v40 = vld [vmem:[%s8387_s1 + $0x1b8] sm:$0xff]  ;;  %v52_v41 = vld [vmem:[%s8387_s1 + $0x30] sm:$0xff]  ;;  %v70_v46 = vld [vmem:[%s8387_s1 + $0xc0] sm:$0xff] }
   0xb   :  { %4618 = vmatpush3.bf16.msra.mxu1 %v4617_v25  ;;  %4588 = vmatprep.subr.bf16.mxu0 %v4587_v26  ;;  %v53_v42 = vld [vmem:[%s8387_s1 + $0x38] sm:$0xff]  ;;  %v4623_v43 = vpack.c.bf16 %v101_v40, %v100_v37  ;;  %v84_v44 = vld [vmem:[%s8387_s1 + $0x130] sm:$0xff]  ;;  %v71_v47 = vld [vmem:[%s8387_s1 + $0xc8] sm:$0xff] }
   0xc   :  { %4620 = vmatprep.subr.bf16.mxu1 %v4619_v30  ;;  %v85_v45 = vld [vmem:[%s8387_s1 + $0x138] sm:$0xff]  ;;  %v102_v48 = vld [vmem:[%s8387_s1 + $0x1c0] sm:$0xff]  ;;  %v103_v49 = vld [vmem:[%s8387_s1 + $0x1c8] sm:$0xff]  ;;  %v4593_v50 = vpack.c.bf16 %v53_v42, %v52_v41  ;;  %v4595_v52 = vpack.c.bf16 %v71_v47, %v70_v46 }
   0xd   :  { %v4625_v51 = vpack.c.bf16 %v85_v45, %v84_v44  ;;  %v54_v53 = vld [vmem:[%s8387_s1 + $0x40] sm:$0xff]  ;;  %v55_v54 = vld [vmem:[%s8387_s1 + $0x48] sm:$0xff]  ;;  %v4627_v56 = vpack.c.bf16 %v103_v49, %v102_v48  ;;  %v72_v58 = vld [vmem:[%s8387_s1 + $0xd0] sm:$0xff] }
   0xe   :  { %4590 = vmatpush3.bf16.msra.mxu0 %v4589_v34  ;;  %v86_v55 = vld [vmem:[%s8387_s1 + $0x140] sm:$0xff]  ;;  %v87_v57 = vld [vmem:[%s8387_s1 + $0x148] sm:$0xff]  ;;  %v73_v59 = vld [vmem:[%s8387_s1 + $0xd8] sm:$0xff]  ;;  %v4597_v62 = vpack.c.bf16 %v55_v54, %v54_v53 }
   0xf   :  { %4622 = vmatpush3.bf16.msra.mxu1 %v4621_v38  ;;  %4592 = vmatprep.subr.bf16.mxu0 %v4591_v39  ;;  %v104_v60 = vld [vmem:[%s8387_s1 + $0x1d0] sm:$0xff]  ;;  %v105_v61 = vld [vmem:[%s8387_s1 + $0x1d8] sm:$0xff]  ;;  %v4629_v63 = vpack.c.bf16 %v87_v57, %v86_v55  ;;  %v4599_v0 = vpack.c.bf16 %v73_v59, %v72_v58  ;;  %v74_v6 = vld [vmem:[%s8387_s1 + $0xe0] sm:$0xff] }
  0x10   :  { %4624 = vmatprep.subr.bf16.mxu1 %v4623_v43  ;;  %v56_v1 = vld [vmem:[%s8387_s1 + $0x50] sm:$0xff]  ;;  %v57_v2 = vld [vmem:[%s8387_s1 + $0x58] sm:$0xff]  ;;  %v4631_v4 = vpack.c.bf16 %v105_v61, %v104_v60  ;;  %v75_v7 = vld [vmem:[%s8387_s1 + $0xe8] sm:$0xff] }
  0x11   :  { %v88_v3 = vld [vmem:[%s8387_s1 + $0x150] sm:$0xff]  ;;  %v89_v5 = vld [vmem:[%s8387_s1 + $0x158] sm:$0xff]  ;;  %v106_v8 = vld [vmem:[%s8387_s1 + $0x1e0] sm:$0xff]  ;;  %v4601_v10 = vpack.c.bf16 %v57_v2, %v56_v1  ;;  %v4603_v14 = vpack.c.bf16 %v75_v7, %v74_v6 }
  0x12   :  { %4594 = vmatpush3.bf16.msra.mxu0 %v4593_v50  ;;  %v107_v9 = vld [vmem:[%s8387_s1 + $0x1e8] sm:$0xff]  ;;  %v58_v11 = vld [vmem:[%s8387_s1 + $0x60] sm:$0xff]  ;;  %v4633_v13 = vpack.c.bf16 %v89_v5, %v88_v3  ;;  %v29_v17 = vld [vmem:[%s8388_s0 + $0x18] sm:$0xff] }
  0x13   :  { %4626 = vmatpush3.bf16.msra.mxu1 %v4625_v51  ;;  %4596 = vmatprep.subr.bf16.mxu0 %v4595_v52  ;;  %v59_v12 = vld [vmem:[%s8387_s1 + $0x68] sm:$0xff]  ;;  %v90_v15 = vld [vmem:[%s8387_s1 + $0x160] sm:$0xff]  ;;  %v4635_v18 = vpack.c.bf16 %v107_v9, %v106_v8  ;;  %v76_v20 = vld [vmem:[%s8387_s1 + $0xf0] sm:$0xff] }
  0x14   :  { %4628 = vmatprep.subr.bf16.mxu1 %v4627_v56  ;;  %v27_v16 = vld [vmem:[%s8388_s0 + $0x8] sm:$0xff]  ;;  %v77_v21 = vld [vmem:[%s8387_s1 + $0xf8] sm:$0xff]  ;;  %v108_v22 = vld [vmem:[%s8387_s1 + $0x1f0] sm:$0xff]  ;;  %508 = vmatprep.mubr.f32.mxu1 %v29_v17  ;;  %v4605_v24 = vpack.c.bf16 %v59_v12, %v58_v11 }
  0x15   :  { %v91_v19 = vld [vmem:[%s8387_s1 + $0x168] sm:$0xff]  ;;  %438 = vmatprep.mubr.f32.mxu0 %v27_v16  ;;  %v109_v23 = vld [vmem:[%s8387_s1 + $0x1f8] sm:$0xff]  ;;  %v4607_v26 = vpack.c.bf16 %v77_v21, %v76_v20  ;;  %v60_v27 = vld [vmem:[%s8387_s1 + $0x70] sm:$0xff] }
  0x16   :  { %4598 = vmatpush3.bf16.msra.mxu0 %v4597_v62  ;;  %v4637_v25 = vpack.c.bf16 %v91_v19, %v90_v15  ;;  %v61_v28 = vld [vmem:[%s8387_s1 + $0x78] sm:$0xff]  ;;  %v92_v29 = vld [vmem:[%s8387_s1 + $0x170] sm:$0xff]  ;;  %v4639_v30 = vpack.c.bf16 %v109_v23, %v108_v22  ;;  %v126_v32 = vld [vmem:[%s8387_s1 + $0x280] sm:$0xff] }
  0x17   :  { %4630 = vmatpush3.bf16.msra.mxu1 %v4629_v63  ;;  %4600 = vmatprep.subr.bf16.mxu0 %v4599_v0  ;;  %v93_v31 = vld [vmem:[%s8387_s1 + $0x178] sm:$0xff]  ;;  %v127_v33 = vld [vmem:[%s8387_s1 + $0x288] sm:$0xff]  ;;  %v158_v34 = vld [vmem:[%s8387_s1 + $0x380] sm:$0xff]  ;;  %v4609_v36 = vpack.c.bf16 %v61_v28, %v60_v27 }
  0x18   :  { %4632 = vmatprep.subr.bf16.mxu1 %v4631_v4  ;;  %v159_v35 = vld [vmem:[%s8387_s1 + $0x388] sm:$0xff]  ;;  %v4641_v37 = vpack.c.bf16 %v93_v31, %v92_v29  ;;  %v4643_v38 = vpack.c.bf16 %v127_v33, %v126_v32  ;;  %v110_v39 = vld [vmem:[%s8387_s1 + $0x200] sm:$0xff]  ;;  %v128_v44 = vld [vmem:[%s8387_s1 + $0x290] sm:$0xff] }
  0x19   :  { %v111_v40 = vld [vmem:[%s8387_s1 + $0x208] sm:$0xff]  ;;  %v142_v41 = vld [vmem:[%s8387_s1 + $0x300] sm:$0xff]  ;;  %v4675_v42 = vpack.c.bf16 %v159_v35, %v158_v34  ;;  %v129_v45 = vld [vmem:[%s8387_s1 + $0x298] sm:$0xff] }
  0x1a   :  { %4602 = vmatpush3.bf16.msra.mxu0 %v4601_v10  ;;  %v143_v43 = vld [vmem:[%s8387_s1 + $0x308] sm:$0xff]  ;;  %v160_v46 = vld [vmem:[%s8387_s1 + $0x390] sm:$0xff]  ;;  %v161_v47 = vld [vmem:[%s8387_s1 + $0x398] sm:$0xff]  ;;  %v4645_v50 = vpack.c.bf16 %v111_v40, %v110_v39  ;;  %v4647_v52 = vpack.c.bf16 %v129_v45, %v128_v44 }
  0x1b   :  { %4634 = vmatpush3.bf16.msra.mxu1 %v4633_v13  ;;  %4604 = vmatprep.subr.bf16.mxu0 %v4603_v14  ;;  %v26_v48 = vld [vmem:[%s8388_s0] sm:$0xff]  ;;  %v28_v49 = vld [vmem:[%s8388_s0 + $0x10] sm:$0xff]  ;;  %v4677_v51 = vpack.c.bf16 %v143_v43, %v142_v41  ;;  %v113_v54 = vld [vmem:[%s8387_s1 + $0x218] sm:$0xff]  ;;  %v4679_v56 = vpack.c.bf16 %v161_v47, %v160_v46 }
  0x1c   :  { %4636 = vmatprep.subr.bf16.mxu1 %v4635_v18  ;;  %v112_v53 = vld [vmem:[%s8387_s1 + $0x210] sm:$0xff]  ;;  %v145_v57 = vld [vmem:[%s8387_s1 + $0x318] sm:$0xff]  ;;  %v130_v58 = vld [vmem:[%s8387_s1 + $0x2a0] sm:$0xff] }
  0x1d   :  { %v144_v55 = vld [vmem:[%s8387_s1 + $0x310] sm:$0xff]  ;;  %v131_v59 = vld [vmem:[%s8387_s1 + $0x2a8] sm:$0xff]  ;;  %v162_v60 = vld [vmem:[%s8387_s1 + $0x3a0] sm:$0xff]  ;;  %v4649_v62 = vpack.c.bf16 %v113_v54, %v112_v53 }
  0x1e   :  { %4606 = vmatpush3.bf16.msra.mxu0 %v4605_v24  ;;  %v163_v61 = vld [vmem:[%s8387_s1 + $0x3a8] sm:$0xff]  ;;  %v4681_v63 = vpack.c.bf16 %v145_v57, %v144_v55  ;;  %v4651_v0 = vpack.c.bf16 %v131_v59, %v130_v58  ;;  %v114_v1 = vld [vmem:[%s8387_s1 + $0x220] sm:$0xff]  ;;  %v132_v6 = vld [vmem:[%s8387_s1 + $0x2b0] sm:$0xff] }
  0x1f   :  { %4638 = vmatpush3.bf16.msra.mxu1 %v4637_v25  ;;  %4608 = vmatprep.subr.bf16.mxu0 %v4607_v26  ;;  %v115_v2 = vld [vmem:[%s8387_s1 + $0x228] sm:$0xff]  ;;  %v146_v3 = vld [vmem:[%s8387_s1 + $0x320] sm:$0xff]  ;;  %v4683_v4 = vpack.c.bf16 %v163_v61, %v162_v60  ;;  %v133_v7 = vld [vmem:[%s8387_s1 + $0x2b8] sm:$0xff] }
  0x20   :  { %4640 = vmatprep.subr.bf16.mxu1 %v4639_v30  ;;  %v147_v5 = vld [vmem:[%s8387_s1 + $0x328] sm:$0xff]  ;;  %v164_v8 = vld [vmem:[%s8387_s1 + $0x3b0] sm:$0xff]  ;;  %v165_v9 = vld [vmem:[%s8387_s1 + $0x3b8] sm:$0xff]  ;;  %v4653_v10 = vpack.c.bf16 %v115_v2, %v114_v1  ;;  %v4655_v12 = vpack.c.bf16 %v133_v7, %v132_v6 }
  0x21   :  { %v4685_v11 = vpack.c.bf16 %v147_v5, %v146_v3  ;;  %v116_v13 = vld [vmem:[%s8387_s1 + $0x230] sm:$0xff]  ;;  %v117_v14 = vld [vmem:[%s8387_s1 + $0x238] sm:$0xff]  ;;  %v4687_v16 = vpack.c.bf16 %v165_v9, %v164_v8  ;;  %v134_v18 = vld [vmem:[%s8387_s1 + $0x2c0] sm:$0xff] }
  0x22   :  { %4610 = vmatpush3.bf16.msra.mxu0 %v4609_v36  ;;  %v148_v15 = vld [vmem:[%s8387_s1 + $0x330] sm:$0xff]  ;;  %v149_v17 = vld [vmem:[%s8387_s1 + $0x338] sm:$0xff]  ;;  %v135_v19 = vld [vmem:[%s8387_s1 + $0x2c8] sm:$0xff]  ;;  %v4657_v22 = vpack.c.bf16 %v117_v14, %v116_v13 }
  0x23   :  { %4642 = vmatpush3.bf16.msra.mxu1 %v4641_v37  ;;  %4644 = vmatprep.subr.bf16.mxu0 %v4643_v38  ;;  %v166_v20 = vld [vmem:[%s8387_s1 + $0x3c0] sm:$0xff]  ;;  %v167_v21 = vld [vmem:[%s8387_s1 + $0x3c8] sm:$0xff]  ;;  %v33_v24 = vld [vmem:[%s8388_s0 + $0x38] sm:$0xff]  ;;  %v4689_v25 = vpack.c.bf16 %v149_v17, %v148_v15  ;;  %v4659_v26 = vpack.c.bf16 %v135_v19, %v134_v18 }
  0x24   :  { %4676 = vmatprep.subr.bf16.mxu1 %v4675_v42  ;;  %v31_v23 = vld [vmem:[%s8388_s0 + $0x28] sm:$0xff]  ;;  %v118_v27 = vld [vmem:[%s8387_s1 + $0x240] sm:$0xff]  ;;  %v4691_v30 = vpack.c.bf16 %v167_v21, %v166_v20  ;;  %v136_v32 = vld [vmem:[%s8387_s1 + $0x2d0] sm:$0xff] }
  0x25   :  { %439 = vmatmul.mubr.f32.vlgmr.msra.gmra.mrb[0].mxu0 %v26_v48  ;;  %v119_v28 = vld [vmem:[%s8387_s1 + $0x248] sm:$0xff]  ;;  %v150_v29 = vld [vmem:[%s8387_s1 + $0x340] sm:$0xff]  ;;  %v137_v33 = vld [vmem:[%s8387_s1 + $0x2d8] sm:$0xff] }
  0x26   :  { %509 = vmatmul.mubr.f32.vlgmr.msra.gmra.mrb[0].mxu1 %v28_v49  ;;  %4646 = vmatpush3.bf16.msra.mxu0 %v4645_v50  ;;  %v151_v31 = vld [vmem:[%s8387_s1 + $0x348] sm:$0xff]  ;;  %v168_v34 = vld [vmem:[%s8387_s1 + $0x3d0] sm:$0xff]  ;;  %v169_v35 = vld [vmem:[%s8387_s1 + $0x3d8] sm:$0xff]  ;;  %v4661_v36 = vpack.c.bf16 %v119_v28, %v118_v27  ;;  %v4663_v38 = vpack.c.bf16 %v137_v33, %v136_v32 }
  0x27   :  { %4678 = vmatpush3.bf16.msra.mxu1 %v4677_v51  ;;  %4648 = vmatprep.subr.bf16.mxu0 %v4647_v52  ;;  %v4693_v37 = vpack.c.bf16 %v151_v31, %v150_v29  ;;  %v120_v39 = vld [vmem:[%s8387_s1 + $0x250] sm:$0xff]  ;;  %v121_v40 = vld [vmem:[%s8387_s1 + $0x258] sm:$0xff]  ;;  %v4695_v42 = vpack.c.bf16 %v169_v35, %v168_v34  ;;  %v138_v44 = vld [vmem:[%s8387_s1 + $0x2e0] sm:$0xff] }
  0x28   :  { %4680 = vmatprep.subr.bf16.mxu1 %v4679_v56  ;;  %578 = vmatprep.mubr.f32.mxu0 %v31_v23  ;;  %v152_v41 = vld [vmem:[%s8387_s1 + $0x350] sm:$0xff]  ;;  %v153_v43 = vld [vmem:[%s8387_s1 + $0x358] sm:$0xff]  ;;  %v139_v45 = vld [vmem:[%s8387_s1 + $0x2e8] sm:$0xff]  ;;  %v4665_v48 = vpack.c.bf16 %v121_v40, %v120_v39 }
  0x29   :  { %648 = vmatprep.mubr.f32.mxu1 %v33_v24  ;;  %v170_v46 = vld [vmem:[%s8387_s1 + $0x3e0] sm:$0xff]  ;;  %v171_v47 = vld [vmem:[%s8387_s1 + $0x3e8] sm:$0xff]  ;;  %v4697_v49 = vpack.c.bf16 %v153_v43, %v152_v41  ;;  %v4667_v50 = vpack.c.bf16 %v139_v45, %v138_v44  ;;  %v140_v56 = vld [vmem:[%s8387_s1 + $0x2f0] sm:$0xff] }
  0x2a   :  { %4650 = vmatpush3.bf16.msra.mxu0 %v4649_v62  ;;  %v122_v51 = vld [vmem:[%s8387_s1 + $0x260] sm:$0xff]  ;;  %v123_v52 = vld [vmem:[%s8387_s1 + $0x268] sm:$0xff]  ;;  %v4699_v54 = vpack.c.bf16 %v171_v47, %v170_v46  ;;  %v141_v57 = vld [vmem:[%s8387_s1 + $0x2f8] sm:$0xff] }
  0x2b   :  { %4682 = vmatpush3.bf16.msra.mxu1 %v4681_v63  ;;  %4652 = vmatprep.subr.bf16.mxu0 %v4651_v0  ;;  %v154_v53 = vld [vmem:[%s8387_s1 + $0x360] sm:$0xff]  ;;  %v155_v55 = vld [vmem:[%s8387_s1 + $0x368] sm:$0xff]  ;;  %v172_v58 = vld [vmem:[%s8387_s1 + $0x3f0] sm:$0xff]  ;;  %v4669_v60 = vpack.c.bf16 %v123_v52, %v122_v51  ;;  %v4671_v62 = vpack.c.bf16 %v141_v57, %v140_v56 }
  0x2c   :  { %4684 = vmatprep.subr.bf16.mxu1 %v4683_v4  ;;  %v173_v59 = vld [vmem:[%s8387_s1 + $0x3f8] sm:$0xff]  ;;  %v4701_v61 = vpack.c.bf16 %v155_v55, %v154_v53  ;;  %v124_v63 = vld [vmem:[%s8387_s1 + $0x270] sm:$0xff]  ;;  %v190_v4 = vld [vmem:[%s8387_s1 + $0x480] sm:$0xff] }
  0x2d   :  { %v125_v0 = vld [vmem:[%s8387_s1 + $0x278] sm:$0xff]  ;;  %v156_v1 = vld [vmem:[%s8387_s1 + $0x370] sm:$0xff]  ;;  %v4703_v2 = vpack.c.bf16 %v173_v59, %v172_v58  ;;  %v191_v5 = vld [vmem:[%s8387_s1 + $0x488] sm:$0xff] }
  0x2e   :  { %4654 = vmatpush3.bf16.msra.mxu0 %v4653_v10  ;;  %v157_v3 = vld [vmem:[%s8387_s1 + $0x378] sm:$0xff]  ;;  %v222_v6 = vld [vmem:[%s8387_s1 + $0x580] sm:$0xff]  ;;  %v223_v7 = vld [vmem:[%s8387_s1 + $0x588] sm:$0xff]  ;;  %v4673_v8 = vpack.c.bf16 %v125_v0, %v124_v63  ;;  %v4707_v10 = vpack.c.bf16 %v191_v5, %v190_v4 }
  0x2f   :  { %4686 = vmatpush3.bf16.msra.mxu1 %v4685_v11  ;;  %4656 = vmatprep.subr.bf16.mxu0 %v4655_v12  ;;  %v4705_v9 = vpack.c.bf16 %v157_v3, %v156_v1  ;;  %v174_v11 = vld [vmem:[%s8387_s1 + $0x400] sm:$0xff]  ;;  %v175_v12 = vld [vmem:[%s8387_s1 + $0x408] sm:$0xff]  ;;  %v4739_v14 = vpack.c.bf16 %v223_v7, %v222_v6  ;;  %v193_v17 = vld [vmem:[%s8387_s1 + $0x498] sm:$0xff] }
  0x30   :  { %4688 = vmatprep.subr.bf16.mxu1 %v4687_v16  ;;  %v206_v13 = vld [vmem:[%s8387_s1 + $0x500] sm:$0xff]  ;;  %v207_v15 = vld [vmem:[%s8387_s1 + $0x508] sm:$0xff]  ;;  %v192_v16 = vld [vmem:[%s8387_s1 + $0x490] sm:$0xff] }
  0x31   :  { %v224_v18 = vld [vmem:[%s8387_s1 + $0x590] sm:$0xff]  ;;  %v225_v19 = vld [vmem:[%s8387_s1 + $0x598] sm:$0xff]  ;;  %v30_v20 = vld [vmem:[%s8388_s0 + $0x20] sm:$0xff]  ;;  %v4741_v23 = vpack.c.bf16 %v207_v15, %v206_v13  ;;  %v4711_v24 = vpack.c.bf16 %v193_v17, %v192_v16 }
  0x32   :  { %4658 = vmatpush3.bf16.msra.mxu0 %v4657_v22  ;;  %v32_v21 = vld [vmem:[%s8388_s0 + $0x30] sm:$0xff]  ;;  %v4709_v22 = vpack.c.bf16 %v175_v12, %v174_v11  ;;  %v4743_v28 = vpack.c.bf16 %v225_v19, %v224_v18  ;;  %v209_v29 = vld [vmem:[%s8387_s1 + $0x518] sm:$0xff]  ;;  %v195_v31 = vld [vmem:[%s8387_s1 + $0x4a8] sm:$0xff] }
  0x33   :  { %4690 = vmatpush3.bf16.msra.mxu1 %v4689_v25  ;;  %4660 = vmatprep.subr.bf16.mxu0 %v4659_v26  ;;  %v176_v25 = vld [vmem:[%s8387_s1 + $0x410] sm:$0xff]  ;;  %v177_v26 = vld [vmem:[%s8387_s1 + $0x418] sm:$0xff]  ;;  %v226_v32 = vld [vmem:[%s8387_s1 + $0x5a0] sm:$0xff] }
  0x34   :  { %4692 = vmatprep.subr.bf16.mxu1 %v4691_v30  ;;  %v208_v27 = vld [vmem:[%s8387_s1 + $0x510] sm:$0xff]  ;;  %v194_v30 = vld [vmem:[%s8387_s1 + $0x4a0] sm:$0xff]  ;;  %v227_v33 = vld [vmem:[%s8387_s1 + $0x5a8] sm:$0xff]  ;;  %v4713_v35 = vpack.c.bf16 %v177_v26, %v176_v25 }
  0x35   :  { %v35_v34 = vld [vmem:[%s8388_s0 + $0x48] sm:$0xff]  ;;  %v178_v39 = vld [vmem:[%s8387_s1 + $0x420] sm:$0xff]  ;;  %v196_v44 = vld [vmem:[%s8387_s1 + $0x4b0] sm:$0xff] }
  0x36   :  { %4662 = vmatpush3.bf16.msra.mxu0 %v4661_v36  ;;  %v37_v36 = vld [vmem:[%s8388_s0 + $0x58] sm:$0xff]  ;;  %v179_v40 = vld [vmem:[%s8387_s1 + $0x428] sm:$0xff]  ;;  %v210_v41 = vld [vmem:[%s8387_s1 + $0x520] sm:$0xff] }
  0x37   :  { %4694 = vmatpush3.bf16.msra.mxu1 %v4693_v37  ;;  %4664 = vmatprep.subr.bf16.mxu0 %v4663_v38  ;;  %v4745_v37 = vpack.c.bf16 %v209_v29, %v208_v27  ;;  %v4715_v38 = vpack.c.bf16 %v195_v31, %v194_v30  ;;  %v211_v43 = vld [vmem:[%s8387_s1 + $0x528] sm:$0xff]  ;;  %v197_v45 = vld [vmem:[%s8387_s1 + $0x4b8] sm:$0xff]  ;;  %v228_v46 = vld [vmem:[%s8387_s1 + $0x5b0] sm:$0xff] }
  0x38   :  { %4696 = vmatprep.subr.bf16.mxu1 %v4695_v42  ;;  %v4747_v42 = vpack.c.bf16 %v227_v33, %v226_v32  ;;  %v229_v47 = vld [vmem:[%s8387_s1 + $0x5b8] sm:$0xff]  ;;  %v180_v51 = vld [vmem:[%s8387_s1 + $0x430] sm:$0xff]  ;;  %v198_v56 = vld [vmem:[%s8387_s1 + $0x4c0] sm:$0xff] }
  0x39   :  { %v181_v52 = vld [vmem:[%s8387_s1 + $0x438] sm:$0xff]  ;;  %v212_v53 = vld [vmem:[%s8387_s1 + $0x530] sm:$0xff]  ;;  %v199_v57 = vld [vmem:[%s8387_s1 + $0x4c8] sm:$0xff] }
  0x3a   :  { %4666 = vmatpush3.bf16.msra.mxu0 %v4665_v48  ;;  %v4717_v48 = vpack.c.bf16 %v179_v40, %v178_v39  ;;  %v213_v55 = vld [vmem:[%s8387_s1 + $0x538] sm:$0xff]  ;;  %v230_v58 = vld [vmem:[%s8387_s1 + $0x5c0] sm:$0xff]  ;;  %v231_v59 = vld [vmem:[%s8387_s1 + $0x5c8] sm:$0xff] }
  0x3b   :  { %4698 = vmatpush3.bf16.msra.mxu1 %v4697_v49  ;;  %4668 = vmatprep.subr.bf16.mxu0 %v4667_v50  ;;  %v4749_v49 = vpack.c.bf16 %v211_v43, %v210_v41  ;;  %v4719_v50 = vpack.c.bf16 %v197_v45, %v196_v44  ;;  %v182_v63 = vld [vmem:[%s8387_s1 + $0x440] sm:$0xff]  ;;  %v183_v0 = vld [vmem:[%s8387_s1 + $0x448] sm:$0xff]  ;;  %v200_v4 = vld [vmem:[%s8387_s1 + $0x4d0] sm:$0xff] }
  0x3c   :  { %4700 = vmatprep.subr.bf16.mxu1 %v4699_v54  ;;  %v4751_v54 = vpack.c.bf16 %v229_v47, %v228_v46  ;;  %v214_v1 = vld [vmem:[%s8387_s1 + $0x540] sm:$0xff]  ;;  %v215_v3 = vld [vmem:[%s8387_s1 + $0x548] sm:$0xff]  ;;  %v201_v5 = vld [vmem:[%s8387_s1 + $0x4d8] sm:$0xff] }
  0x3d   :  { %v232_v6 = vld [vmem:[%s8387_s1 + $0x5d0] sm:$0xff]  ;;  %v233_v7 = vld [vmem:[%s8387_s1 + $0x5d8] sm:$0xff]  ;;  %v202_v16 = vld [vmem:[%s8387_s1 + $0x4e0] sm:$0xff] }
  0x3e   :  { %4670 = vmatpush3.bf16.msra.mxu0 %v4669_v60  ;;  %v4721_v60 = vpack.c.bf16 %v181_v52, %v180_v51  ;;  %v184_v11 = vld [vmem:[%s8387_s1 + $0x450] sm:$0xff]  ;;  %v185_v12 = vld [vmem:[%s8387_s1 + $0x458] sm:$0xff]  ;;  %v203_v17 = vld [vmem:[%s8387_s1 + $0x4e8] sm:$0xff] }
  0x3f   :  { %4702 = vmatpush3.bf16.msra.mxu1 %v4701_v61  ;;  %4672 = vmatprep.subr.bf16.mxu0 %v4671_v62  ;;  %v4753_v61 = vpack.c.bf16 %v213_v55, %v212_v53  ;;  %v4723_v62 = vpack.c.bf16 %v199_v57, %v198_v56  ;;  %v216_v13 = vld [vmem:[%s8387_s1 + $0x550] sm:$0xff]  ;;  %v217_v15 = vld [vmem:[%s8387_s1 + $0x558] sm:$0xff]  ;;  %v234_v18 = vld [vmem:[%s8387_s1 + $0x5e0] sm:$0xff] }
  0x40   :  { %4704 = vmatprep.subr.bf16.mxu1 %v4703_v2  ;;  %v4755_v2 = vpack.c.bf16 %v231_v59, %v230_v58  ;;  %v235_v19 = vld [vmem:[%s8387_s1 + $0x5e8] sm:$0xff]  ;;  %v218_v25 = vld [vmem:[%s8387_s1 + $0x560] sm:$0xff]  ;;  %v205_v29 = vld [vmem:[%s8387_s1 + $0x4f8] sm:$0xff] }
  0x41   :  { %v4763_v26 = vpack.c.bf16 %v235_v19, %v234_v18  ;;  %v219_v27 = vld [vmem:[%s8387_s1 + $0x568] sm:$0xff]  ;;  %v236_v30 = vld [vmem:[%s8387_s1 + $0x5f0] sm:$0xff]  ;;  %v237_v31 = vld [vmem:[%s8387_s1 + $0x5f8] sm:$0xff] }
  0x42   :  { %4674 = vmatpush3.bf16.msra.mxu0 %v4673_v8  ;;  %v4725_v8 = vpack.c.bf16 %v183_v0, %v182_v63  ;;  %v4765_v33 = vpack.c.bf16 %v219_v27, %v218_v25  ;;  %v221_v39 = vld [vmem:[%s8387_s1 + $0x578] sm:$0xff]  ;;  %v254_v40 = vld [vmem:[%s8387_s1 + $0x680] sm:$0xff]  ;;  %v255_v41 = vld [vmem:[%s8387_s1 + $0x688] sm:$0xff] }
  0x43   :  { %4706 = vmatpush3.bf16.msra.mxu1 %v4705_v9  ;;  %4708 = vmatprep.subr.bf16.mxu0 %v4707_v10  ;;  %v4757_v9 = vpack.c.bf16 %v215_v3, %v214_v1  ;;  %v4727_v10 = vpack.c.bf16 %v201_v5, %v200_v4  ;;  %v287_v43 = vld [vmem:[%s8387_s1 + $0x788] sm:$0xff]  ;;  %v4771_v46 = vpack.c.bf16 %v255_v41, %v254_v40  ;;  %v238_v47 = vld [vmem:[%s8387_s1 + $0x600] sm:$0xff]  ;;  %v256_v52 = vld [vmem:[%s8387_s1 + $0x690] sm:$0xff] }
  0x44   :  { %4740 = vmatprep.subr.bf16.mxu1 %v4739_v14  ;;  %v4759_v14 = vpack.c.bf16 %v233_v7, %v232_v6  ;;  %v271_v51 = vld [vmem:[%s8387_s1 + $0x708] sm:$0xff]  ;;  %v257_v53 = vld [vmem:[%s8387_s1 + $0x698] sm:$0xff]  ;;  %v34_v56 = vld [vmem:[%s8388_s0 + $0x40] sm:$0xff] }
  0x45   :  { %579 = vmatmul.mubr.f32.vlgmr.msra.gmra.mrb[2].mxu0 %v30_v20  ;;  %v4729_v20 = vpack.c.bf16 %v185_v12, %v184_v11  ;;  %v289_v55 = vld [vmem:[%s8387_s1 + $0x798] sm:$0xff]  ;;  %v36_v57 = vld [vmem:[%s8388_s0 + $0x50] sm:$0xff]  ;;  %v259_v3 = vld [vmem:[%s8387_s1 + $0x6a8] sm:$0xff] }
  0x46   :  { %649 = vmatmul.mubr.f32.vlgmr.msra.gmra.mrb[2].mxu1 %v32_v21  ;;  %4710 = vmatpush3.bf16.msra.mxu0 %v4709_v22  ;;  %v4761_v21 = vpack.c.bf16 %v217_v15, %v216_v13  ;;  %v4731_v22 = vpack.c.bf16 %v203_v17, %v202_v16  ;;  %v272_v63 = vld [vmem:[%s8387_s1 + $0x710] sm:$0xff]  ;;  %v273_v1 = vld [vmem:[%s8387_s1 + $0x718] sm:$0xff]  ;;  %v290_v4 = vld [vmem:[%s8387_s1 + $0x7a0] sm:$0xff] }
  0x47   :  { %4742 = vmatpush3.bf16.msra.mxu1 %v4741_v23  ;;  %4712 = vmatprep.subr.bf16.mxu0 %v4711_v24  ;;  %v186_v23 = vld [vmem:[%s8387_s1 + $0x460] sm:$0xff]  ;;  %v187_v24 = vld [vmem:[%s8387_s1 + $0x468] sm:$0xff]  ;;  %v260_v16 = vld [vmem:[%s8387_s1 + $0x6b0] sm:$0xff] }
  0x48   :  { %4744 = vmatprep.subr.bf16.mxu1 %v4743_v28  ;;  %718 = vmatprep.mubr.f32.mxu0 %v35_v34  ;;  %v204_v28 = vld [vmem:[%s8387_s1 + $0x4f0] sm:$0xff]  ;;  %v4733_v32 = vpack.c.bf16 %v187_v24, %v186_v23  ;;  %v291_v5 = vld [vmem:[%s8387_s1 + $0x7a8] sm:$0xff]  ;;  %v242_v11 = vld [vmem:[%s8387_s1 + $0x620] sm:$0xff] }
  0x49   :  { %788 = vmatprep.mubr.f32.mxu1 %v37_v36  ;;  %v4735_v34 = vpack.c.bf16 %v205_v29, %v204_v28  ;;  %v189_v36 = vld [vmem:[%s8387_s1 + $0x478] sm:$0xff]  ;;  %v39_v6 = vld [vmem:[%s8388_s0 + $0x68] sm:$0xff]  ;;  %v274_v13 = vld [vmem:[%s8387_s1 + $0x720] sm:$0xff] }
  0x4a   :  { %4714 = vmatpush3.bf16.msra.mxu0 %v4713_v35  ;;  %v188_v35 = vld [vmem:[%s8387_s1 + $0x470] sm:$0xff]  ;;  %v243_v12 = vld [vmem:[%s8387_s1 + $0x628] sm:$0xff]  ;;  %v261_v17 = vld [vmem:[%s8387_s1 + $0x6b8] sm:$0xff] }
  0x4b   :  { %4746 = vmatpush3.bf16.msra.mxu1 %v4745_v37  ;;  %4716 = vmatprep.subr.bf16.mxu0 %v4715_v38  ;;  %v220_v37 = vld [vmem:[%s8387_s1 + $0x570] sm:$0xff]  ;;  %v4767_v38 = vpack.c.bf16 %v237_v31, %v236_v30  ;;  %v4737_v44 = vpack.c.bf16 %v189_v36, %v188_v35  ;;  %v275_v15 = vld [vmem:[%s8387_s1 + $0x728] sm:$0xff]  ;;  %v293_v19 = vld [vmem:[%s8387_s1 + $0x7b8] sm:$0xff] }
  0x4c   :  { %4748 = vmatprep.subr.bf16.mxu1 %v4747_v42  ;;  %v286_v42 = vld [vmem:[%s8387_s1 + $0x780] sm:$0xff]  ;;  %v4769_v45 = vpack.c.bf16 %v221_v39, %v220_v37  ;;  %v292_v18 = vld [vmem:[%s8387_s1 + $0x7b0] sm:$0xff]  ;;  %v245_v24 = vld [vmem:[%s8387_s1 + $0x638] sm:$0xff] }
  0x4d   :  { %v244_v23 = vld [vmem:[%s8387_s1 + $0x630] sm:$0xff]  ;;  %v277_v27 = vld [vmem:[%s8387_s1 + $0x738] sm:$0xff]  ;;  %v262_v28 = vld [vmem:[%s8387_s1 + $0x6c0] sm:$0xff] }
  0x4e   :  { %4718 = vmatpush3.bf16.msra.mxu0 %v4717_v48  ;;  %v239_v48 = vld [vmem:[%s8387_s1 + $0x608] sm:$0xff]  ;;  %v276_v25 = vld [vmem:[%s8387_s1 + $0x730] sm:$0xff]  ;;  %v294_v30 = vld [vmem:[%s8387_s1 + $0x7c0] sm:$0xff] }
  0x4f   :  { %4750 = vmatpush3.bf16.msra.mxu1 %v4749_v49  ;;  %4720 = vmatprep.subr.bf16.mxu0 %v4719_v50  ;;  %v270_v49 = vld [vmem:[%s8387_s1 + $0x700] sm:$0xff]  ;;  %v4803_v50 = vpack.c.bf16 %v287_v43, %v286_v42  ;;  %v4773_v58 = vpack.c.bf16 %v239_v48, %v238_v47  ;;  %v263_v29 = vld [vmem:[%s8387_s1 + $0x6c8] sm:$0xff]  ;;  %v264_v40 = vld [vmem:[%s8387_s1 + $0x6d0] sm:$0xff] }
  0x50   :  { %4752 = vmatprep.subr.bf16.mxu1 %v4751_v54  ;;  %v288_v54 = vld [vmem:[%s8387_s1 + $0x790] sm:$0xff]  ;;  %v4805_v59 = vpack.c.bf16 %v271_v51, %v270_v49  ;;  %v295_v31 = vld [vmem:[%s8387_s1 + $0x7c8] sm:$0xff]  ;;  %v246_v35 = vld [vmem:[%s8387_s1 + $0x640] sm:$0xff] }
  0x51   :  { %v4807_v0 = vpack.c.bf16 %v289_v55, %v288_v54  ;;  %v247_v36 = vld [vmem:[%s8387_s1 + $0x648] sm:$0xff]  ;;  %v278_v37 = vld [vmem:[%s8387_s1 + $0x740] sm:$0xff]  ;;  %v265_v41 = vld [vmem:[%s8387_s1 + $0x6d8] sm:$0xff] }
  0x52   :  { %4722 = vmatpush3.bf16.msra.mxu0 %v4721_v60  ;;  %v4775_v60 = vpack.c.bf16 %v257_v53, %v256_v52  ;;  %v279_v39 = vld [vmem:[%s8387_s1 + $0x748] sm:$0xff]  ;;  %v296_v42 = vld [vmem:[%s8387_s1 + $0x7d0] sm:$0xff]  ;;  %v297_v43 = vld [vmem:[%s8387_s1 + $0x7d8] sm:$0xff] }
  0x53   :  { %4754 = vmatpush3.bf16.msra.mxu1 %v4753_v61  ;;  %4724 = vmatprep.subr.bf16.mxu0 %v4723_v62  ;;  %v240_v61 = vld [vmem:[%s8387_s1 + $0x610] sm:$0xff]  ;;  %v241_v62 = vld [vmem:[%s8387_s1 + $0x618] sm:$0xff]  ;;  %v266_v52 = vld [vmem:[%s8387_s1 + $0x6e0] sm:$0xff] }
  0x54   :  { %4756 = vmatprep.subr.bf16.mxu1 %v4755_v2  ;;  %v258_v2 = vld [vmem:[%s8387_s1 + $0x6a0] sm:$0xff]  ;;  %v4777_v7 = vpack.c.bf16 %v241_v62, %v240_v61  ;;  %v248_v47 = vld [vmem:[%s8387_s1 + $0x650] sm:$0xff]  ;;  %v249_v48 = vld [vmem:[%s8387_s1 + $0x658] sm:$0xff] }
  0x55   :  { %v280_v49 = vld [vmem:[%s8387_s1 + $0x750] sm:$0xff]  ;;  %v281_v51 = vld [vmem:[%s8387_s1 + $0x758] sm:$0xff]  ;;  %v267_v53 = vld [vmem:[%s8387_s1 + $0x6e8] sm:$0xff] }
  0x56   :  { %4726 = vmatpush3.bf16.msra.mxu0 %v4725_v8  ;;  %v41_v8 = vld [vmem:[%s8388_s0 + $0x78] sm:$0xff]  ;;  %v298_v54 = vld [vmem:[%s8387_s1 + $0x7e0] sm:$0xff]  ;;  %v299_v55 = vld [vmem:[%s8387_s1 + $0x7e8] sm:$0xff] }
  0x57   :  { %4758 = vmatpush3.bf16.msra.mxu1 %v4757_v9  ;;  %4728 = vmatprep.subr.bf16.mxu0 %v4727_v10  ;;  %v4809_v9 = vpack.c.bf16 %v273_v1, %v272_v63  ;;  %v4779_v10 = vpack.c.bf16 %v259_v3, %v258_v2  ;;  %v282_v61 = vld [vmem:[%s8387_s1 + $0x760] sm:$0xff]  ;;  %v4827_v62 = vpack.c.bf16 %v299_v55, %v298_v54  ;;  %v283_v63 = vld [vmem:[%s8387_s1 + $0x768] sm:$0xff]  ;;  %v269_v1 = vld [vmem:[%s8387_s1 + $0x6f8] sm:$0xff] }
  0x58   :  { %4760 = vmatprep.subr.bf16.mxu1 %v4759_v14  ;;  %v4811_v14 = vpack.c.bf16 %v291_v5, %v290_v4  ;;  %v300_v2 = vld [vmem:[%s8387_s1 + $0x7f0] sm:$0xff]  ;;  %v301_v3 = vld [vmem:[%s8387_s1 + $0x7f8] sm:$0xff]  ;;  %v4829_v5 = vpack.c.bf16 %v283_v63, %v282_v61  ;;  %v327_v54 = vld [vmem:[%s8387_s1 + $0x8c8] sm:$0xff] }
  0x59   :  { %v343_v61 = vld [vmem:[%s8387_s1 + $0x948] sm:$0xff]  ;;  %v329_v63 = vld [vmem:[%s8387_s1 + $0x8d8] sm:$0xff] }
  0x5a   :  { %4730 = vmatpush3.bf16.msra.mxu0 %v4729_v20  ;;  %v4781_v20 = vpack.c.bf16 %v243_v12, %v242_v11  ;;  %v285_v11 = vld [vmem:[%s8387_s1 + $0x778] sm:$0xff]  ;;  %v318_v12 = vld [vmem:[%s8387_s1 + $0x880] sm:$0xff] }
  0x5b   :  { %4762 = vmatpush3.bf16.msra.mxu1 %v4761_v21  ;;  %4732 = vmatprep.subr.bf16.mxu0 %v4731_v22  ;;  %v4813_v21 = vpack.c.bf16 %v275_v15, %v274_v13  ;;  %v4783_v22 = vpack.c.bf16 %v261_v17, %v260_v16  ;;  %v319_v13 = vld [vmem:[%s8387_s1 + $0x888] sm:$0xff]  ;;  %v302_v17 = vld [vmem:[%s8387_s1 + $0x800] sm:$0xff] }
  0x5c   :  { %4764 = vmatprep.subr.bf16.mxu1 %v4763_v26  ;;  %v4815_v26 = vpack.c.bf16 %v293_v19, %v292_v18  ;;  %v4835_v16 = vpack.c.bf16 %v319_v13, %v318_v12  ;;  %v303_v18 = vld [vmem:[%s8387_s1 + $0x808] sm:$0xff]  ;;  %v334_v19 = vld [vmem:[%s8387_s1 + $0x900] sm:$0xff] }
  0x5d   :  { %v314_v12 = vld [vmem:[%s8387_s1 + $0x860] sm:$0xff]  ;;  %v315_v13 = vld [vmem:[%s8387_s1 + $0x868] sm:$0xff] }
  0x5e   :  { %4734 = vmatpush3.bf16.msra.mxu0 %v4733_v32  ;;  %v4785_v32 = vpack.c.bf16 %v245_v24, %v244_v23  ;;  %v38_v23 = vld [vmem:[%s8388_s0 + $0x60] sm:$0xff]  ;;  %v40_v24 = vld [vmem:[%s8388_s0 + $0x70] sm:$0xff] }
  0x5f   :  { %4766 = vmatpush3.bf16.msra.mxu1 %v4765_v33  ;;  %4736 = vmatprep.subr.bf16.mxu0 %v4735_v34  ;;  %v4817_v33 = vpack.c.bf16 %v277_v27, %v276_v25  ;;  %v4787_v34 = vpack.c.bf16 %v263_v29, %v262_v28  ;;  %v4837_v25 = vpack.c.bf16 %v303_v18, %v302_v17  ;;  %v304_v28 = vld [vmem:[%s8387_s1 + $0x810] sm:$0xff]  ;;  %v305_v29 = vld [vmem:[%s8387_s1 + $0x818] sm:$0xff] }
  0x60   :  { %4768 = vmatprep.subr.bf16.mxu1 %v4767_v38  ;;  %v4819_v38 = vpack.c.bf16 %v295_v31, %v294_v30  ;;  %v336_v30 = vld [vmem:[%s8387_s1 + $0x910] sm:$0xff]  ;;  %v5514_v31 = vmov 0.0|0.0   ;;  %v333_v17 = vld [vmem:[%s8387_s1 + $0x8f8] sm:$0xff]  ;;  %v4861_v18 = vpack.c.bf16 %v315_v13, %v314_v12  ;;  %v3442_v13 = vld [vmem:[%s8389_s3 + $0x80] sm:$0xff] }
  0x62   :  { %4738 = vmatpush3.bf16.msra.mxu0 %v4737_v44  ;;  %v4789_v44 = vpack.c.bf16 %v247_v36, %v246_v35  ;;  %v43_v35 = vld [vmem:[%s8388_s0 + $0x88] sm:$0xff]  ;;  %v4841_v36 = vpack.c.bf16 %v305_v29, %v304_v28  ;;  %v42_v29 = vld [vmem:[%s8388_s0 + $0x80] sm:$0xff] }
  0x63   :  { %4770 = vmatpush3.bf16.msra.mxu1 %v4769_v45  ;;  %4772 = vmatprep.subr.bf16.mxu0 %v4771_v46  ;;  %v4821_v45 = vpack.c.bf16 %v279_v39, %v278_v37  ;;  %v4791_v46 = vpack.c.bf16 %v265_v41, %v264_v40  ;;  %v45_v37 = vld [vmem:[%s8388_s0 + $0x98] sm:$0xff]  ;;  %v306_v40 = vld [vmem:[%s8387_s1 + $0x820] sm:$0xff]  ;;  %v307_v41 = vld [vmem:[%s8387_s1 + $0x828] sm:$0xff] }
  0x64   :  { %4804 = vmatprep.subr.bf16.mxu1 %v4803_v50  ;;  %v4823_v50 = vpack.c.bf16 %v297_v43, %v296_v42  ;;  %v338_v42 = vld [vmem:[%s8387_s1 + $0x920] sm:$0xff]  ;;  %v339_v43 = vld [vmem:[%s8387_s1 + $0x928] sm:$0xff] }
  0x65   :  { %719 = vmatmul.mubr.f32.vlgmr.msra.gmra.mrb[4].mxu0 %v34_v56  ;;  %v4793_v56 = vpack.c.bf16 %v249_v48, %v248_v47  ;;  %v4874_v47 = vpack.c.bf16 %v339_v43, %v338_v42  ;;  %v351_v28 = vld [vmem:[%s8387_s1 + $0x988] sm:$0xff]  ;;  %v358_v42 = vld [vmem:[%s8387_s1 + $0x9c0] sm:$0xf]  ;;  %v44_v43 = vld [vmem:[%s8388_s0 + $0x90] sm:$0xff] }
  0x66   :  { %789 = vmatmul.mubr.f32.vlgmr.msra.gmra.mrb[4].mxu1 %v36_v57  ;;  %4774 = vmatpush3.bf16.msra.mxu0 %v4773_v58  ;;  %v4825_v57 = vpack.c.bf16 %v281_v51, %v280_v49  ;;  %v4795_v58 = vpack.c.bf16 %v267_v53, %v266_v52  ;;  %v308_v49 = vld [vmem:[%s8387_s1 + $0x830] sm:$0xff]  ;;  %v341_v52 = vld [vmem:[%s8387_s1 + $0x938] sm:$0xff]  ;;  %v326_v53 = vld [vmem:[%s8387_s1 + $0x8c0] sm:$0xff] }
  0x67   :  { %4806 = vmatpush3.bf16.msra.mxu1 %v4805_v59  ;;  %4776 = vmatprep.subr.bf16.mxu0 %v4775_v60  ;;  %v250_v59 = vld [vmem:[%s8387_s1 + $0x660] sm:$0xff]  ;;  %v251_v60 = vld [vmem:[%s8387_s1 + $0x668] sm:$0xff]  ;;  %v340_v51 = vld [vmem:[%s8387_s1 + $0x930] sm:$0xff] }
  0x68   :  { %4808 = vmatprep.subr.bf16.mxu1 %v4807_v0  ;;  %858 = vmatprep.mubr.f32.mxu0 %v39_v6  ;;  %v268_v0 = vld [vmem:[%s8387_s1 + $0x6f0] sm:$0xff]  ;;  %v4797_v4 = vpack.c.bf16 %v251_v60, %v250_v59  ;;  %v311_v59 = vld [vmem:[%s8387_s1 + $0x848] sm:$0xff]  ;;  %v342_v60 = vld [vmem:[%s8387_s1 + $0x940] sm:$0xff] }
  0x69   :  { %928 = vmatprep.mubr.f32.mxu1 %v41_v8  ;;  %v4799_v6 = vpack.c.bf16 %v269_v1, %v268_v0  ;;  %v253_v8 = vld [vmem:[%s8387_s1 + $0x678] sm:$0xff]  ;;  %v4880_v1 = vpack.c.bf16 %v343_v61, %v342_v60 }
  0x6a   :  { %4778 = vmatpush3.bf16.msra.mxu0 %v4777_v7  ;;  %v252_v7 = vld [vmem:[%s8387_s1 + $0x670] sm:$0xff]  ;;  %v1083_v60 = vld [vmem:[%s8389_s3 + $0x38] sm:$0xff] }
  0x6b   :  { %4810 = vmatpush3.bf16.msra.mxu1 %v4809_v9  ;;  %4780 = vmatprep.subr.bf16.mxu0 %v4779_v10  ;;  %v284_v9 = vld [vmem:[%s8387_s1 + $0x770] sm:$0xff]  ;;  %v4831_v10 = vpack.c.bf16 %v301_v3, %v300_v2 }
  0x6c   :  { %4812 = vmatprep.subr.bf16.mxu1 %v4811_v14  ;;  %v4801_v14 = vpack.c.bf16 %v253_v8, %v252_v7  ;;  %v4833_v15 = vpack.c.bf16 %v285_v11, %v284_v9  ;;  %v312_v3 = vld [vmem:[%s8387_s1 + $0x850] sm:$0xff]  ;;  %v330_v7 = vld [vmem:[%s8387_s1 + $0x8e0] sm:$0xff]  ;;  %v331_v8 = vld [vmem:[%s8387_s1 + $0x8e8] sm:$0xff] }
  0x6d   :  { %v4859_v11 = vpack.c.bf16 %v331_v8, %v330_v7  ;;  %v1088_v7 = vld [vmem:[%s8389_s3 + $0x60] sm:$0xff]  ;;  %v1089_v8 = vld [vmem:[%s8389_s3 + $0x68] sm:$0xff] }
  0x6e   :  { %4782 = vmatpush3.bf16.msra.mxu0 %v4781_v20  ;;  %v335_v20 = vld [vmem:[%s8387_s1 + $0x908] sm:$0xff] }
  0x6f   :  { %4814 = vmatpush3.bf16.msra.mxu1 %v4813_v21  ;;  %4784 = vmatprep.subr.bf16.mxu0 %v4783_v22  ;;  %v320_v21 = vld [vmem:[%s8387_s1 + $0x890] sm:$0xff]  ;;  %v321_v22 = vld [vmem:[%s8387_s1 + $0x898] sm:$0xff] }
  0x70   :  { %4816 = vmatprep.subr.bf16.mxu1 %v4815_v26  ;;  %v4868_v26 = vpack.c.bf16 %v335_v20, %v334_v19  ;;  %v4839_v27 = vpack.c.bf16 %v321_v22, %v320_v21  ;;  %v316_v21 = vld [vmem:[%s8387_s1 + $0x870] sm:$0xff]  ;;  %v317_v22 = vld [vmem:[%s8387_s1 + $0x878] sm:$0xff] }
  0x72   :  { %4786 = vmatpush3.bf16.msra.mxu0 %v4785_v32  ;;  %v337_v32 = vld [vmem:[%s8387_s1 + $0x918] sm:$0xff] }
  0x73   :  { %4818 = vmatpush3.bf16.msra.mxu1 %v4817_v33  ;;  %4788 = vmatprep.subr.bf16.mxu0 %v4787_v34  ;;  %v322_v33 = vld [vmem:[%s8387_s1 + $0x8a0] sm:$0xff]  ;;  %v323_v34 = vld [vmem:[%s8387_s1 + $0x8a8] sm:$0xff] }
  0x74   :  { %4820 = vmatprep.subr.bf16.mxu1 %v4819_v38  ;;  %v4871_v38 = vpack.c.bf16 %v337_v32, %v336_v30  ;;  %v4843_v39 = vpack.c.bf16 %v323_v34, %v322_v33  ;;  %v352_v32 = vld [vmem:[%s8387_s1 + $0x990] sm:$0xff]  ;;  %v353_v33 = vld [vmem:[%s8387_s1 + $0x998] sm:$0xff] }
  0x75   :  { %v4895_v34 = vpack.c.bf16 %v353_v33, %v352_v32 }
  0x76   :  { %4790 = vmatpush3.bf16.msra.mxu0 %v4789_v44  ;;  %v324_v44 = vld [vmem:[%s8387_s1 + $0x8b0] sm:$0xff] }
  0x77   :  { %4822 = vmatpush3.bf16.msra.mxu1 %v4821_v45  ;;  %4792 = vmatprep.subr.bf16.mxu0 %v4791_v46  ;;  %v325_v45 = vld [vmem:[%s8387_s1 + $0x8b8] sm:$0xff]  ;;  %v4845_v46 = vpack.c.bf16 %v307_v41, %v306_v40  ;;  %v5515_v41 = vmov 0.0  }
  0x78   :  { %4824 = vmatprep.subr.bf16.mxu1 %v4823_v50  ;;  %v4847_v48 = vpack.c.bf16 %v325_v45, %v324_v44  ;;  %v309_v50 = vld [vmem:[%s8387_s1 + $0x838] sm:$0xff]  ;;  %v1076_v44 = vld [vmem:[%s8389_s3] sm:$0xff]  ;;  %v1077_v45 = vld [vmem:[%s8389_s3 + $0x8] sm:$0xff] }
  0x79   :  { %v4849_v55 = vpack.c.bf16 %v309_v50, %v308_v49 }
  0x7a   :  { %4794 = vmatpush3.bf16.msra.mxu0 %v4793_v56  ;;  %v4877_v56 = vpack.c.bf16 %v341_v52, %v340_v51  ;;  %v1080_v51 = vld [vmem:[%s8389_s3 + $0x20] sm:$0xff]  ;;  %v1081_v52 = vld [vmem:[%s8389_s3 + $0x28] sm:$0xff] }
  0x7b   :  { %4826 = vmatpush3.bf16.msra.mxu1 %v4825_v57  ;;  %4796 = vmatprep.subr.bf16.mxu0 %v4795_v58  ;;  %v4851_v57 = vpack.c.bf16 %v327_v54, %v326_v53  ;;  %v310_v58 = vld [vmem:[%s8387_s1 + $0x840] sm:$0xff] }
  0x7c   :  { %4828 = vmatprep.subr.bf16.mxu1 %v4827_v62  ;;  %v328_v62 = vld [vmem:[%s8387_s1 + $0x8d0] sm:$0xff]  ;;  %v4853_v0 = vpack.c.bf16 %v311_v59, %v310_v58  ;;  %v3438_v54 = vld [vmem:[%s8390_s2] ss:$0 sm:$0xff] }
  0x7d   :  { %v4855_v2 = vpack.c.bf16 %v329_v63, %v328_v62  ;;  %v1082_v59 = vld [vmem:[%s8389_s3 + $0x30] sm:$0xff] }
  0x7e   :  { %4798 = vmatpush3.bf16.msra.mxu0 %v4797_v4  ;;  %v313_v4 = vld [vmem:[%s8387_s1 + $0x858] sm:$0xff]  ;;  %v4913_v62 = vpack.c.bf16 %v1083_v60, %v1082_v59 }
  0x7f   :  { %4830 = vmatpush3.bf16.msra.mxu1 %v4829_v5  ;;  %4800 = vmatprep.subr.bf16.mxu0 %v4799_v6  ;;  %v344_v5 = vld [vmem:[%s8387_s1 + $0x950] sm:$0xff]  ;;  %v345_v6 = vld [vmem:[%s8387_s1 + $0x958] sm:$0xff]  ;;  %v4857_v9 = vpack.c.bf16 %v313_v4, %v312_v3 }
  0x80   :  { %4832 = vmatprep.subr.bf16.mxu1 %v4831_v10  ;;  %v4883_v10 = vpack.c.bf16 %v345_v6, %v344_v5  ;;  %v1086_v4 = vld [vmem:[%s8389_s3 + $0x50] sm:$0xff]  ;;  %v1087_v5 = vld [vmem:[%s8389_s3 + $0x58] sm:$0xff] }
  0x81   :  { %v4919_v6 = vpack.c.bf16 %v1087_v5, %v1086_v4  ;;  %v3456_v5 = vld [vmem:[%s8389_s3 + $0xf0] sm:$0xff] }
  0x82   :  { %4802 = vmatpush3.bf16.msra.mxu0 %v4801_v14  ;;  %v346_v14 = vld [vmem:[%s8387_s1 + $0x960] sm:$0xff] }
  0x83   :  { %4834 = vmatpush3.bf16.msra.mxu1 %v4833_v15  ;;  %4836 = vmatprep.subr.bf16.mxu0 %v4835_v16  ;;  %v347_v15 = vld [vmem:[%s8387_s1 + $0x968] sm:$0xff]  ;;  %v332_v16 = vld [vmem:[%s8387_s1 + $0x8f0] sm:$0xff] }
  0x84   :  { %4867 = vmatprep.subr.bf16.mxu1 %v5514_v31  ;;  %v4886_v19 = vpack.c.bf16 %v347_v15, %v346_v14  ;;  %v4863_v20 = vpack.c.bf16 %v333_v17, %v332_v16  ;;  %v3443_v14 = vld [vmem:[%s8389_s3 + $0x88] sm:$0xff]  ;;  %v3444_v15 = vld [vmem:[%s8389_s3 + $0x90] sm:$0xff]  ;;  %v3445_v17 = vld [vmem:[%s8389_s3 + $0x98] sm:$0xff] }
  0x85   :  { %859 = vmatmul.mubr.f32.vlgmr.msra.gmra.mrb[6].mxu0 %v38_v23  ;;  %v348_v23 = vld [vmem:[%s8387_s1 + $0x970] sm:$0xff]  ;;  %v4928_v16 = vpack.c.bf16 %v3443_v14, %v3442_v13  ;;  %v3464_v14 = vld [vmem:[%s8389_s3 + $0x120] sm:$0xff] }
  0x86   :  { %929 = vmatmul.mubr.f32.vlgmr.msra.gmra.mrb[6].mxu1 %v40_v24  ;;  %4838 = vmatpush3.bf16.msra.mxu0 %v4837_v25  ;;  %v349_v24 = vld [vmem:[%s8387_s1 + $0x978] sm:$0xff]  ;;  %v4865_v25 = vpack.c.bf16 %v317_v22, %v316_v21 }
  0x87   :  { %4869 = vmatpush1.bf16.msra.mxu1 %v4868_v26  ;;  %4840 = vmatprep.subr.bf16.mxu0 %v4839_v27  ;;  %v4889_v26 = vpack.c.bf16 %v349_v24, %v348_v23  ;;  %v350_v27 = vld [vmem:[%s8387_s1 + $0x980] sm:$0xff] }
  0x88   :  { %4870 = vmatprep.subr.bf16.mxu1 %v5514_v31  ;;  %998 = vmatprep.mubr.f32.mxu0 %v43_v35  ;;  %v4892_v30 = vpack.c.bf16 %v351_v28, %v350_v27  ;;  %v354_v35 = vld [vmem:[%s8387_s1 + $0x9a0] sm:$0xff]  ;;  %v3448_v27 = vld [vmem:[%s8389_s3 + $0xb0] sm:$0xff]  ;;  %v3449_v28 = vld [vmem:[%s8389_s3 + $0xb8] sm:$0xff] }
  0x89   :  { %3440 = vmatprep.mubr.msk.f32.mxu1 %vm366_vm0, %v45_v37  ;;  %v4937_v32 = vpack.c.bf16 %v3449_v28, %v3448_v27 }
  0x8a   :  { %4842 = vmatpush3.bf16.msra.mxu0 %v4841_v36  ;;  %v355_v36 = vld [vmem:[%s8387_s1 + $0x9a8] sm:$0xff] }
  0x8b   :  { %4872 = vmatpush1.bf16.msra.mxu1 %v4871_v38  ;;  %4844 = vmatprep.subr.bf16.mxu0 %v4843_v39  ;;  %v4898_v37 = vpack.c.bf16 %v355_v36, %v354_v35  ;;  %v356_v38 = vld [vmem:[%s8387_s1 + $0x9b0] sm:$0xff]  ;;  %v357_v39 = vld [vmem:[%s8387_s1 + $0x9b8] sm:$0xff]  ;;  %v3451_v35 = vld [vmem:[%s8389_s3 + $0xc8] sm:$0xff] }
  0x8c   :  { %4873 = vmatprep.subr.bf16.mxu1 %v5514_v31  ;;  %v4901_v40 = vpack.c.bf16 %v357_v39, %v356_v38  ;;  %v3453_v38 = vld [vmem:[%s8389_s3 + $0xd8] sm:$0xff] }
  0x8e   :  { %4846 = vmatpush3.bf16.msra.mxu0 %v4845_v46  ;;  %v1078_v46 = vld [vmem:[%s8389_s3 + $0x10] sm:$0xff] }
  0x8f   :  { %4875 = vmatpush1.bf16.msra.mxu1 %v4874_v47  ;;  %4848 = vmatprep.subr.bf16.mxu0 %v4847_v48  ;;  %v4904_v47 = vpack.c.bf16 %v1077_v45, %v1076_v44  ;;  %v1079_v48 = vld [vmem:[%s8389_s3 + $0x18] sm:$0xff] }
  0x90   :  { %4876 = vmatprep.subr.bf16.mxu1 %v5514_v31  ;;  %v4907_v49 = vpack.c.bf16 %v1079_v48, %v1078_v46 }
  0x92   :  { %4850 = vmatpush3.bf16.msra.mxu0 %v4849_v55 }
  0x93   :  { %4878 = vmatpush1.bf16.msra.mxu1 %v4877_v56  ;;  %4852 = vmatprep.subr.bf16.mxu0 %v4851_v57  ;;  %v4910_v56 = vpack.c.bf16 %v1081_v52, %v1080_v51 }
  0x94   :  { %4879 = vmatprep.subr.bf16.mxu1 %v5514_v31 }
  0x96   :  { %4854 = vmatpush3.bf16.msra.mxu0 %v4853_v0  ;;  %v1084_v0 = vld [vmem:[%s8389_s3 + $0x40] sm:$0xff] }
  0x97   :  { %4881 = vmatpush1.bf16.msra.mxu1 %v4880_v1  ;;  %4856 = vmatprep.subr.bf16.mxu0 %v4855_v2  ;;  %v1085_v1 = vld [vmem:[%s8389_s3 + $0x48] sm:$0xff] }
  0x98   :  { %4882 = vmatprep.subr.bf16.mxu1 %v5514_v31  ;;  %v4916_v3 = vpack.c.bf16 %v1085_v1, %v1084_v0 }
  0x9a   :  { %4858 = vmatpush3.bf16.msra.mxu0 %v4857_v9  ;;  %v4922_v9 = vpack.c.bf16 %v1089_v8, %v1088_v7  ;;  %v3460_v8 = vld [vmem:[%s8389_s3 + $0x100] sm:$0xff] }
  0x9b   :  { %4884 = vmatpush1.bf16.msra.mxu1 %v4883_v10  ;;  %4860 = vmatprep.subr.bf16.mxu0 %v4859_v11  ;;  %v1090_v10 = vld [vmem:[%s8389_s3 + $0x70] sm:$0xff]  ;;  %v1091_v11 = vld [vmem:[%s8389_s3 + $0x78] sm:$0xff] }
  0x9c   :  { %4885 = vmatprep.subr.bf16.mxu1 %v5514_v31  ;;  %v4925_v12 = vpack.c.bf16 %v1091_v11, %v1090_v10  ;;  %v3462_v10 = vld [vmem:[%s8389_s3 + $0x110] sm:$0xff] }
  0x9e   :  { %4862 = vmatpush3.bf16.msra.mxu0 %v4861_v18  ;;  %v4931_v18 = vpack.c.bf16 %v3445_v17, %v3444_v15  ;;  %v3465_v15 = vld [vmem:[%s8389_s3 + $0x128] sm:$0xff]  ;;  %v3466_v17 = vld [vmem:[%s8389_s3 + $0x130] sm:$0xff] }
  0x9f   :  { %4887 = vmatpush1.bf16.msra.mxu1 %v4886_v19  ;;  %4864 = vmatprep.subr.bf16.mxu0 %v4863_v20  ;;  %v3446_v19 = vld [vmem:[%s8389_s3 + $0xa0] sm:$0xff]  ;;  %v3447_v20 = vld [vmem:[%s8389_s3 + $0xa8] sm:$0xff] }
  0xa0   :  { %4888 = vmatprep.subr.bf16.mxu1 %v5514_v31  ;;  %v4934_v24 = vpack.c.bf16 %v3447_v20, %v3446_v19  ;;  %v3468_v20 = vld [vmem:[%s8389_s3 + $0x140] sm:$0xff] }
  0xa2   :  { %4866 = vmatpush3.bf16.msra.mxu0 %v4865_v25 }
  0xa3   :  { %4890 = vmatpush1.bf16.msra.mxu1 %v4889_v26  ;;  %4903 = vmatprep.subr.bf16.mxu0 %v5514_v31 }
  0xa4   :  { %4891 = vmatprep.subr.bf16.mxu1 %v5514_v31 }
  0xa5   :  { %999 = vmatmul.mubr.f32.vlgmr.msra.gmra.mrb[8].mxu0 %v42_v29 }
  0xa6   :  { %4905 = vmatpush3.bf16.msra.mxu0 %v4904_v47  ;;  %4191 = vmatprep.mubr.msk.f32.mxu0 %vm5516_vm2, %v5515_v41 }
  0xa7   :  { %4893 = vmatpush1.bf16.msra.mxu1 %v4892_v30  ;;  %4906 = vmatprep.subr.bf16.mxu0 %v5514_v31 }
  0xa8   :  { %4894 = vmatprep.subr.bf16.mxu1 %v5514_v31 }
  0xaa   :  { %4908 = vmatpush3.bf16.msra.mxu0 %v4907_v49 }
  0xab   :  { %4896 = vmatpush1.bf16.msra.mxu1 %v4895_v34  ;;  %4909 = vmatprep.subr.bf16.mxu0 %v5514_v31  ;;  %v3450_v34 = vld [vmem:[%s8389_s3 + $0xc0] sm:$0xff] }
  0xac   :  { %4897 = vmatprep.subr.bf16.mxu1 %v5514_v31  ;;  %v4940_v36 = vpack.c.bf16 %v3451_v35, %v3450_v34  ;;  %v3473_v34 = vld [vmem:[%s8389_s3 + $0x168] sm:$0xff] }
  0xae   :  { %4911 = vmatpush3.bf16.msra.mxu0 %v4910_v56 }
  0xaf   :  { %4899 = vmatpush1.bf16.msra.mxu1 %v4898_v37  ;;  %4912 = vmatprep.subr.bf16.mxu0 %v5514_v31  ;;  %v3452_v37 = vld [vmem:[%s8389_s3 + $0xd0] sm:$0xff] }
  0xb0   :  { %4900 = vmatprep.subr.bf16.mxu1 %v5514_v31  ;;  %v4943_v39 = vpack.c.bf16 %v3453_v38, %v3452_v37  ;;  %v3475_v37 = vld [vmem:[%s8389_s3 + $0x178] sm:$0xff] }
  0xb2   :  { %4914 = vmatpush3.bf16.msra.mxu0 %v4913_v62 }
  0xb3   :  { %4902 = vmatpush1.bf16.msra.mxu1 %v4901_v40  ;;  %4915 = vmatprep.subr.bf16.mxu0 %v5514_v31 }
  0xb4   :  { %1052 = vmatprep.subr.mxu1 %v5515_v41 }
  0xb6   :  { %4917 = vmatpush3.bf16.msra.mxu0 %v4916_v3  ;;  %v3455_v3 = vld [vmem:[%s8389_s3 + $0xe8] sm:$0xff] }
  0xb7   :  { %3439 = vmatpush1.msk.msra.mxu1 %vm370_vm1, %v358_v42  ;;  %4918 = vmatprep.subr.bf16.mxu0 %v5514_v31 }
  0xb8   :  { %1069 = vmatmul.mubr.f32.vlgmr.msra.gmra.mrb[8].mxu1 %v44_v43  ;;  %4927 = vmatprep.subr.bf16.mxu1 %v5514_v31 }
  0xb9   :  { %4226 = vmatprep.mubr.msk.f32.mxu1 %vm5516_vm2, %v5515_v41  ;;  %4929 = vmatpush3.bf16.msra.mxu1 %v4928_v16  ;;  %v4958_v16 = vpack.c.bf16 %v3465_v15, %v3464_v14  ;;  %v3502_v15 = vld [vmem:[%s8389_s3 + $0x230] sm:$0xff] }
  0xba   :  { %4920 = vmatpush3.bf16.msra.mxu0 %v4919_v6  ;;  %4930 = vmatprep.subr.bf16.mxu1 %v5514_v31  ;;  %v3457_v6 = vld [vmem:[%s8389_s3 + $0xf8] sm:$0xff] }
  0xbb   :  { %4921 = vmatprep.subr.bf16.mxu0 %v5514_v31  ;;  %v4949_v7 = vpack.c.bf16 %v3457_v6, %v3456_v5  ;;  %v3496_v6 = vld [vmem:[%s8389_s3 + $0x200] sm:$0xff] }
  0xbd   :  { %4932 = vmatpush3.bf16.msra.mxu1 %v4931_v18  ;;  %v3467_v18 = vld [vmem:[%s8389_s3 + $0x138] sm:$0xff] }
  0xbe   :  { %4923 = vmatpush3.bf16.msra.mxu0 %v4922_v9  ;;  %4933 = vmatprep.subr.bf16.mxu1 %v5514_v31  ;;  %v3461_v9 = vld [vmem:[%s8389_s3 + $0x108] sm:$0xff]  ;;  %v4961_v19 = vpack.c.bf16 %v3467_v18, %v3466_v17  ;;  %v3504_v18 = vld [vmem:[%s8389_s3 + $0x240] sm:$0xff] }
  0xbf   :  { %4924 = vmatprep.subr.bf16.mxu0 %v5514_v31  ;;  %v4952_v11 = vpack.c.bf16 %v3461_v9, %v3460_v8  ;;  %v3498_v8 = vld [vmem:[%s8389_s3 + $0x210] sm:$0xff] }
  0xc1   :  { %4935 = vmatpush3.bf16.msra.mxu1 %v4934_v24  ;;  %v3471_v24 = vld [vmem:[%s8389_s3 + $0x158] sm:$0xff] }
  0xc2   :  { %4926 = vmatpush3.bf16.msra.mxu0 %v4925_v12  ;;  %4936 = vmatprep.subr.bf16.mxu1 %v5514_v31  ;;  %v3463_v12 = vld [vmem:[%s8389_s3 + $0x118] sm:$0xff] }
  0xc3   :  { %4951 = vmatprep.subr.bf16.mxu0 %v5514_v31  ;;  %v4955_v13 = vpack.c.bf16 %v3463_v12, %v3462_v10  ;;  %v3499_v10 = vld [vmem:[%s8389_s3 + $0x218] sm:$0xff]  ;;  %v3500_v12 = vld [vmem:[%s8389_s3 + $0x220] sm:$0xff] }
  0xc5   :  { %4938 = vmatpush3.bf16.msra.mxu1 %v4937_v32 }
  0xc6   :  { %4939 = vmatprep.subr.bf16.mxu1 %v5514_v31 }
  0xc9   :  { %4941 = vmatpush3.bf16.msra.mxu1 %v4940_v36  ;;  %v3474_v36 = vld [vmem:[%s8389_s3 + $0x170] sm:$0xff] }
  0xca   :  { %4942 = vmatprep.subr.bf16.mxu1 %v5514_v31  ;;  %v4973_v38 = vpack.c.bf16 %v3475_v37, %v3474_v36  ;;  %v3514_v37 = vld [vmem:[%s8389_s3 + $0x280] sm:$0xff] }
  0xcd   :  { %4944 = vmatpush3.bf16.msra.mxu1 %v4943_v39  ;;  %v3478_v39 = vld [vmem:[%s8389_s3 + $0x180] sm:$0xff] }
  0xce   :  { %4945 = vmatprep.subr.bf16.mxu1 %v5514_v31 }
  0xf8   :  { %v3672_v50 = vpop.f32.mrb[0].mxu0 }
  0xf9   :  { %v3707_v53 = vpop.f32.mrb[0].mxu1  ;;  %v3673_v55 = vpop.f32.mrb[1].mxu0 }
  0xfa   :  { %v3674_v57 = vadd.f32 %v3673_v55, %v3672_v50  ;;  %v3708_v58 = vpop.f32.mrb[1].mxu1 }
  0xfb   :  { %v3709_v61 = vadd.f32 %v3708_v58, %v3707_v53 }
  0xfc   :  { %v441_v63 = vadd.f32 %v3674_v57, %v3438_v54 }
  0xfe   :  { %v511_v2 = vadd.f32 %v3709_v61, %v441_v63 }
 0x118   :  { %v3742_v21 = vpop.f32.mrb[2].mxu0 }
 0x119   :  { %v3777_v22 = vpop.f32.mrb[2].mxu1  ;;  %v3743_v23 = vpop.f32.mrb[3].mxu0 }
 0x11a   :  { %v3744_v25 = vadd.f32 %v3743_v23, %v3742_v21  ;;  %v3778_v26 = vpop.f32.mrb[3].mxu1  ;;  %v3469_v21 = vld [vmem:[%s8389_s3 + $0x148] sm:$0xff]  ;;  %v3470_v23 = vld [vmem:[%s8389_s3 + $0x150] sm:$0xff] }
 0x11b   :  { %v3779_v29 = vadd.f32 %v3778_v26, %v3777_v22  ;;  %v4964_v22 = vpack.c.bf16 %v3469_v21, %v3468_v20  ;;  %v3441_v26 = vld [vmem:[%s8391_s4] ss:$0 sm:$0xff]  ;;  %v3506_v21 = vld [vmem:[%s8389_s3 + $0x250] sm:$0xff] }
 0x11c   :  { %v581_v30 = vadd.f32 %v3744_v25, %v511_v2  ;;  %v3454_v2 = vld [vmem:[%s8389_s3 + $0xe0] sm:$0xff]  ;;  %v4967_v25 = vpack.c.bf16 %v3471_v24, %v3470_v23 }
 0x11d   :  { %v4946_v4 = vpack.c.bf16 %v3455_v3, %v3454_v2  ;;  %v3492_v3 = vld [vmem:[%s8389_s3 + $0x1f0] sm:$0xff]  ;;  %v3477_v24 = vld [vmem:[%s8391_s4 + $0x2] ss:$0 sm:$0xff] }
 0x11e   :  { %v651_v33 = vadd.f32 %v3779_v29, %v581_v30 }
 0x11f   :  { %4947 = vmatpush3.bf16.msra.mxu1 %v4946_v4  ;;  %v3493_v4 = vld [vmem:[%s8389_s3 + $0x1f8] sm:$0xff] }
 0x120   :  { %4948 = vmatprep.subr.bf16.mxu1 %v5514_v31  ;;  %v4997_v5 = vpack.c.bf16 %v3493_v4, %v3492_v3  ;;  %v3532_v4 = vld [vmem:[%s8389_s3 + $0x300] sm:$0xff] }
 0x123   :  { %4950 = vmatpush3.bf16.msra.mxu1 %v4949_v7  ;;  %v3497_v7 = vld [vmem:[%s8389_s3 + $0x208] sm:$0xff] }
 0x124   :  { %4975 = vmatprep.subr.bf16.mxu1 %v5514_v31  ;;  %v5000_v9 = vpack.c.bf16 %v3497_v7, %v3496_v6  ;;  %v3534_v6 = vld [vmem:[%s8389_s3 + $0x310] sm:$0xff] }
 0x138   :  { %v3812_v40 = vpop.f32.mrb[4].mxu0 }
 0x139   :  { %v3847_v42 = vpop.f32.mrb[4].mxu1  ;;  %v3813_v43 = vpop.f32.mrb[5].mxu0 }
 0x13a   :  { %v3814_v44 = vadd.f32 %v3813_v43, %v3812_v40  ;;  %v3848_v45 = vpop.f32.mrb[5].mxu1  ;;  %v3479_v40 = vld [vmem:[%s8389_s3 + $0x188] sm:$0xff] }
 0x13b   :  { %v3849_v46 = vadd.f32 %v3848_v45, %v3847_v42  ;;  %v3480_v42 = vld [vmem:[%s8389_s3 + $0x190] sm:$0xff]  ;;  %v4976_v43 = vpack.c.bf16 %v3479_v40, %v3478_v39 }
 0x13c   :  { %v721_v47 = vadd.f32 %v3814_v44, %v651_v33  ;;  %v3472_v33 = vld [vmem:[%s8389_s3 + $0x160] sm:$0xff]  ;;  %v3481_v44 = vld [vmem:[%s8389_s3 + $0x198] sm:$0xff]  ;;  %v3516_v39 = vld [vmem:[%s8389_s3 + $0x290] sm:$0xff] }
 0x13d   :  { %v4970_v35 = vpack.c.bf16 %v3473_v34, %v3472_v33  ;;  %v4979_v45 = vpack.c.bf16 %v3481_v44, %v3480_v42  ;;  %v3510_v34 = vld [vmem:[%s8389_s3 + $0x270] sm:$0xff]  ;;  %v3517_v42 = vld [vmem:[%s8389_s3 + $0x298] sm:$0xff]  ;;  %v3518_v44 = vld [vmem:[%s8389_s3 + $0x2a0] sm:$0xff] }
 0x13e   :  { %v791_v48 = vadd.f32 %v3849_v46, %v721_v47  ;;  %v3482_v46 = vld [vmem:[%s8389_s3 + $0x1a0] sm:$0xff]  ;;  %v3483_v47 = vld [vmem:[%s8389_s3 + $0x1a8] sm:$0xff] }
 0x158   :  { %v3882_v49 = vpop.f32.mrb[6].mxu0 }
 0x159   :  { %v3917_v50 = vpop.f32.mrb[6].mxu1  ;;  %v3883_v51 = vpop.f32.mrb[7].mxu0 }
 0x15a   :  { %v3884_v52 = vadd.f32 %v3883_v51, %v3882_v49  ;;  %v3918_v53 = vpop.f32.mrb[7].mxu1  ;;  %v3484_v49 = vld [vmem:[%s8389_s3 + $0x1b0] sm:$0xff] }
 0x15b   :  { %v3919_v54 = vadd.f32 %v3918_v53, %v3917_v50  ;;  %v3485_v50 = vld [vmem:[%s8389_s3 + $0x1b8] sm:$0xff]  ;;  %v3487_v53 = vld [vmem:[%s8389_s3 + $0x1c8] sm:$0xff] }
 0x15c   :  { %v861_v55 = vadd.f32 %v3884_v52, %v791_v48  ;;  %v4982_v48 = vpack.c.bf16 %v3483_v47, %v3482_v46  ;;  %v4985_v51 = vpack.c.bf16 %v3485_v50, %v3484_v49  ;;  %v3486_v52 = vld [vmem:[%s8389_s3 + $0x1c0] sm:$0xff]  ;;  %v3520_v47 = vld [vmem:[%s8389_s3 + $0x2b0] sm:$0xff] }
 0x15d   :  { %v3522_v50 = vld [vmem:[%s8389_s3 + $0x2c0] sm:$0xff] }
 0x15e   :  { %v931_v56 = vadd.f32 %v3919_v54, %v861_v55  ;;  %v4988_v54 = vpack.c.bf16 %v3487_v53, %v3486_v52  ;;  %v3488_v55 = vld [vmem:[%s8389_s3 + $0x1d0] sm:$0xff] }
 0x15f   :  { %v3524_v53 = vld [vmem:[%s8389_s3 + $0x2d0] sm:$0xff] }
 0x178   :  { %v3952_v57 = vpop.f32.mrb[8].mxu0 }
 0x179   :  { %v3953_v58 = vpop.f32.mrb[9].mxu0 }
 0x17a   :  { %v3954_v59 = vadd.f32 %v3953_v58, %v3952_v57  ;;  %v3459_v58 = vld [vmem:[%s8391_s4 + $0x1] ss:$0 sm:$0xff] }
 0x17c   :  { %v1001_v60 = vadd.f32 %v3954_v59, %v931_v56  ;;  %v3489_v56 = vld [vmem:[%s8389_s3 + $0x1d8] sm:$0xff] }
 0x17d   :  { %v4991_v57 = vpack.c.bf16 %v3489_v56, %v3488_v55  ;;  %v3495_v56 = vld [vmem:[%s8391_s4 + $0x3] ss:$0 sm:$0xff] }
 0x18b   :  { %v1070_v61 = vpop.f32.mrb[8].mxu1 }
 0x18c   :  { %v1071_v62 = vadd.f32 %v1070_v61, %v1001_v60  ;;  %v1072_v63 = vpop.f32.mrb[9].mxu1 }
 0x18e   :  { %v1074_v0 = vmul.f32 0.01, %v1071_v62 }
 0x190   :  { %v1075_v1 = vmax.f32 %v1071_v62, %v1074_v0  ;;  %v3490_v0 = vld [vmem:[%s8389_s3 + $0x1e0] sm:$0xff] }
 0x192   :  { %4192 = vmatmul.mubr.f32.vlgmr.msra.gmra.mrb[10].mxu0 %v1075_v1  ;;  %v3491_v1 = vld [vmem:[%s8389_s3 + $0x1e8] sm:$0xff] }
 0x193   :  { %4261 = vmatprep.mubr.msk.f32.mxu0 %vm5516_vm2, %v5515_v41  ;;  %4953 = vmatpush3.bf16.msra.mxu0 %v4952_v11  ;;  %v4994_v2 = vpack.c.bf16 %v3491_v1, %v3490_v0  ;;  %v5003_v11 = vpack.c.bf16 %v3499_v10, %v3498_v8  ;;  %v3528_v1 = vld [vmem:[%s8389_s3 + $0x2f0] sm:$0xff]  ;;  %v3535_v8 = vld [vmem:[%s8389_s3 + $0x318] sm:$0xff]  ;;  %v3536_v10 = vld [vmem:[%s8389_s3 + $0x320] sm:$0xff] }
 0x194   :  { %4954 = vmatprep.subr.bf16.mxu0 %v5514_v31 }
 0x197   :  { %4956 = vmatpush3.bf16.msra.mxu0 %v4955_v13  ;;  %v3501_v13 = vld [vmem:[%s8389_s3 + $0x228] sm:$0xff] }
 0x198   :  { %4957 = vmatprep.subr.bf16.mxu0 %v5514_v31  ;;  %v5006_v14 = vpack.c.bf16 %v3501_v13, %v3500_v12  ;;  %v3538_v13 = vld [vmem:[%s8389_s3 + $0x330] sm:$0xff] }
 0x19b   :  { %4959 = vmatpush3.bf16.msra.mxu0 %v4958_v16  ;;  %v3503_v16 = vld [vmem:[%s8389_s3 + $0x238] sm:$0xff] }
 0x19c   :  { %4960 = vmatprep.subr.bf16.mxu0 %v5514_v31  ;;  %v5009_v17 = vpack.c.bf16 %v3503_v16, %v3502_v15  ;;  %v3540_v16 = vld [vmem:[%s8389_s3 + $0x340] sm:$0xff] }
 0x19f   :  { %4962 = vmatpush3.bf16.msra.mxu0 %v4961_v19  ;;  %v3505_v19 = vld [vmem:[%s8389_s3 + $0x248] sm:$0xff] }
 0x1a0   :  { %4963 = vmatprep.subr.bf16.mxu0 %v5514_v31  ;;  %v5012_v20 = vpack.c.bf16 %v3505_v19, %v3504_v18  ;;  %v3542_v19 = vld [vmem:[%s8389_s3 + $0x350] sm:$0xff] }
 0x1a3   :  { %4965 = vmatpush3.bf16.msra.mxu0 %v4964_v22  ;;  %v3507_v22 = vld [vmem:[%s8389_s3 + $0x258] sm:$0xff] }
 0x1a4   :  { %4966 = vmatprep.subr.bf16.mxu0 %v5514_v31  ;;  %v5015_v23 = vpack.c.bf16 %v3507_v22, %v3506_v21  ;;  %v3513_v22 = vld [vmem:[%s8391_s4 + $0x4] ss:$0 sm:$0xff] }
 0x1a7   :  { %4968 = vmatpush3.bf16.msra.mxu0 %v4967_v25 }
 0x1a8   :  { %4969 = vmatprep.subr.bf16.mxu0 %v5514_v31 }
 0x1ab   :  { %4971 = vmatpush3.bf16.msra.mxu0 %v4970_v35  ;;  %v3511_v35 = vld [vmem:[%s8389_s3 + $0x278] sm:$0xff] }
 0x1ac   :  { %4972 = vmatprep.subr.bf16.mxu0 %v5514_v31  ;;  %v5021_v36 = vpack.c.bf16 %v3511_v35, %v3510_v34  ;;  %v3550_v35 = vld [vmem:[%s8389_s3 + $0x380] sm:$0xff] }
 0x1af   :  { %4974 = vmatpush3.bf16.msra.mxu0 %v4973_v38  ;;  %v3515_v38 = vld [vmem:[%s8389_s3 + $0x288] sm:$0xff] }
 0x1b0   :  { %4999 = vmatprep.subr.bf16.mxu0 %v5514_v31  ;;  %v5024_v40 = vpack.c.bf16 %v3515_v38, %v3514_v37  ;;  %v3552_v37 = vld [vmem:[%s8389_s3 + $0x390] sm:$0xff] }
 0x265   :  { %v1165_v27 = vpop.f32.mrb[10].mxu0 }
 0x266   :  { %v1166_v28 = vadd.f32 %v3441_v26, %v1165_v27  ;;  %v4193_v29 = vpop.f32.mrb[11].mxu0 }
 0x268   :  { %v1169_v30 = vmul.f32 0.01, %v1166_v28 }
 0x26a   :  { %v1170_v32 = vmax.f32 %v1166_v28, %v1169_v30  ;;  %v3508_v30 = vld [vmem:[%s8389_s3 + $0x260] sm:$0xff] }
 0x26c   :  { %4227 = vmatmul.mubr.f32.vlgmr.msra.gmra.mrb[10].mxu1 %v1170_v32  ;;  %v3509_v32 = vld [vmem:[%s8389_s3 + $0x268] sm:$0xff] }
 0x26d   :  { %4296 = vmatprep.mubr.msk.f32.mxu1 %vm5516_vm2, %v5515_v41  ;;  %4977 = vmatpush3.bf16.msra.mxu1 %v4976_v43  ;;  %v5018_v33 = vpack.c.bf16 %v3509_v32, %v3508_v30  ;;  %v5027_v43 = vpack.c.bf16 %v3517_v42, %v3516_v39  ;;  %v3546_v32 = vld [vmem:[%s8389_s3 + $0x370] sm:$0xff]  ;;  %v3553_v39 = vld [vmem:[%s8389_s3 + $0x398] sm:$0xff]  ;;  %v3554_v42 = vld [vmem:[%s8389_s3 + $0x3a0] sm:$0xff] }
 0x26e   :  { %4978 = vmatprep.subr.bf16.mxu1 %v5514_v31 }
 0x271   :  { %4980 = vmatpush3.bf16.msra.mxu1 %v4979_v45  ;;  %v3519_v45 = vld [vmem:[%s8389_s3 + $0x2a8] sm:$0xff] }
 0x272   :  { %4981 = vmatprep.subr.bf16.mxu1 %v5514_v31  ;;  %v5030_v46 = vpack.c.bf16 %v3519_v45, %v3518_v44  ;;  %v3556_v45 = vld [vmem:[%s8389_s3 + $0x3b0] sm:$0xff] }
 0x275   :  { %4983 = vmatpush3.bf16.msra.mxu1 %v4982_v48  ;;  %v3521_v48 = vld [vmem:[%s8389_s3 + $0x2b8] sm:$0xff] }
 0x276   :  { %4984 = vmatprep.subr.bf16.mxu1 %v5514_v31  ;;  %v5033_v49 = vpack.c.bf16 %v3521_v48, %v3520_v47  ;;  %v3558_v48 = vld [vmem:[%s8389_s3 + $0x3c0] sm:$0xff] }
 0x279   :  { %4986 = vmatpush3.bf16.msra.mxu1 %v4985_v51  ;;  %v3523_v51 = vld [vmem:[%s8389_s3 + $0x2c8] sm:$0xff] }
 0x27a   :  { %4987 = vmatprep.subr.bf16.mxu1 %v5514_v31  ;;  %v5036_v52 = vpack.c.bf16 %v3523_v51, %v3522_v50  ;;  %v3560_v51 = vld [vmem:[%s8389_s3 + $0x3d0] sm:$0xff] }
 0x27d   :  { %4989 = vmatpush3.bf16.msra.mxu1 %v4988_v54  ;;  %v3525_v54 = vld [vmem:[%s8389_s3 + $0x2d8] sm:$0xff] }
 0x27e   :  { %4990 = vmatprep.subr.bf16.mxu1 %v5514_v31  ;;  %v5039_v55 = vpack.c.bf16 %v3525_v54, %v3524_v53  ;;  %v3531_v54 = vld [vmem:[%s8391_s4 + $0x5] ss:$0 sm:$0xff] }
 0x281   :  { %4992 = vmatpush3.bf16.msra.mxu1 %v4991_v57 }
 0x282   :  { %4993 = vmatprep.subr.bf16.mxu1 %v5514_v31 }
 0x285   :  { %4995 = vmatpush3.bf16.msra.mxu1 %v4994_v2  ;;  %v3529_v2 = vld [vmem:[%s8389_s3 + $0x2f8] sm:$0xff] }
 0x286   :  { %4996 = vmatprep.subr.bf16.mxu1 %v5514_v31  ;;  %v5045_v3 = vpack.c.bf16 %v3529_v2, %v3528_v1  ;;  %v3568_v2 = vld [vmem:[%s8389_s3 + $0x400] sm:$0xff] }
 0x289   :  { %4998 = vmatpush3.bf16.msra.mxu1 %v4997_v5  ;;  %v3533_v5 = vld [vmem:[%s8389_s3 + $0x308] sm:$0xff] }
 0x28a   :  { %5023 = vmatprep.subr.bf16.mxu1 %v5514_v31  ;;  %v5048_v7 = vpack.c.bf16 %v3533_v5, %v3532_v4  ;;  %v3570_v4 = vld [vmem:[%s8389_s3 + $0x410] sm:$0xff] }
 0x33f   :  { %v1262_v59 = vpop.f32.mrb[10].mxu1 }
 0x340   :  { %v1263_v60 = vadd.f32 %v3459_v58, %v1262_v59  ;;  %v4228_v61 = vpop.f32.mrb[11].mxu1 }
 0x342   :  { %v1266_v62 = vmul.f32 0.01, %v1263_v60 }
 0x344   :  { %v1267_v63 = vmax.f32 %v1263_v60, %v1266_v62  ;;  %v3526_v62 = vld [vmem:[%s8389_s3 + $0x2e0] sm:$0xff] }
 0x346   :  { %4262 = vmatmul.mubr.f32.vlgmr.msra.gmra.mrb[12].mxu0 %v1267_v63  ;;  %v3527_v63 = vld [vmem:[%s8389_s3 + $0x2e8] sm:$0xff] }
 0x347   :  { %4331 = vmatprep.mubr.msk.f32.mxu0 %vm5516_vm2, %v5515_v41  ;;  %5001 = vmatpush3.bf16.msra.mxu0 %v5000_v9  ;;  %v5042_v0 = vpack.c.bf16 %v3527_v63, %v3526_v62  ;;  %v5051_v9 = vpack.c.bf16 %v3535_v8, %v3534_v6  ;;  %v3564_v63 = vld [vmem:[%s8389_s3 + $0x3f0] sm:$0xff]  ;;  %v3571_v6 = vld [vmem:[%s8389_s3 + $0x418] sm:$0xff]  ;;  %v3572_v8 = vld [vmem:[%s8389_s3 + $0x420] sm:$0xff] }
 0x348   :  { %5002 = vmatprep.subr.bf16.mxu0 %v5514_v31 }
 0x34b   :  { %5004 = vmatpush3.bf16.msra.mxu0 %v5003_v11  ;;  %v3537_v11 = vld [vmem:[%s8389_s3 + $0x328] sm:$0xff] }
 0x34c   :  { %5005 = vmatprep.subr.bf16.mxu0 %v5514_v31  ;;  %v5054_v12 = vpack.c.bf16 %v3537_v11, %v3536_v10  ;;  %v3574_v11 = vld [vmem:[%s8389_s3 + $0x430] sm:$0xff] }
 0x34f   :  { %5007 = vmatpush3.bf16.msra.mxu0 %v5006_v14  ;;  %v3539_v14 = vld [vmem:[%s8389_s3 + $0x338] sm:$0xff] }
 0x350   :  { %5008 = vmatprep.subr.bf16.mxu0 %v5514_v31  ;;  %v5057_v15 = vpack.c.bf16 %v3539_v14, %v3538_v13  ;;  %v3576_v14 = vld [vmem:[%s8389_s3 + $0x440] sm:$0xff] }
 0x353   :  { %5010 = vmatpush3.bf16.msra.mxu0 %v5009_v17  ;;  %v3541_v17 = vld [vmem:[%s8389_s3 + $0x348] sm:$0xff] }
 0x354   :  { %5011 = vmatprep.subr.bf16.mxu0 %v5514_v31  ;;  %v5060_v18 = vpack.c.bf16 %v3541_v17, %v3540_v16  ;;  %v3578_v17 = vld [vmem:[%s8389_s3 + $0x450] sm:$0xff] }
 0x357   :  { %5013 = vmatpush3.bf16.msra.mxu0 %v5012_v20  ;;  %v3543_v20 = vld [vmem:[%s8389_s3 + $0x358] sm:$0xff] }
 0x358   :  { %5014 = vmatprep.subr.bf16.mxu0 %v5514_v31  ;;  %v5063_v21 = vpack.c.bf16 %v3543_v20, %v3542_v19  ;;  %v3549_v20 = vld [vmem:[%s8391_s4 + $0x6] ss:$0 sm:$0xff] }
 0x35b   :  { %5016 = vmatpush3.bf16.msra.mxu0 %v5015_v23 }
 0x35c   :  { %5017 = vmatprep.subr.bf16.mxu0 %v5514_v31 }
 0x35f   :  { %5019 = vmatpush3.bf16.msra.mxu0 %v5018_v33  ;;  %v3547_v33 = vld [vmem:[%s8389_s3 + $0x378] sm:$0xff] }
 0x360   :  { %5020 = vmatprep.subr.bf16.mxu0 %v5514_v31  ;;  %v5069_v34 = vpack.c.bf16 %v3547_v33, %v3546_v32  ;;  %v3586_v33 = vld [vmem:[%s8389_s3 + $0x480] sm:$0xff] }
 0x363   :  { %5022 = vmatpush3.bf16.msra.mxu0 %v5021_v36  ;;  %v3551_v36 = vld [vmem:[%s8389_s3 + $0x388] sm:$0xff] }
 0x364   :  { %5047 = vmatprep.subr.bf16.mxu0 %v5514_v31  ;;  %v5072_v38 = vpack.c.bf16 %v3551_v36, %v3550_v35  ;;  %v3588_v35 = vld [vmem:[%s8389_s3 + $0x490] sm:$0xff] }
 0x419   :  { %v1359_v25 = vpop.f32.mrb[12].mxu0 }
 0x41a   :  { %v1360_v26 = vadd.f32 %v3477_v24, %v1359_v25  ;;  %v4263_v27 = vpop.f32.mrb[13].mxu0 }
 0x41c   :  { %v1363_v28 = vmul.f32 0.01, %v1360_v26 }
 0x41e   :  { %v1364_v29 = vmax.f32 %v1360_v26, %v1363_v28  ;;  %v3544_v28 = vld [vmem:[%s8389_s3 + $0x360] sm:$0xff] }
 0x420   :  { %4297 = vmatmul.mubr.f32.vlgmr.msra.gmra.mrb[12].mxu1 %v1364_v29  ;;  %v3545_v29 = vld [vmem:[%s8389_s3 + $0x368] sm:$0xff] }
 0x421   :  { %4366 = vmatprep.mubr.msk.f32.mxu1 %vm5516_vm2, %v5515_v41  ;;  %5025 = vmatpush3.bf16.msra.mxu1 %v5024_v40  ;;  %v5066_v30 = vpack.c.bf16 %v3545_v29, %v3544_v28  ;;  %v5075_v40 = vpack.c.bf16 %v3553_v39, %v3552_v37  ;;  %v3582_v29 = vld [vmem:[%s8389_s3 + $0x470] sm:$0xff]  ;;  %v3589_v37 = vld [vmem:[%s8389_s3 + $0x498] sm:$0xff]  ;;  %v3590_v39 = vld [vmem:[%s8389_s3 + $0x4a0] sm:$0xff] }
 0x422   :  { %5026 = vmatprep.subr.bf16.mxu1 %v5514_v31 }
 0x425   :  { %5028 = vmatpush3.bf16.msra.mxu1 %v5027_v43  ;;  %v3555_v43 = vld [vmem:[%s8389_s3 + $0x3a8] sm:$0xff] }
 0x426   :  { %5029 = vmatprep.subr.bf16.mxu1 %v5514_v31  ;;  %v5078_v44 = vpack.c.bf16 %v3555_v43, %v3554_v42  ;;  %v3592_v43 = vld [vmem:[%s8389_s3 + $0x4b0] sm:$0xff] }
 0x429   :  { %5031 = vmatpush3.bf16.msra.mxu1 %v5030_v46  ;;  %v3557_v46 = vld [vmem:[%s8389_s3 + $0x3b8] sm:$0xff] }
 0x42a   :  { %5032 = vmatprep.subr.bf16.mxu1 %v5514_v31  ;;  %v5081_v47 = vpack.c.bf16 %v3557_v46, %v3556_v45  ;;  %v3594_v46 = vld [vmem:[%s8389_s3 + $0x4c0] sm:$0xff] }
 0x42d   :  { %5034 = vmatpush3.bf16.msra.mxu1 %v5033_v49  ;;  %v3559_v49 = vld [vmem:[%s8389_s3 + $0x3c8] sm:$0xff] }
 0x42e   :  { %5035 = vmatprep.subr.bf16.mxu1 %v5514_v31  ;;  %v5084_v50 = vpack.c.bf16 %v3559_v49, %v3558_v48  ;;  %v3596_v49 = vld [vmem:[%s8389_s3 + $0x4d0] sm:$0xff] }
 0x431   :  { %5037 = vmatpush3.bf16.msra.mxu1 %v5036_v52  ;;  %v3561_v52 = vld [vmem:[%s8389_s3 + $0x3d8] sm:$0xff] }
 0x432   :  { %5038 = vmatprep.subr.bf16.mxu1 %v5514_v31  ;;  %v5087_v53 = vpack.c.bf16 %v3561_v52, %v3560_v51  ;;  %v3567_v52 = vld [vmem:[%s8391_s4 + $0x7] ss:$0 sm:$0xff] }
 0x435   :  { %5040 = vmatpush3.bf16.msra.mxu1 %v5039_v55 }
 0x436   :  { %5041 = vmatprep.subr.bf16.mxu1 %v5514_v31 }
 0x439   :  { %5043 = vmatpush3.bf16.msra.mxu1 %v5042_v0  ;;  %v3565_v0 = vld [vmem:[%s8389_s3 + $0x3f8] sm:$0xff] }
 0x43a   :  { %5044 = vmatprep.subr.bf16.mxu1 %v5514_v31  ;;  %v5093_v1 = vpack.c.bf16 %v3565_v0, %v3564_v63  ;;  %v3604_v0 = vld [vmem:[%s8389_s3 + $0x500] sm:$0xff] }
 0x43d   :  { %5046 = vmatpush3.bf16.msra.mxu1 %v5045_v3  ;;  %v3569_v3 = vld [vmem:[%s8389_s3 + $0x408] sm:$0xff] }
 0x43e   :  { %5071 = vmatprep.subr.bf16.mxu1 %v5514_v31  ;;  %v5096_v5 = vpack.c.bf16 %v3569_v3, %v3568_v2  ;;  %v3606_v2 = vld [vmem:[%s8389_s3 + $0x510] sm:$0xff] }
 0x4f3   :  { %v1456_v57 = vpop.f32.mrb[12].mxu1 }
 0x4f4   :  { %v1457_v58 = vadd.f32 %v3495_v56, %v1456_v57  ;;  %v4298_v59 = vpop.f32.mrb[13].mxu1 }
 0x4f6   :  { %v1460_v60 = vmul.f32 0.01, %v1457_v58 }
 0x4f8   :  { %v1461_v61 = vmax.f32 %v1457_v58, %v1460_v60  ;;  %v3562_v60 = vld [vmem:[%s8389_s3 + $0x3e0] sm:$0xff] }
 0x4fa   :  { %4332 = vmatmul.mubr.f32.vlgmr.msra.gmra.mrb[14].mxu0 %v1461_v61  ;;  %v3563_v61 = vld [vmem:[%s8389_s3 + $0x3e8] sm:$0xff] }
 0x4fb   :  { %4401 = vmatprep.mubr.msk.f32.mxu0 %vm5516_vm2, %v5515_v41  ;;  %5049 = vmatpush3.bf16.msra.mxu0 %v5048_v7  ;;  %v5090_v62 = vpack.c.bf16 %v3563_v61, %v3562_v60  ;;  %v5099_v7 = vpack.c.bf16 %v3571_v6, %v3570_v4  ;;  %v3600_v61 = vld [vmem:[%s8389_s3 + $0x4f0] sm:$0xff]  ;;  %v3607_v4 = vld [vmem:[%s8389_s3 + $0x518] sm:$0xff]  ;;  %v3608_v6 = vld [vmem:[%s8389_s3 + $0x520] sm:$0xff] }
 0x4fc   :  { %5050 = vmatprep.subr.bf16.mxu0 %v5514_v31 }
 0x4ff   :  { %5052 = vmatpush3.bf16.msra.mxu0 %v5051_v9  ;;  %v3573_v9 = vld [vmem:[%s8389_s3 + $0x428] sm:$0xff] }
 0x500   :  { %5053 = vmatprep.subr.bf16.mxu0 %v5514_v31  ;;  %v5102_v10 = vpack.c.bf16 %v3573_v9, %v3572_v8  ;;  %v3610_v9 = vld [vmem:[%s8389_s3 + $0x530] sm:$0xff] }
 0x503   :  { %5055 = vmatpush3.bf16.msra.mxu0 %v5054_v12  ;;  %v3575_v12 = vld [vmem:[%s8389_s3 + $0x438] sm:$0xff] }
 0x504   :  { %5056 = vmatprep.subr.bf16.mxu0 %v5514_v31  ;;  %v5105_v13 = vpack.c.bf16 %v3575_v12, %v3574_v11  ;;  %v3612_v12 = vld [vmem:[%s8389_s3 + $0x540] sm:$0xff] }
 0x507   :  { %5058 = vmatpush3.bf16.msra.mxu0 %v5057_v15  ;;  %v3577_v15 = vld [vmem:[%s8389_s3 + $0x448] sm:$0xff] }
 0x508   :  { %5059 = vmatprep.subr.bf16.mxu0 %v5514_v31  ;;  %v5108_v16 = vpack.c.bf16 %v3577_v15, %v3576_v14  ;;  %v3614_v15 = vld [vmem:[%s8389_s3 + $0x550] sm:$0xff] }
 0x50b   :  { %5061 = vmatpush3.bf16.msra.mxu0 %v5060_v18  ;;  %v3579_v18 = vld [vmem:[%s8389_s3 + $0x458] sm:$0xff] }
 0x50c   :  { %5062 = vmatprep.subr.bf16.mxu0 %v5514_v31  ;;  %v5111_v19 = vpack.c.bf16 %v3579_v18, %v3578_v17  ;;  %v3585_v18 = vld [vmem:[%s8391_s4 + $0x8] ss:$0 sm:$0xff] }
 0x50f   :  { %5064 = vmatpush3.bf16.msra.mxu0 %v5063_v21 }
 0x510   :  { %5065 = vmatprep.subr.bf16.mxu0 %v5514_v31 }
 0x513   :  { %5067 = vmatpush3.bf16.msra.mxu0 %v5066_v30  ;;  %v3583_v30 = vld [vmem:[%s8389_s3 + $0x478] sm:$0xff] }
 0x514   :  { %5068 = vmatprep.subr.bf16.mxu0 %v5514_v31  ;;  %v5117_v32 = vpack.c.bf16 %v3583_v30, %v3582_v29  ;;  %v3622_v30 = vld [vmem:[%s8389_s3 + $0x580] sm:$0xff] }
 0x517   :  { %5070 = vmatpush3.bf16.msra.mxu0 %v5069_v34  ;;  %v3587_v34 = vld [vmem:[%s8389_s3 + $0x488] sm:$0xff] }
 0x518   :  { %5095 = vmatprep.subr.bf16.mxu0 %v5514_v31  ;;  %v5120_v36 = vpack.c.bf16 %v3587_v34, %v3586_v33  ;;  %v3624_v33 = vld [vmem:[%s8389_s3 + $0x590] sm:$0xff] }
 0x5cd   :  { %v1553_v23 = vpop.f32.mrb[14].mxu0 }
 0x5ce   :  { %v1554_v24 = vadd.f32 %v3513_v22, %v1553_v23  ;;  %v4333_v25 = vpop.f32.mrb[15].mxu0 }
 0x5d0   :  { %v1557_v26 = vmul.f32 0.01, %v1554_v24 }
 0x5d2   :  { %v1558_v27 = vmax.f32 %v1554_v24, %v1557_v26  ;;  %v3580_v26 = vld [vmem:[%s8389_s3 + $0x460] sm:$0xff] }
 0x5d4   :  { %4367 = vmatmul.mubr.f32.vlgmr.msra.gmra.mrb[14].mxu1 %v1558_v27  ;;  %v3581_v27 = vld [vmem:[%s8389_s3 + $0x468] sm:$0xff] }
 0x5d5   :  { %4436 = vmatprep.mubr.msk.f32.mxu1 %vm5516_vm2, %v5515_v41  ;;  %5073 = vmatpush3.bf16.msra.mxu1 %v5072_v38  ;;  %v5114_v28 = vpack.c.bf16 %v3581_v27, %v3580_v26  ;;  %v5123_v38 = vpack.c.bf16 %v3589_v37, %v3588_v35  ;;  %v3618_v27 = vld [vmem:[%s8389_s3 + $0x570] sm:$0xff]  ;;  %v3625_v35 = vld [vmem:[%s8389_s3 + $0x598] sm:$0xff]  ;;  %v3626_v37 = vld [vmem:[%s8389_s3 + $0x5a0] sm:$0xff] }
 0x5d6   :  { %5074 = vmatprep.subr.bf16.mxu1 %v5514_v31 }
 0x5d9   :  { %5076 = vmatpush3.bf16.msra.mxu1 %v5075_v40  ;;  %v3591_v40 = vld [vmem:[%s8389_s3 + $0x4a8] sm:$0xff] }
 0x5da   :  { %5077 = vmatprep.subr.bf16.mxu1 %v5514_v31  ;;  %v5126_v42 = vpack.c.bf16 %v3591_v40, %v3590_v39  ;;  %v3628_v40 = vld [vmem:[%s8389_s3 + $0x5b0] sm:$0xff] }
 0x5dd   :  { %5079 = vmatpush3.bf16.msra.mxu1 %v5078_v44  ;;  %v3593_v44 = vld [vmem:[%s8389_s3 + $0x4b8] sm:$0xff] }
 0x5de   :  { %5080 = vmatprep.subr.bf16.mxu1 %v5514_v31  ;;  %v5129_v45 = vpack.c.bf16 %v3593_v44, %v3592_v43  ;;  %v3630_v44 = vld [vmem:[%s8389_s3 + $0x5c0] sm:$0xff] }
 0x5e1   :  { %5082 = vmatpush3.bf16.msra.mxu1 %v5081_v47  ;;  %v3595_v47 = vld [vmem:[%s8389_s3 + $0x4c8] sm:$0xff] }
 0x5e2   :  { %5083 = vmatprep.subr.bf16.mxu1 %v5514_v31  ;;  %v5132_v48 = vpack.c.bf16 %v3595_v47, %v3594_v46  ;;  %v3632_v47 = vld [vmem:[%s8389_s3 + $0x5d0] sm:$0xff] }
 0x5e5   :  { %5085 = vmatpush3.bf16.msra.mxu1 %v5084_v50  ;;  %v3597_v50 = vld [vmem:[%s8389_s3 + $0x4d8] sm:$0xff] }
 0x5e6   :  { %5086 = vmatprep.subr.bf16.mxu1 %v5514_v31  ;;  %v5135_v51 = vpack.c.bf16 %v3597_v50, %v3596_v49  ;;  %v3603_v50 = vld [vmem:[%s8391_s4 + $0x9] ss:$0 sm:$0xff] }
 0x5e9   :  { %5088 = vmatpush3.bf16.msra.mxu1 %v5087_v53 }
 0x5ea   :  { %5089 = vmatprep.subr.bf16.mxu1 %v5514_v31 }
 0x5ed   :  { %5091 = vmatpush3.bf16.msra.mxu1 %v5090_v62  ;;  %v3601_v62 = vld [vmem:[%s8389_s3 + $0x4f8] sm:$0xff] }
 0x5ee   :  { %5092 = vmatprep.subr.bf16.mxu1 %v5514_v31  ;;  %v5141_v63 = vpack.c.bf16 %v3601_v62, %v3600_v61  ;;  %v2239_v62 = vld [vmem:[%s8392_s5 + $0x8] sm:$0xff] }
 0x5f1   :  { %5094 = vmatpush3.bf16.msra.mxu1 %v5093_v1  ;;  %v3605_v1 = vld [vmem:[%s8389_s3 + $0x508] sm:$0xff] }
 0x5f2   :  { %5119 = vmatprep.subr.bf16.mxu1 %v5514_v31  ;;  %v5144_v3 = vpack.c.bf16 %v3605_v1, %v3604_v0  ;;  %v2261_v1 = vld [vmem:[%s8392_s5 + $0xb8] sm:$0xff] }
 0x6a7   :  { %v1650_v55 = vpop.f32.mrb[14].mxu1 }
 0x6a8   :  { %v1651_v56 = vadd.f32 %v3531_v54, %v1650_v55  ;;  %v4368_v57 = vpop.f32.mrb[15].mxu1 }
 0x6aa   :  { %v1654_v58 = vmul.f32 0.01, %v1651_v56 }
 0x6ac   :  { %v1655_v59 = vmax.f32 %v1651_v56, %v1654_v58  ;;  %v3598_v58 = vld [vmem:[%s8389_s3 + $0x4e0] sm:$0xff] }
 0x6ae   :  { %4402 = vmatmul.mubr.f32.vlgmr.msra.gmra.mrb[16].mxu0 %v1655_v59  ;;  %v3599_v59 = vld [vmem:[%s8389_s3 + $0x4e8] sm:$0xff] }
 0x6af   :  { %4471 = vmatprep.mubr.msk.f32.mxu0 %vm5516_vm2, %v5515_v41  ;;  %5097 = vmatpush3.bf16.msra.mxu0 %v5096_v5  ;;  %v5138_v60 = vpack.c.bf16 %v3599_v59, %v3598_v58  ;;  %v5147_v5 = vpack.c.bf16 %v3607_v4, %v3606_v2  ;;  %v3636_v59 = vld [vmem:[%s8389_s3 + $0x5f0] sm:$0xff]  ;;  %v2238_v2 = vld [vmem:[%s8392_s5] sm:$0xff] }
 0x6b0   :  { %5098 = vmatprep.subr.bf16.mxu0 %v5514_v31 }
 0x6b3   :  { %5100 = vmatpush3.bf16.msra.mxu0 %v5099_v7  ;;  %v3609_v7 = vld [vmem:[%s8389_s3 + $0x528] sm:$0xff] }
 0x6b4   :  { %5101 = vmatprep.subr.bf16.mxu0 %v5514_v31  ;;  %v5150_v8 = vpack.c.bf16 %v3609_v7, %v3608_v6  ;;  %v2279_v6 = vld [vmem:[%s8392_s5 + $0x148] sm:$0xff] }
 0x6b5   :  { %v2299_v7 = vld [vmem:[%s8392_s5 + $0x1e8] sm:$0xff] }
 0x6b7   :  { %5103 = vmatpush3.bf16.msra.mxu0 %v5102_v10  ;;  %v3611_v10 = vld [vmem:[%s8389_s3 + $0x538] sm:$0xff] }
 0x6b8   :  { %5104 = vmatprep.subr.bf16.mxu0 %v5514_v31  ;;  %v5153_v11 = vpack.c.bf16 %v3611_v10, %v3610_v9  ;;  %v2278_v9 = vld [vmem:[%s8392_s5 + $0x140] sm:$0xff] }
 0x6b9   :  { %v2298_v10 = vld [vmem:[%s8392_s5 + $0x1e0] sm:$0xff] }
 0x6bb   :  { %5106 = vmatpush3.bf16.msra.mxu0 %v5105_v13  ;;  %v3613_v13 = vld [vmem:[%s8389_s3 + $0x548] sm:$0xff] }
 0x6bc   :  { %5107 = vmatprep.subr.bf16.mxu0 %v5514_v31  ;;  %v5156_v14 = vpack.c.bf16 %v3613_v13, %v3612_v12  ;;  %v2319_v12 = vld [vmem:[%s8392_s5 + $0x288] sm:$0xff] }
 0x6bd   :  { %v2339_v13 = vld [vmem:[%s8392_s5 + $0x328] sm:$0xff] }
 0x6bf   :  { %5109 = vmatpush3.bf16.msra.mxu0 %v5108_v16  ;;  %v3615_v16 = vld [vmem:[%s8389_s3 + $0x558] sm:$0xff] }
 0x6c0   :  { %5110 = vmatprep.subr.bf16.mxu0 %v5514_v31  ;;  %v5159_v17 = vpack.c.bf16 %v3615_v16, %v3614_v15  ;;  %v2318_v15 = vld [vmem:[%s8392_s5 + $0x280] sm:$0xff] }
 0x6c1   :  { %v2338_v16 = vld [vmem:[%s8392_s5 + $0x320] sm:$0xff] }
 0x6c3   :  { %5112 = vmatpush3.bf16.msra.mxu0 %v5111_v19 }
 0x6c4   :  { %5113 = vmatprep.subr.bf16.mxu0 %v5514_v31 }
 0x6c7   :  { %5115 = vmatpush3.bf16.msra.mxu0 %v5114_v28  ;;  %v3619_v28 = vld [vmem:[%s8389_s3 + $0x578] sm:$0xff] }
 0x6c8   :  { %5116 = vmatprep.subr.bf16.mxu0 %v5514_v31  ;;  %v5165_v29 = vpack.c.bf16 %v3619_v28, %v3618_v27  ;;  %v2398_v27 = vld [vmem:[%s8392_s5 + $0x500] sm:$0xff] }
 0x6c9   :  { %v2418_v28 = vld [vmem:[%s8392_s5 + $0x5a0] sm:$0xff] }
 0x6cb   :  { %5118 = vmatpush3.bf16.msra.mxu0 %v5117_v32  ;;  %v3623_v32 = vld [vmem:[%s8389_s3 + $0x588] sm:$0xff] }
 0x6cc   :  { %5143 = vmatprep.subr.bf16.mxu0 %v5514_v31  ;;  %v5168_v34 = vpack.c.bf16 %v3623_v32, %v3622_v30  ;;  %v2439_v30 = vld [vmem:[%s8392_s5 + $0x648] sm:$0xff] }
 0x6cd   :  { %v2459_v32 = vld [vmem:[%s8392_s5 + $0x6e8] sm:$0xff] }
 0x781   :  { %v1747_v21 = vpop.f32.mrb[16].mxu0 }
 0x782   :  { %v1748_v22 = vadd.f32 %v3549_v20, %v1747_v21  ;;  %v4403_v23 = vpop.f32.mrb[17].mxu0 }
 0x784   :  { %v1751_v24 = vmul.f32 0.01, %v1748_v22 }
 0x786   :  { %v1752_v25 = vmax.f32 %v1748_v22, %v1751_v24  ;;  %v3616_v24 = vld [vmem:[%s8389_s3 + $0x560] sm:$0xff] }
 0x788   :  { %4437 = vmatmul.mubr.f32.vlgmr.msra.gmra.mrb[16].mxu1 %v1752_v25  ;;  %v3617_v25 = vld [vmem:[%s8389_s3 + $0x568] sm:$0xff] }
 0x789   :  { %4506 = vmatprep.mubr.msk.f32.mxu1 %vm5516_vm2, %v5515_v41  ;;  %5121 = vmatpush3.bf16.msra.mxu1 %v5120_v36  ;;  %v5162_v26 = vpack.c.bf16 %v3617_v25, %v3616_v24  ;;  %v5171_v36 = vpack.c.bf16 %v3625_v35, %v3624_v33  ;;  %v2399_v24 = vld [vmem:[%s8392_s5 + $0x508] sm:$0xff]  ;;  %v5211_v33 = vpack.c.bf16 %v2459_v32, %v2439_v30  ;;  %v2458_v35 = vld [vmem:[%s8392_s5 + $0x6e0] sm:$0xff] }
 0x78a   :  { %5122 = vmatprep.subr.bf16.mxu1 %v5514_v31  ;;  %v2419_v25 = vld [vmem:[%s8392_s5 + $0x5a8] sm:$0xff]  ;;  %v2538_v30 = vld [vmem:[%s8392_s5 + $0x960] sm:$0xff] }
 0x78d   :  { %5124 = vmatpush3.bf16.msra.mxu1 %v5123_v38  ;;  %v3627_v38 = vld [vmem:[%s8389_s3 + $0x5a8] sm:$0xff] }
 0x78e   :  { %5125 = vmatprep.subr.bf16.mxu1 %v5514_v31  ;;  %v5174_v39 = vpack.c.bf16 %v3627_v38, %v3626_v37  ;;  %v2479_v37 = vld [vmem:[%s8392_s5 + $0x788] sm:$0xff] }
 0x78f   :  { %v2499_v38 = vld [vmem:[%s8392_s5 + $0x828] sm:$0xff] }
 0x791   :  { %5127 = vmatpush3.bf16.msra.mxu1 %v5126_v42  ;;  %v3629_v42 = vld [vmem:[%s8389_s3 + $0x5b8] sm:$0xff] }
 0x792   :  { %5128 = vmatprep.subr.bf16.mxu1 %v5514_v31  ;;  %v5177_v43 = vpack.c.bf16 %v3629_v42, %v3628_v40  ;;  %v2478_v40 = vld [vmem:[%s8392_s5 + $0x780] sm:$0xff] }
 0x793   :  { %v2498_v42 = vld [vmem:[%s8392_s5 + $0x820] sm:$0xff] }
 0x795   :  { %5130 = vmatpush3.bf16.msra.mxu1 %v5129_v45  ;;  %v3631_v45 = vld [vmem:[%s8389_s3 + $0x5c8] sm:$0xff] }
 0x796   :  { %5131 = vmatprep.subr.bf16.mxu1 %v5514_v31  ;;  %v5180_v46 = vpack.c.bf16 %v3631_v45, %v3630_v44  ;;  %v3621_v44 = vld [vmem:[%s8391_s4 + $0xa] ss:$0 sm:$0xff] }
 0x799   :  { %5133 = vmatpush3.bf16.msra.mxu1 %v5132_v48  ;;  %v3633_v48 = vld [vmem:[%s8389_s3 + $0x5d8] sm:$0xff] }
 0x79a   :  { %5134 = vmatprep.subr.bf16.mxu1 %v5514_v31  ;;  %v5183_v49 = vpack.c.bf16 %v3633_v48, %v3632_v47  ;;  %v2240_v48 = vld [vmem:[%s8392_s5 + $0x10] sm:$0xff] }
 0x79d   :  { %5136 = vmatpush3.bf16.msra.mxu1 %v5135_v51 }
 0x79e   :  { %5137 = vmatprep.subr.bf16.mxu1 %v5514_v31 }
 0x7a1   :  { %5139 = vmatpush3.bf16.msra.mxu1 %v5138_v60  ;;  %v3637_v60 = vld [vmem:[%s8389_s3 + $0x5f8] sm:$0xff] }
 0x7a2   :  { %5140 = vmatprep.subr.bf16.mxu1 %v5514_v31  ;;  %v5189_v61 = vpack.c.bf16 %v3637_v60, %v3636_v59  ;;  %v2341_v59 = vld [vmem:[%s8392_s5 + $0x338] sm:$0xff] }
 0x7a5   :  { %5142 = vmatpush3.bf16.msra.mxu1 %v5141_v63  ;;  %v2259_v63 = vld [vmem:[%s8392_s5 + $0xa8] sm:$0xff] }
 0x7a6   :  { %5167 = vmatprep.subr.bf16.mxu1 %v5514_v31  ;;  %v5191_v0 = vpack.c.bf16 %v2259_v63, %v2239_v62  ;;  %v2320_v62 = vld [vmem:[%s8392_s5 + $0x290] sm:$0xff] }
 0x7a7   :  { %v2340_v63 = vld [vmem:[%s8392_s5 + $0x330] sm:$0xff] }
 0x85b   :  { %v1844_v53 = vpop.f32.mrb[16].mxu1 }
 0x85c   :  { %v1845_v54 = vadd.f32 %v3567_v52, %v1844_v53  ;;  %v4438_v55 = vpop.f32.mrb[17].mxu1 }
 0x85e   :  { %v1848_v56 = vmul.f32 0.01, %v1845_v54 }
 0x860   :  { %v1849_v57 = vmax.f32 %v1845_v54, %v1848_v56  ;;  %v3634_v56 = vld [vmem:[%s8389_s3 + $0x5e0] sm:$0xff] }
 0x862   :  { %4472 = vmatmul.mubr.f32.vlgmr.msra.gmra.mrb[18].mxu0 %v1849_v57  ;;  %v3635_v57 = vld [vmem:[%s8389_s3 + $0x5e8] sm:$0xff] }
 0x863   :  { %4541 = vmatprep.mubr.msk.f32.mxu0 %vm5516_vm2, %v5515_v41  ;;  %5145 = vmatpush3.bf16.msra.mxu0 %v5144_v3  ;;  %v5186_v58 = vpack.c.bf16 %v3635_v57, %v3634_v56  ;;  %v2258_v3 = vld [vmem:[%s8392_s5 + $0xa0] sm:$0xff]  ;;  %v2280_v56 = vld [vmem:[%s8392_s5 + $0x150] sm:$0xff] }
 0x864   :  { %5146 = vmatprep.subr.bf16.mxu0 %v5514_v31  ;;  %v2300_v57 = vld [vmem:[%s8392_s5 + $0x1f0] sm:$0xff] }
 0x865   :  { %v5229_v60 = vpack.c.bf16 %v2300_v57, %v2280_v56 }
 0x867   :  { %5148 = vmatpush3.bf16.msra.mxu0 %v5147_v5  ;;  %v5193_v5 = vpack.c.bf16 %v2258_v3, %v2238_v2  ;;  %v2360_v3 = vld [vmem:[%s8392_s5 + $0x3d0] sm:$0xff] }
 0x868   :  { %5149 = vmatprep.subr.bf16.mxu0 %v5514_v31 }
 0x86b   :  { %5151 = vmatpush3.bf16.msra.mxu0 %v5150_v8  ;;  %v5195_v8 = vpack.c.bf16 %v2299_v7, %v2279_v6  ;;  %v2421_v6 = vld [vmem:[%s8392_s5 + $0x5b8] sm:$0xff] }
 0x86c   :  { %5152 = vmatprep.subr.bf16.mxu0 %v5514_v31 }
 0x86f   :  { %5154 = vmatpush3.bf16.msra.mxu0 %v5153_v11  ;;  %v5197_v11 = vpack.c.bf16 %v2298_v10, %v2278_v9  ;;  %v2400_v9 = vld [vmem:[%s8392_s5 + $0x510] sm:$0xff] }
 0x870   :  { %5155 = vmatprep.subr.bf16.mxu0 %v5514_v31  ;;  %v2420_v10 = vld [vmem:[%s8392_s5 + $0x5b0] sm:$0xff] }
 0x873   :  { %5157 = vmatpush3.bf16.msra.mxu0 %v5156_v14  ;;  %v5199_v14 = vpack.c.bf16 %v2339_v13, %v2319_v12  ;;  %v2461_v12 = vld [vmem:[%s8392_s5 + $0x6f8] sm:$0xff]  ;;  %v5241_v13 = vpack.c.bf16 %v2420_v10, %v2400_v9 }
 0x874   :  { %5158 = vmatprep.subr.bf16.mxu0 %v5514_v31 }
 0x877   :  { %5160 = vmatpush3.bf16.msra.mxu0 %v5159_v17  ;;  %v5201_v17 = vpack.c.bf16 %v2338_v16, %v2318_v15  ;;  %v2440_v15 = vld [vmem:[%s8392_s5 + $0x650] sm:$0xff] }
 0x878   :  { %5161 = vmatprep.subr.bf16.mxu0 %v5514_v31  ;;  %v2460_v16 = vld [vmem:[%s8392_s5 + $0x6f0] sm:$0xff] }
 0x87b   :  { %5163 = vmatpush3.bf16.msra.mxu0 %v5162_v26  ;;  %v5207_v26 = vpack.c.bf16 %v2419_v25, %v2399_v24  ;;  %v2519_v24 = vld [vmem:[%s8392_s5 + $0x8c8] sm:$0xff] }
 0x87c   :  { %5164 = vmatprep.subr.bf16.mxu0 %v5514_v31  ;;  %v2539_v25 = vld [vmem:[%s8392_s5 + $0x968] sm:$0xff] }
 0x87f   :  { %5166 = vmatpush3.bf16.msra.mxu0 %v5165_v29  ;;  %v5209_v29 = vpack.c.bf16 %v2418_v28, %v2398_v27  ;;  %v5219_v27 = vpack.c.bf16 %v2539_v25, %v2519_v24  ;;  %v2541_v28 = vld [vmem:[%s8392_s5 + $0x978] sm:$0xff]  ;;  %v2384_v24 = vld [vmem:[%s8392_s5 + $0x490] sm:$0xff]  ;;  %v2403_v25 = vld [vmem:[%s8392_s5 + $0x528] sm:$0xff] }
 0x880   :  { %5192 = vmatprep.subr.bf16.mxu0 %v5191_v0  ;;  %v2381_v0 = vld [vmem:[%s8392_s5 + $0x478] sm:$0xff] }
 0x935   :  { %v1941_v19 = vpop.f32.mrb[18].mxu0 }
 0x936   :  { %v1942_v20 = vadd.f32 %v3585_v18, %v1941_v19  ;;  %v4473_v21 = vpop.f32.mrb[19].mxu0  ;;  %v2359_v18 = vld [vmem:[%s8392_s5 + $0x3c8] sm:$0xff] }
 0x937   :  { %v2379_v19 = vld [vmem:[%s8392_s5 + $0x468] sm:$0xff]  ;;  %v2358_v21 = vld [vmem:[%s8392_s5 + $0x3c0] sm:$0xff] }
 0x938   :  { %v1945_v22 = vmul.f32 0.01, %v1942_v20 }
 0x93a   :  { %v1946_v23 = vmax.f32 %v1942_v20, %v1945_v22  ;;  %v5203_v20 = vpack.c.bf16 %v2379_v19, %v2359_v18  ;;  %v2378_v22 = vld [vmem:[%s8392_s5 + $0x460] sm:$0xff]  ;;  %v2501_v18 = vld [vmem:[%s8392_s5 + $0x838] sm:$0xff]  ;;  %v5245_v19 = vpack.c.bf16 %v2460_v16, %v2440_v15 }
 0x93b   :  { %v2365_v15 = vld [vmem:[%s8392_s5 + $0x3f8] sm:$0xff] }
 0x93c   :  { %4507 = vmatmul.mubr.f32.vlgmr.msra.gmra.mrb[18].mxu1 %v1946_v23  ;;  %v5205_v23 = vpack.c.bf16 %v2378_v22, %v2358_v21  ;;  %v2480_v21 = vld [vmem:[%s8392_s5 + $0x790] sm:$0xff]  ;;  %v2385_v16 = vld [vmem:[%s8392_s5 + $0x498] sm:$0xff] }
 0x93d   :  { %4576 = vmatprep.mubr.msk.f32.mxu1 %vm5516_vm2, %v5515_v41  ;;  %5169 = vmatpush3.bf16.msra.mxu1 %v5168_v34  ;;  %v2438_v34 = vld [vmem:[%s8392_s5 + $0x640] sm:$0xff]  ;;  %v2500_v22 = vld [vmem:[%s8392_s5 + $0x830] sm:$0xff] }
 0x93e   :  { %5170 = vmatprep.subr.bf16.mxu1 %v5514_v31 }
 0x941   :  { %5172 = vmatpush3.bf16.msra.mxu1 %v5171_v36  ;;  %v5213_v36 = vpack.c.bf16 %v2458_v35, %v2438_v34  ;;  %v2520_v34 = vld [vmem:[%s8392_s5 + $0x8d0] sm:$0xff] }
 0x942   :  { %5173 = vmatprep.subr.bf16.mxu1 %v5514_v31  ;;  %v2540_v35 = vld [vmem:[%s8392_s5 + $0x970] sm:$0xff] }
 0x945   :  { %5175 = vmatpush3.bf16.msra.mxu1 %v5174_v39  ;;  %v5215_v39 = vpack.c.bf16 %v2499_v38, %v2479_v37  ;;  %v2243_v37 = vld [vmem:[%s8392_s5 + $0x28] sm:$0xff] }
 0x946   :  { %5176 = vmatprep.subr.bf16.mxu1 %v5514_v31  ;;  %v2263_v38 = vld [vmem:[%s8392_s5 + $0xc8] sm:$0xff] }
 0x949   :  { %5178 = vmatpush3.bf16.msra.mxu1 %v5177_v43  ;;  %v5217_v43 = vpack.c.bf16 %v2498_v42, %v2478_v40  ;;  %v5255_v40 = vpack.c.bf16 %v2263_v38, %v2243_v37  ;;  %v2265_v42 = vld [vmem:[%s8392_s5 + $0xd8] sm:$0xff]  ;;  %v2424_v37 = vld [vmem:[%s8392_s5 + $0x5d0] sm:$0xff]  ;;  %v2443_v38 = vld [vmem:[%s8392_s5 + $0x668] sm:$0xff] }
 0x94a   :  { %5179 = vmatprep.subr.bf16.mxu1 %v5514_v31 }
 0x94d   :  { %5181 = vmatpush3.bf16.msra.mxu1 %v5180_v46 }
 0x94e   :  { %5182 = vmatprep.subr.bf16.mxu1 %v5514_v31 }
 0x951   :  { %5184 = vmatpush3.bf16.msra.mxu1 %v5183_v49  ;;  %v2260_v49 = vld [vmem:[%s8392_s5 + $0xb0] sm:$0xff] }
 0x952   :  { %5185 = vmatprep.subr.bf16.mxu1 %v5514_v31 }
 0x955   :  { %5187 = vmatpush3.bf16.msra.mxu1 %v5186_v58  ;;  %v2321_v58 = vld [vmem:[%s8392_s5 + $0x298] sm:$0xff] }
 0x956   :  { %5188 = vmatprep.subr.bf16.mxu1 %v5514_v31  ;;  %v2241_v31 = vld [vmem:[%s8392_s5 + $0x18] sm:$0xff] }
 0x957   :  { %v5223_v4 = vpack.c.bf16 %v2261_v1, %v2241_v31  ;;  %v2361_v31 = vld [vmem:[%s8392_s5 + $0x3d8] sm:$0xff]  ;;  %v5233_v1 = vpack.c.bf16 %v2340_v63, %v2320_v62 }
 0x958   :  { %v5235_v2 = vpack.c.bf16 %v2381_v0, %v2361_v31  ;;  %v2284_v31 = vld [vmem:[%s8392_s5 + $0x170] sm:$0xff] }
 0x959   :  { %5190 = vmatpush3.bf16.msra.mxu1 %v5189_v61  ;;  %v5231_v61 = vpack.c.bf16 %v2341_v59, %v2321_v58  ;;  %v2282_v59 = vld [vmem:[%s8392_s5 + $0x160] sm:$0xff]  ;;  %v2304_v0 = vld [vmem:[%s8392_s5 + $0x210] sm:$0xff] }
 0x95a   :  { %5224 = vmatprep.subr.bf16.mxu1 %v5223_v4  ;;  %v2380_v4 = vld [vmem:[%s8392_s5 + $0x470] sm:$0xff] }
 0x95b   :  { %v5237_v7 = vpack.c.bf16 %v2380_v4, %v2360_v3  ;;  %v2325_v3 = vld [vmem:[%s8392_s5 + $0x2b8] sm:$0xff] }
 0x95c   :  { %v2345_v4 = vld [vmem:[%s8392_s5 + $0x358] sm:$0xff] }
 0x95d   :  { %v5295_v10 = vpack.c.bf16 %v2345_v4, %v2325_v3 }
 0xa0f   :  { %v2038_v51 = vpop.f32.mrb[18].mxu1 }
 0xa10   :  { %v2039_v52 = vadd.f32 %v3603_v50, %v2038_v51  ;;  %v4508_v53 = vpop.f32.mrb[19].mxu1  ;;  %v2281_v50 = vld [vmem:[%s8392_s5 + $0x158] sm:$0xff] }
 0xa11   :  { %v2301_v51 = vld [vmem:[%s8392_s5 + $0x1f8] sm:$0xff]  ;;  %v5225_v53 = vpack.c.bf16 %v2260_v49, %v2240_v48 }
 0xa12   :  { %v2042_v54 = vmul.f32 0.01, %v2039_v52 }
 0xa14   :  { %v2043_v55 = vmax.f32 %v2039_v52, %v2042_v54 }
 0xa16   :  { %4542 = vmatmul.mubr.f32.vlgmr.msra.gmra.mrb[20].mxu0 %v2043_v55  ;;  %v5227_v55 = vpack.c.bf16 %v2301_v51, %v2281_v50  ;;  %v2244_v50 = vld [vmem:[%s8392_s5 + $0x30] sm:$0xff] }
 0xa17   :  { %2728 = vmatprep.mubr.f32.mxu0 %v5515_v41  ;;  %5194 = vmatpush1.bf16.msra.mxu0 %v5193_v5  ;;  %v2401_v5 = vld [vmem:[%s8392_s5 + $0x518] sm:$0xff]  ;;  %v2264_v51 = vld [vmem:[%s8392_s5 + $0xd0] sm:$0xff] }
 0xa18   :  { %5196 = vmatprep.subr.bf16.mxu0 %v5195_v8  ;;  %v5239_v8 = vpack.c.bf16 %v2421_v6, %v2401_v5  ;;  %v5289_v58 = vpack.c.bf16 %v2264_v51, %v2244_v50  ;;  %v5293_v6 = vpack.c.bf16 %v2304_v0, %v2284_v31  ;;  %v2464_v50 = vld [vmem:[%s8392_s5 + $0x710] sm:$0xff]  ;;  %v2483_v51 = vld [vmem:[%s8392_s5 + $0x7a8] sm:$0xff] }
 0xa19   :  { %v2523_v31 = vld [vmem:[%s8392_s5 + $0x8e8] sm:$0xff] }
 0xa1a   :  { %v2543_v0 = vld [vmem:[%s8392_s5 + $0x988] sm:$0xff] }
 0xa1b   :  { %5198 = vmatpush1.bf16.msra.mxu0 %v5197_v11  ;;  %v2441_v11 = vld [vmem:[%s8392_s5 + $0x658] sm:$0xff] }
 0xa1c   :  { %5200 = vmatprep.subr.bf16.mxu0 %v5199_v14  ;;  %v5243_v14 = vpack.c.bf16 %v2461_v12, %v2441_v11  ;;  %v2324_v11 = vld [vmem:[%s8392_s5 + $0x2b0] sm:$0xff] }
 0xa1d   :  { %v2344_v12 = vld [vmem:[%s8392_s5 + $0x350] sm:$0xff] }
 0xa1f   :  { %5202 = vmatpush1.bf16.msra.mxu0 %v5201_v17  ;;  %v2481_v17 = vld [vmem:[%s8392_s5 + $0x798] sm:$0xff] }
 0xa20   :  { %5204 = vmatprep.subr.bf16.mxu0 %v5203_v20  ;;  %v5247_v20 = vpack.c.bf16 %v2501_v18, %v2481_v17  ;;  %v5297_v18 = vpack.c.bf16 %v2344_v12, %v2324_v11  ;;  %v2247_v11 = vld [vmem:[%s8392_s5 + $0x48] sm:$0xff] }
 0xa21   :  { %v2267_v12 = vld [vmem:[%s8392_s5 + $0xe8] sm:$0xff] }
 0xa23   :  { %5206 = vmatpush1.bf16.msra.mxu0 %v5205_v23  ;;  %v5249_v23 = vpack.c.bf16 %v2500_v22, %v2480_v21  ;;  %v5299_v22 = vpack.c.bf16 %v2385_v16, %v2365_v15 }
 0xa24   :  { %5208 = vmatprep.subr.bf16.mxu0 %v5207_v26  ;;  %v2521_v26 = vld [vmem:[%s8392_s5 + $0x8d8] sm:$0xff] }
 0xa25   :  { %v5251_v32 = vpack.c.bf16 %v2541_v28, %v2521_v26  ;;  %v2423_v26 = vld [vmem:[%s8392_s5 + $0x5c8] sm:$0xff]  ;;  %v2425_v28 = vld [vmem:[%s8392_s5 + $0x5d8] sm:$0xff] }
 0xa27   :  { %5210 = vmatpush1.bf16.msra.mxu0 %v5209_v29  ;;  %v2518_v29 = vld [vmem:[%s8392_s5 + $0x8c0] sm:$0xff] }
 0xa28   :  { %5212 = vmatprep.subr.bf16.mxu0 %v5211_v33  ;;  %v5221_v33 = vpack.c.bf16 %v2538_v30, %v2518_v29 }
 0xa2b   :  { %5214 = vmatpush1.bf16.msra.mxu0 %v5213_v36  ;;  %v5253_v36 = vpack.c.bf16 %v2540_v35, %v2520_v34  ;;  %v5271_v34 = vpack.c.bf16 %v2423_v26, %v2403_v25  ;;  %v2289_v25 = vld [vmem:[%s8392_s5 + $0x198] sm:$0xff] }
 0xa2c   :  { %5216 = vmatprep.subr.bf16.mxu0 %v5215_v39  ;;  %v2245_v39 = vld [vmem:[%s8392_s5 + $0x38] sm:$0xff] }
 0xa2d   :  { %v2309_v26 = vld [vmem:[%s8392_s5 + $0x238] sm:$0xff] }
 0xa2f   :  { %5218 = vmatpush1.bf16.msra.mxu0 %v5217_v43  ;;  %v5287_v43 = vpack.c.bf16 %v2265_v42, %v2245_v39  ;;  %v2463_v39 = vld [vmem:[%s8392_s5 + $0x708] sm:$0xff]  ;;  %v2465_v42 = vld [vmem:[%s8392_s5 + $0x718] sm:$0xff] }
 0xa30   :  { %5220 = vmatprep.subr.bf16.mxu0 %v5219_v27  ;;  %v2405_v27 = vld [vmem:[%s8392_s5 + $0x538] sm:$0xff] }
 0xa31   :  { %v5303_v35 = vpack.c.bf16 %v2425_v28, %v2405_v27 }
 0xa33   :  { %5222 = vmatpush1.bf16.msra.mxu0 %v5221_v33  ;;  %v2422_v33 = vld [vmem:[%s8392_s5 + $0x5c0] sm:$0xff] }
 0xa34   :  { %5256 = vmatprep.subr.bf16.mxu0 %v5255_v40  ;;  %v2445_v40 = vld [vmem:[%s8392_s5 + $0x678] sm:$0xff] }
 0xae9   :  { %v2135_v45 = vpop.f32.mrb[20].mxu0 }
 0xaea   :  { %v2136_v46 = vadd.f32 %v3621_v44, %v2135_v45  ;;  %v4543_v47 = vpop.f32.mrb[21].mxu0  ;;  %v3639_v44 = vld [vmem:[%s8391_s4 + $0xb] ss:$0 sm:$0xff] }
 0xaeb   :  { %v2262_v47 = vld [vmem:[%s8392_s5 + $0xc0] sm:$0xff] }
 0xaec   :  { %v2139_v52 = vmul.f32 0.01, %v2136_v46 }
 0xaee   :  { %v2140_v54 = vmax.f32 %v2136_v46, %v2139_v52  ;;  %v2242_v46 = vld [vmem:[%s8392_s5 + $0x20] sm:$0xff]  ;;  %v2283_v52 = vld [vmem:[%s8392_s5 + $0x168] sm:$0xff] }
 0xaef   :  { %v5257_v57 = vpack.c.bf16 %v2262_v47, %v2242_v46  ;;  %v2462_v46 = vld [vmem:[%s8392_s5 + $0x700] sm:$0xff]  ;;  %v5275_v47 = vpack.c.bf16 %v2463_v39, %v2443_v38  ;;  %v2329_v38 = vld [vmem:[%s8392_s5 + $0x2d8] sm:$0xff] }
 0xaf0   :  { %4577 = vmatmul.mubr.f32.vlgmr.msra.gmra.mrb[20].mxu1 %v2140_v54  ;;  %v2285_v54 = vld [vmem:[%s8392_s5 + $0x178] sm:$0xff] }
 0xaf1   :  { %5226 = vmatpush1.bf16.msra.mxu1 %v5225_v53  ;;  %2799 = vmatprep.mubr.f32.mxu1 %v5515_v41  ;;  %v2303_v53 = vld [vmem:[%s8392_s5 + $0x208] sm:$0xff]  ;;  %v2349_v39 = vld [vmem:[%s8392_s5 + $0x378] sm:$0xff] }
 0xaf2   :  { %5228 = vmatprep.subr.bf16.mxu1 %v5227_v55  ;;  %v2305_v55 = vld [vmem:[%s8392_s5 + $0x218] sm:$0xff]  ;;  %v5259_v62 = vpack.c.bf16 %v2303_v53, %v2283_v52  ;;  %v2503_v52 = vld [vmem:[%s8392_s5 + $0x848] sm:$0xff] }
 0xaf3   :  { %v5291_v63 = vpack.c.bf16 %v2305_v55, %v2285_v54  ;;  %v2485_v53 = vld [vmem:[%s8392_s5 + $0x7b8] sm:$0xff] }
 0xaf4   :  { %v2505_v54 = vld [vmem:[%s8392_s5 + $0x858] sm:$0xff] }
 0xaf5   :  { %5230 = vmatpush1.bf16.msra.mxu1 %v5229_v60  ;;  %v2302_v60 = vld [vmem:[%s8392_s5 + $0x200] sm:$0xff] }
 0xaf6   :  { %5232 = vmatprep.subr.bf16.mxu1 %v5231_v61  ;;  %v5261_v5 = vpack.c.bf16 %v2302_v60, %v2282_v59  ;;  %v5279_v59 = vpack.c.bf16 %v2503_v52, %v2483_v51  ;;  %v5311_v60 = vpack.c.bf16 %v2505_v54, %v2485_v53  ;;  %v2369_v51 = vld [vmem:[%s8392_s5 + $0x418] sm:$0xff] }
 0xaf7   :  { %v2389_v52 = vld [vmem:[%s8392_s5 + $0x4b8] sm:$0xff] }
 0xaf9   :  { %5234 = vmatpush1.bf16.msra.mxu1 %v5233_v1  ;;  %v2323_v1 = vld [vmem:[%s8392_s5 + $0x2a8] sm:$0xff] }
 0xafa   :  { %5236 = vmatprep.subr.bf16.mxu1 %v5235_v2  ;;  %v2343_v2 = vld [vmem:[%s8392_s5 + $0x348] sm:$0xff] }
 0xafb   :  { %v5263_v9 = vpack.c.bf16 %v2343_v2, %v2323_v1  ;;  %v2525_v1 = vld [vmem:[%s8392_s5 + $0x8f8] sm:$0xff] }
 0xafc   :  { %v2545_v2 = vld [vmem:[%s8392_s5 + $0x998] sm:$0xff] }
 0xafd   :  { %5238 = vmatpush1.bf16.msra.mxu1 %v5237_v7  ;;  %v2322_v7 = vld [vmem:[%s8392_s5 + $0x2a0] sm:$0xff] }
 0xafe   :  { %5240 = vmatprep.subr.bf16.mxu1 %v5239_v8  ;;  %v2342_v8 = vld [vmem:[%s8392_s5 + $0x340] sm:$0xff] }
 0xaff   :  { %v5265_v17 = vpack.c.bf16 %v2342_v8, %v2322_v7  ;;  %v5283_v7 = vpack.c.bf16 %v2543_v0, %v2523_v31  ;;  %v5315_v8 = vpack.c.bf16 %v2545_v2, %v2525_v1  ;;  %v2409_v31 = vld [vmem:[%s8392_s5 + $0x558] sm:$0xff] }
 0xb00   :  { %v2429_v0 = vld [vmem:[%s8392_s5 + $0x5f8] sm:$0xff] }
 0xb01   :  { %5242 = vmatpush1.bf16.msra.mxu1 %v5241_v13  ;;  %v2363_v13 = vld [vmem:[%s8392_s5 + $0x3e8] sm:$0xff] }
 0xb02   :  { %5244 = vmatprep.subr.bf16.mxu1 %v5243_v14  ;;  %v2383_v14 = vld [vmem:[%s8392_s5 + $0x488] sm:$0xff] }
 0xb03   :  { %v5267_v21 = vpack.c.bf16 %v2383_v14, %v2363_v13  ;;  %v2249_v13 = vld [vmem:[%s8392_s5 + $0x58] sm:$0xff] }
 0xb04   :  { %v2269_v14 = vld [vmem:[%s8392_s5 + $0xf8] sm:$0xff] }
 0xb05   :  { %5246 = vmatpush1.bf16.msra.mxu1 %v5245_v19  ;;  %v2362_v19 = vld [vmem:[%s8392_s5 + $0x3e0] sm:$0xff] }
 0xb06   :  { %5248 = vmatprep.subr.bf16.mxu1 %v5247_v20  ;;  %v2382_v20 = vld [vmem:[%s8392_s5 + $0x480] sm:$0xff] }
 0xb07   :  { %v5269_v29 = vpack.c.bf16 %v2382_v20, %v2362_v19  ;;  %v5319_v19 = vpack.c.bf16 %v2267_v12, %v2247_v11  ;;  %v5351_v20 = vpack.c.bf16 %v2269_v14, %v2249_v13  ;;  %v2449_v11 = vld [vmem:[%s8392_s5 + $0x698] sm:$0xff] }
 0xb08   :  { %v2469_v12 = vld [vmem:[%s8392_s5 + $0x738] sm:$0xff] }
 0xb09   :  { %5250 = vmatpush1.bf16.msra.mxu1 %v5249_v23  ;;  %v2364_v23 = vld [vmem:[%s8392_s5 + $0x3f0] sm:$0xff] }
 0xb0a   :  { %5252 = vmatprep.subr.bf16.mxu1 %v5251_v32  ;;  %v5301_v30 = vpack.c.bf16 %v2384_v24, %v2364_v23  ;;  %v2402_v32 = vld [vmem:[%s8392_s5 + $0x520] sm:$0xff]  ;;  %v2287_v23 = vld [vmem:[%s8392_s5 + $0x188] sm:$0xff] }
 0xb0b   :  { %v2307_v24 = vld [vmem:[%s8392_s5 + $0x228] sm:$0xff] }
 0xb0d   :  { %5254 = vmatpush1.bf16.msra.mxu1 %v5253_v36  ;;  %v2404_v36 = vld [vmem:[%s8392_s5 + $0x530] sm:$0xff] }
 0xb0e   :  { %5288 = vmatprep.subr.bf16.mxu1 %v5287_v43  ;;  %v5273_v43 = vpack.c.bf16 %v2422_v33, %v2402_v32  ;;  %v5323_v32 = vpack.c.bf16 %v2307_v24, %v2287_v23  ;;  %v5355_v33 = vpack.c.bf16 %v2309_v26, %v2289_v25  ;;  %v2489_v23 = vld [vmem:[%s8392_s5 + $0x7d8] sm:$0xff] }
 0xb0f   :  { %v2509_v24 = vld [vmem:[%s8392_s5 + $0x878] sm:$0xff] }
 0xbc3   :  { %v2232_v45 = vpop.f32.mrb[20].mxu1 }
 0xbc4   :  { %v2233_v48 = vadd.f32 %v3639_v44, %v2232_v45  ;;  %v4578_v49 = vpop.f32.mrb[21].mxu1  ;;  %v5305_v44 = vpack.c.bf16 %v2424_v37, %v2404_v36  ;;  %v2442_v45 = vld [vmem:[%s8392_s5 + $0x660] sm:$0xff]  ;;  %v2327_v36 = vld [vmem:[%s8392_s5 + $0x2c8] sm:$0xff] }
 0xbc5   :  { %v2444_v49 = vld [vmem:[%s8392_s5 + $0x670] sm:$0xff]  ;;  %v5277_v55 = vpack.c.bf16 %v2462_v46, %v2442_v45  ;;  %v2347_v37 = vld [vmem:[%s8392_s5 + $0x368] sm:$0xff]  ;;  %v5359_v46 = vpack.c.bf16 %v2349_v39, %v2329_v38 }
 0xbc6   :  { %v2236_v56 = vmul.f32 0.01, %v2233_v48  ;;  %v5327_v45 = vpack.c.bf16 %v2347_v37, %v2327_v36  ;;  %v2529_v36 = vld [vmem:[%s8392_s5 + $0x918] sm:$0xff] }
 0xbc7   :  { %v2549_v37 = vld [vmem:[%s8392_s5 + $0x9b8] sm:$0xff] }
 0xbc8   :  { %v7541_v61 = vmax.f32 %v2233_v48, %v2236_v56  ;;  %v5307_v48 = vpack.c.bf16 %v2465_v42, %v2445_v40  ;;  %v5309_v56 = vpack.c.bf16 %v2464_v50, %v2444_v49  ;;  %v2367_v49 = vld [vmem:[%s8392_s5 + $0x408] sm:$0xff] }
 0xbc9   :  { %v2387_v50 = vld [vmem:[%s8392_s5 + $0x4a8] sm:$0xff] }
 0xbca   :  { %2729 = vmatmul.mubr.f32.vlgmr.msra.gmra.mrb[22].mxu0 %v7541_v61  ;;  %2800 = vmatmul.mubr.f32.vlgmr.msra.gmra.mrb[22].mxu1 %v7541_v61 }
 0xbcb   :  { %5258 = vmatpush1.bf16.msra.mxu0 %v5257_v57  ;;  %5290 = vmatpush1.bf16.msra.mxu1 %v5289_v58  ;;  %v2482_v57 = vld [vmem:[%s8392_s5 + $0x7a0] sm:$0xff] }
 0xbcc   :  { %5260 = vmatprep.subr.bf16.mxu0 %v5259_v62  ;;  %5292 = vmatprep.subr.bf16.mxu1 %v5291_v63  ;;  %v2502_v58 = vld [vmem:[%s8392_s5 + $0x840] sm:$0xff]  ;;  %v2484_v62 = vld [vmem:[%s8392_s5 + $0x7b0] sm:$0xff] }
 0xbcd   :  { %2870 = vmatprep.mubr.f32.mxu0 %v5515_v41  ;;  %2941 = vmatprep.mubr.f32.mxu1 %v5515_v41  ;;  %v2504_v63 = vld [vmem:[%s8392_s5 + $0x850] sm:$0xff]  ;;  %v5281_v3 = vpack.c.bf16 %v2502_v58, %v2482_v57  ;;  %v5331_v57 = vpack.c.bf16 %v2387_v50, %v2367_v49  ;;  %v5363_v58 = vpack.c.bf16 %v2389_v52, %v2369_v51  ;;  %v2253_v49 = vld [vmem:[%s8392_s5 + $0x78] sm:$0xff] }
 0xbce   :  { %v5313_v4 = vpack.c.bf16 %v2504_v63, %v2484_v62  ;;  %v2407_v62 = vld [vmem:[%s8392_s5 + $0x548] sm:$0xff]  ;;  %v2273_v50 = vld [vmem:[%s8392_s5 + $0x118] sm:$0xff] }
 0xbcf   :  { %5262 = vmatpush1.bf16.msra.mxu0 %v5261_v5  ;;  %5294 = vmatpush1.bf16.msra.mxu1 %v5293_v6  ;;  %v2522_v5 = vld [vmem:[%s8392_s5 + $0x8e0] sm:$0xff]  ;;  %v2427_v63 = vld [vmem:[%s8392_s5 + $0x5e8] sm:$0xff] }
 0xbd0   :  { %5264 = vmatprep.subr.bf16.mxu0 %v5263_v9  ;;  %5296 = vmatprep.subr.bf16.mxu1 %v5295_v10  ;;  %v2542_v6 = vld [vmem:[%s8392_s5 + $0x980] sm:$0xff]  ;;  %v2524_v9 = vld [vmem:[%s8392_s5 + $0x8f0] sm:$0xff] }
 0xbd1   :  { %v2544_v10 = vld [vmem:[%s8392_s5 + $0x990] sm:$0xff]  ;;  %v5285_v15 = vpack.c.bf16 %v2542_v6, %v2522_v5  ;;  %v5335_v5 = vpack.c.bf16 %v2427_v63, %v2407_v62  ;;  %v5367_v6 = vpack.c.bf16 %v2429_v0, %v2409_v31  ;;  %v2293_v62 = vld [vmem:[%s8392_s5 + $0x1b8] sm:$0xff] }
 0xbd2   :  { %v5317_v16 = vpack.c.bf16 %v2544_v10, %v2524_v9  ;;  %v2447_v9 = vld [vmem:[%s8392_s5 + $0x688] sm:$0xff]  ;;  %v2313_v63 = vld [vmem:[%s8392_s5 + $0x258] sm:$0xff] }
 0xbd3   :  { %5266 = vmatpush1.bf16.msra.mxu0 %v5265_v17  ;;  %5298 = vmatpush1.bf16.msra.mxu1 %v5297_v18  ;;  %v2246_v17 = vld [vmem:[%s8392_s5 + $0x40] sm:$0xff]  ;;  %v2467_v10 = vld [vmem:[%s8392_s5 + $0x728] sm:$0xff] }
 0xbd4   :  { %5268 = vmatprep.subr.bf16.mxu0 %v5267_v21  ;;  %5300 = vmatprep.subr.bf16.mxu1 %v5299_v22  ;;  %v2266_v18 = vld [vmem:[%s8392_s5 + $0xe0] sm:$0xff]  ;;  %v2248_v21 = vld [vmem:[%s8392_s5 + $0x50] sm:$0xff] }
 0xbd5   :  { %v2268_v22 = vld [vmem:[%s8392_s5 + $0xf0] sm:$0xff]  ;;  %v5321_v27 = vpack.c.bf16 %v2266_v18, %v2246_v17  ;;  %v5339_v17 = vpack.c.bf16 %v2467_v10, %v2447_v9  ;;  %v5371_v18 = vpack.c.bf16 %v2469_v12, %v2449_v11  ;;  %v2333_v9 = vld [vmem:[%s8392_s5 + $0x2f8] sm:$0xff] }
 0xbd6   :  { %v5353_v28 = vpack.c.bf16 %v2268_v22, %v2248_v21  ;;  %v2487_v21 = vld [vmem:[%s8392_s5 + $0x7c8] sm:$0xff]  ;;  %v2353_v10 = vld [vmem:[%s8392_s5 + $0x398] sm:$0xff] }
 0xbd7   :  { %5270 = vmatpush1.bf16.msra.mxu0 %v5269_v29  ;;  %5302 = vmatpush1.bf16.msra.mxu1 %v5301_v30  ;;  %v2286_v29 = vld [vmem:[%s8392_s5 + $0x180] sm:$0xff]  ;;  %v2507_v22 = vld [vmem:[%s8392_s5 + $0x868] sm:$0xff] }
 0xbd8   :  { %5272 = vmatprep.subr.bf16.mxu0 %v5271_v34  ;;  %5304 = vmatprep.subr.bf16.mxu1 %v5303_v35  ;;  %v2306_v30 = vld [vmem:[%s8392_s5 + $0x220] sm:$0xff]  ;;  %v2288_v34 = vld [vmem:[%s8392_s5 + $0x190] sm:$0xff] }
 0xbd9   :  { %v2308_v35 = vld [vmem:[%s8392_s5 + $0x230] sm:$0xff]  ;;  %v5325_v40 = vpack.c.bf16 %v2306_v30, %v2286_v29  ;;  %v5343_v29 = vpack.c.bf16 %v2507_v22, %v2487_v21  ;;  %v5375_v30 = vpack.c.bf16 %v2509_v24, %v2489_v23  ;;  %v2373_v21 = vld [vmem:[%s8392_s5 + $0x438] sm:$0xff] }
 0xbda   :  { %v5357_v42 = vpack.c.bf16 %v2308_v35, %v2288_v34  ;;  %v2527_v34 = vld [vmem:[%s8392_s5 + $0x908] sm:$0xff]  ;;  %v2393_v22 = vld [vmem:[%s8392_s5 + $0x4d8] sm:$0xff] }
 0xbdb   :  { %5274 = vmatpush1.bf16.msra.mxu0 %v5273_v43  ;;  %5306 = vmatpush1.bf16.msra.mxu1 %v5305_v44  ;;  %v2326_v43 = vld [vmem:[%s8392_s5 + $0x2c0] sm:$0xff]  ;;  %v2547_v35 = vld [vmem:[%s8392_s5 + $0x9a8] sm:$0xff] }
 0xbdc   :  { %5276 = vmatprep.subr.bf16.mxu0 %v5275_v47  ;;  %5308 = vmatprep.subr.bf16.mxu1 %v5307_v48  ;;  %v2346_v44 = vld [vmem:[%s8392_s5 + $0x360] sm:$0xff]  ;;  %v2328_v47 = vld [vmem:[%s8392_s5 + $0x2d0] sm:$0xff] }
 0xbdd   :  { %v2348_v48 = vld [vmem:[%s8392_s5 + $0x370] sm:$0xff]  ;;  %v5329_v53 = vpack.c.bf16 %v2346_v44, %v2326_v43  ;;  %v5347_v43 = vpack.c.bf16 %v2547_v35, %v2527_v34  ;;  %v5379_v44 = vpack.c.bf16 %v2549_v37, %v2529_v36  ;;  %v2413_v34 = vld [vmem:[%s8392_s5 + $0x578] sm:$0xff] }
 0xbde   :  { %v5361_v54 = vpack.c.bf16 %v2348_v48, %v2328_v47  ;;  %v2251_v47 = vld [vmem:[%s8392_s5 + $0x68] sm:$0xff]  ;;  %v2433_v35 = vld [vmem:[%s8392_s5 + $0x618] sm:$0xff] }
 0xbdf   :  { %5278 = vmatpush1.bf16.msra.mxu0 %v5277_v55  ;;  %5310 = vmatpush1.bf16.msra.mxu1 %v5309_v56  ;;  %v2366_v55 = vld [vmem:[%s8392_s5 + $0x400] sm:$0xff]  ;;  %v2271_v48 = vld [vmem:[%s8392_s5 + $0x108] sm:$0xff] }
 0xbe0   :  { %5280 = vmatprep.subr.bf16.mxu0 %v5279_v59  ;;  %5312 = vmatprep.subr.bf16.mxu1 %v5311_v60  ;;  %v2386_v56 = vld [vmem:[%s8392_s5 + $0x4a0] sm:$0xff]  ;;  %v2368_v59 = vld [vmem:[%s8392_s5 + $0x410] sm:$0xff] }
 0xbe1   :  { %v2388_v60 = vld [vmem:[%s8392_s5 + $0x4b0] sm:$0xff]  ;;  %v5333_v1 = vpack.c.bf16 %v2386_v56, %v2366_v55  ;;  %v5383_v55 = vpack.c.bf16 %v2271_v48, %v2251_v47  ;;  %v5415_v56 = vpack.c.bf16 %v2273_v50, %v2253_v49  ;;  %v2453_v47 = vld [vmem:[%s8392_s5 + $0x6b8] sm:$0xff] }
 0xbe2   :  { %v5365_v2 = vpack.c.bf16 %v2388_v60, %v2368_v59  ;;  %v2291_v59 = vld [vmem:[%s8392_s5 + $0x1a8] sm:$0xff]  ;;  %v2473_v48 = vld [vmem:[%s8392_s5 + $0x758] sm:$0xff] }
 0xbe3   :  { %5282 = vmatpush1.bf16.msra.mxu0 %v5281_v3  ;;  %5314 = vmatpush1.bf16.msra.mxu1 %v5313_v4  ;;  %v2406_v3 = vld [vmem:[%s8392_s5 + $0x540] sm:$0xff]  ;;  %v2311_v60 = vld [vmem:[%s8392_s5 + $0x248] sm:$0xff] }
 0xbe4   :  { %5284 = vmatprep.subr.bf16.mxu0 %v5283_v7  ;;  %5316 = vmatprep.subr.bf16.mxu1 %v5315_v8  ;;  %v2426_v4 = vld [vmem:[%s8392_s5 + $0x5e0] sm:$0xff]  ;;  %v2408_v7 = vld [vmem:[%s8392_s5 + $0x550] sm:$0xff] }
 0xbe5   :  { %v2428_v8 = vld [vmem:[%s8392_s5 + $0x5f0] sm:$0xff]  ;;  %v5337_v13 = vpack.c.bf16 %v2426_v4, %v2406_v3  ;;  %v5387_v3 = vpack.c.bf16 %v2311_v60, %v2291_v59  ;;  %v5419_v4 = vpack.c.bf16 %v2313_v63, %v2293_v62  ;;  %v2493_v59 = vld [vmem:[%s8392_s5 + $0x7f8] sm:$0xff] }
 0xbe6   :  { %v5369_v14 = vpack.c.bf16 %v2428_v8, %v2408_v7  ;;  %v2331_v7 = vld [vmem:[%s8392_s5 + $0x2e8] sm:$0xff]  ;;  %v2513_v60 = vld [vmem:[%s8392_s5 + $0x898] sm:$0xff] }
 0xbe7   :  { %5286 = vmatpush1.bf16.msra.mxu0 %v5285_v15  ;;  %5318 = vmatpush1.bf16.msra.mxu1 %v5317_v16  ;;  %v2446_v15 = vld [vmem:[%s8392_s5 + $0x680] sm:$0xff]  ;;  %v2351_v8 = vld [vmem:[%s8392_s5 + $0x388] sm:$0xff] }
 0xbe8   :  { %5320 = vmatprep.subr.bf16.mxu0 %v5319_v19  ;;  %5352 = vmatprep.subr.bf16.mxu1 %v5351_v20  ;;  %v2466_v16 = vld [vmem:[%s8392_s5 + $0x720] sm:$0xff]  ;;  %v2448_v19 = vld [vmem:[%s8392_s5 + $0x690] sm:$0xff] }
 0xbe9   :  { %v2468_v20 = vld [vmem:[%s8392_s5 + $0x730] sm:$0xff]  ;;  %v5341_v25 = vpack.c.bf16 %v2466_v16, %v2446_v15  ;;  %v5391_v15 = vpack.c.bf16 %v2351_v8, %v2331_v7  ;;  %v5423_v16 = vpack.c.bf16 %v2353_v10, %v2333_v9  ;;  %v2533_v7 = vld [vmem:[%s8392_s5 + $0x938] sm:$0xff] }
 0xbea   :  { %2871 = vmatmul.mubr.f32.vlgmr.msra.gmra.mrb[24].mxu0 %v7541_v61  ;;  %2942 = vmatmul.mubr.f32.vlgmr.msra.gmra.mrb[24].mxu1 %v7541_v61  ;;  %v5373_v26 = vpack.c.bf16 %v2468_v20, %v2448_v19  ;;  %v2371_v19 = vld [vmem:[%s8392_s5 + $0x428] sm:$0xff]  ;;  %v2553_v8 = vld [vmem:[%s8392_s5 + $0x9d8] sm:$0xff] }
 0xbeb   :  { %5322 = vmatpush1.bf16.msra.mxu0 %v5321_v27  ;;  %5354 = vmatpush1.bf16.msra.mxu1 %v5353_v28  ;;  %v2486_v27 = vld [vmem:[%s8392_s5 + $0x7c0] sm:$0xff]  ;;  %v2391_v20 = vld [vmem:[%s8392_s5 + $0x4c8] sm:$0xff] }
 0xbec   :  { %5324 = vmatprep.subr.bf16.mxu0 %v5323_v32  ;;  %5356 = vmatprep.subr.bf16.mxu1 %v5355_v33  ;;  %v2506_v28 = vld [vmem:[%s8392_s5 + $0x860] sm:$0xff]  ;;  %v2488_v32 = vld [vmem:[%s8392_s5 + $0x7d0] sm:$0xff] }
 0xbed   :  { %3012 = vmatprep.mubr.f32.mxu0 %v5515_v41  ;;  %3083 = vmatprep.mubr.f32.mxu1 %v5515_v41  ;;  %v2508_v33 = vld [vmem:[%s8392_s5 + $0x870] sm:$0xff]  ;;  %v5345_v38 = vpack.c.bf16 %v2506_v28, %v2486_v27  ;;  %v5395_v27 = vpack.c.bf16 %v2391_v20, %v2371_v19  ;;  %v5427_v28 = vpack.c.bf16 %v2393_v22, %v2373_v21  ;;  %v2257_v19 = vld [vmem:[%s8392_s5 + $0x98] sm:$0xff] }
 0xbee   :  { %v5377_v39 = vpack.c.bf16 %v2508_v33, %v2488_v32  ;;  %v2411_v32 = vld [vmem:[%s8392_s5 + $0x568] sm:$0xff]  ;;  %v2277_v20 = vld [vmem:[%s8392_s5 + $0x138] sm:$0xff] }
 0xbef   :  { %5326 = vmatpush1.bf16.msra.mxu0 %v5325_v40  ;;  %5358 = vmatpush1.bf16.msra.mxu1 %v5357_v42  ;;  %v2526_v40 = vld [vmem:[%s8392_s5 + $0x900] sm:$0xff]  ;;  %v2431_v33 = vld [vmem:[%s8392_s5 + $0x608] sm:$0xff] }
 0xbf0   :  { %5328 = vmatprep.subr.bf16.mxu0 %v5327_v45  ;;  %5360 = vmatprep.subr.bf16.mxu1 %v5359_v46  ;;  %v2546_v42 = vld [vmem:[%s8392_s5 + $0x9a0] sm:$0xff]  ;;  %v2528_v45 = vld [vmem:[%s8392_s5 + $0x910] sm:$0xff] }
 0xbf1   :  { %v2548_v46 = vld [vmem:[%s8392_s5 + $0x9b0] sm:$0xff]  ;;  %v5349_v51 = vpack.c.bf16 %v2546_v42, %v2526_v40  ;;  %v5399_v40 = vpack.c.bf16 %v2431_v33, %v2411_v32  ;;  %v5431_v42 = vpack.c.bf16 %v2433_v35, %v2413_v34  ;;  %v2297_v32 = vld [vmem:[%s8392_s5 + $0x1d8] sm:$0xff] }
 0xbf2   :  { %v5381_v52 = vpack.c.bf16 %v2548_v46, %v2528_v45  ;;  %v2451_v45 = vld [vmem:[%s8392_s5 + $0x6a8] sm:$0xff]  ;;  %v2317_v33 = vld [vmem:[%s8392_s5 + $0x278] sm:$0xff] }
 0xbf3   :  { %5330 = vmatpush1.bf16.msra.mxu0 %v5329_v53  ;;  %5362 = vmatpush1.bf16.msra.mxu1 %v5361_v54  ;;  %v2250_v53 = vld [vmem:[%s8392_s5 + $0x60] sm:$0xff]  ;;  %v2471_v46 = vld [vmem:[%s8392_s5 + $0x748] sm:$0xff] }
 0xbf4   :  { %5332 = vmatprep.subr.bf16.mxu0 %v5331_v57  ;;  %5364 = vmatprep.subr.bf16.mxu1 %v5363_v58  ;;  %v2270_v54 = vld [vmem:[%s8392_s5 + $0x100] sm:$0xff]  ;;  %v2252_v57 = vld [vmem:[%s8392_s5 + $0x70] sm:$0xff] }
 0xbf5   :  { %v2272_v58 = vld [vmem:[%s8392_s5 + $0x110] sm:$0xff]  ;;  %v5385_v31 = vpack.c.bf16 %v2270_v54, %v2250_v53  ;;  %v5403_v53 = vpack.c.bf16 %v2471_v46, %v2451_v45  ;;  %v5435_v54 = vpack.c.bf16 %v2473_v48, %v2453_v47  ;;  %v2337_v45 = vld [vmem:[%s8392_s5 + $0x318] sm:$0xff] }
 0xbf6   :  { %v5417_v0 = vpack.c.bf16 %v2272_v58, %v2252_v57  ;;  %v2491_v57 = vld [vmem:[%s8392_s5 + $0x7e8] sm:$0xff]  ;;  %v2357_v46 = vld [vmem:[%s8392_s5 + $0x3b8] sm:$0xff] }
 0xbf7   :  { %5334 = vmatpush1.bf16.msra.mxu0 %v5333_v1  ;;  %5366 = vmatpush1.bf16.msra.mxu1 %v5365_v2  ;;  %v2290_v1 = vld [vmem:[%s8392_s5 + $0x1a0] sm:$0xff]  ;;  %v2511_v58 = vld [vmem:[%s8392_s5 + $0x888] sm:$0xff] }
 0xbf8   :  { %5336 = vmatprep.subr.bf16.mxu0 %v5335_v5  ;;  %5368 = vmatprep.subr.bf16.mxu1 %v5367_v6  ;;  %v2310_v2 = vld [vmem:[%s8392_s5 + $0x240] sm:$0xff]  ;;  %v2292_v5 = vld [vmem:[%s8392_s5 + $0x1b0] sm:$0xff] }
 0xbf9   :  { %v2312_v6 = vld [vmem:[%s8392_s5 + $0x250] sm:$0xff]  ;;  %v5389_v11 = vpack.c.bf16 %v2310_v2, %v2290_v1  ;;  %v5407_v1 = vpack.c.bf16 %v2511_v58, %v2491_v57  ;;  %v5439_v2 = vpack.c.bf16 %v2513_v60, %v2493_v59  ;;  %v2377_v57 = vld [vmem:[%s8392_s5 + $0x458] sm:$0xff] }
 0xbfa   :  { %v5421_v12 = vpack.c.bf16 %v2312_v6, %v2292_v5  ;;  %v2531_v5 = vld [vmem:[%s8392_s5 + $0x928] sm:$0xff]  ;;  %v2397_v58 = vld [vmem:[%s8392_s5 + $0x4f8] sm:$0xff] }
 0xbfb   :  { %5338 = vmatpush1.bf16.msra.mxu0 %v5337_v13  ;;  %5370 = vmatpush1.bf16.msra.mxu1 %v5369_v14  ;;  %v2330_v13 = vld [vmem:[%s8392_s5 + $0x2e0] sm:$0xff]  ;;  %v2551_v6 = vld [vmem:[%s8392_s5 + $0x9c8] sm:$0xff] }
 0xbfc   :  { %5340 = vmatprep.subr.bf16.mxu0 %v5339_v17  ;;  %5372 = vmatprep.subr.bf16.mxu1 %v5371_v18  ;;  %v2350_v14 = vld [vmem:[%s8392_s5 + $0x380] sm:$0xff]  ;;  %v2332_v17 = vld [vmem:[%s8392_s5 + $0x2f0] sm:$0xff] }
 0xbfd   :  { %v2352_v18 = vld [vmem:[%s8392_s5 + $0x390] sm:$0xff]  ;;  %v5393_v23 = vpack.c.bf16 %v2350_v14, %v2330_v13  ;;  %v5411_v13 = vpack.c.bf16 %v2551_v6, %v2531_v5  ;;  %v5443_v14 = vpack.c.bf16 %v2553_v8, %v2533_v7  ;;  %v2437_v5 = vld [vmem:[%s8392_s5 + $0x638] sm:$0xff]  ;;  %v2414_v8 = vld [vmem:[%s8392_s5 + $0x580] sm:$0xff] }
 0xbfe   :  { %v5425_v24 = vpack.c.bf16 %v2352_v18, %v2332_v17  ;;  %v2255_v17 = vld [vmem:[%s8392_s5 + $0x88] sm:$0xff] }
 0xbff   :  { %5342 = vmatpush1.bf16.msra.mxu0 %v5341_v25  ;;  %5374 = vmatpush1.bf16.msra.mxu1 %v5373_v26  ;;  %v2370_v25 = vld [vmem:[%s8392_s5 + $0x420] sm:$0xff]  ;;  %v2275_v18 = vld [vmem:[%s8392_s5 + $0x128] sm:$0xff] }
 0xc00   :  { %5344 = vmatprep.subr.bf16.mxu0 %v5343_v29  ;;  %5376 = vmatprep.subr.bf16.mxu1 %v5375_v30  ;;  %v2390_v26 = vld [vmem:[%s8392_s5 + $0x4c0] sm:$0xff]  ;;  %v2372_v29 = vld [vmem:[%s8392_s5 + $0x430] sm:$0xff] }
 0xc01   :  { %v2392_v30 = vld [vmem:[%s8392_s5 + $0x4d0] sm:$0xff]  ;;  %v5397_v36 = vpack.c.bf16 %v2390_v26, %v2370_v25  ;;  %v5447_v25 = vpack.c.bf16 %v2275_v18, %v2255_v17  ;;  %v5479_v26 = vpack.c.bf16 %v2277_v20, %v2257_v19  ;;  %v2477_v17 = vld [vmem:[%s8392_s5 + $0x778] sm:$0xff]  ;;  %v2454_v20 = vld [vmem:[%s8392_s5 + $0x6c0] sm:$0xff] }
 0xc02   :  { %v5429_v37 = vpack.c.bf16 %v2392_v30, %v2372_v29  ;;  %v2295_v29 = vld [vmem:[%s8392_s5 + $0x1c8] sm:$0xff] }
 0xc03   :  { %5346 = vmatpush1.bf16.msra.mxu0 %v5345_v38  ;;  %5378 = vmatpush1.bf16.msra.mxu1 %v5377_v39  ;;  %v2410_v38 = vld [vmem:[%s8392_s5 + $0x560] sm:$0xff]  ;;  %v2315_v30 = vld [vmem:[%s8392_s5 + $0x268] sm:$0xff] }
 0xc04   :  { %5348 = vmatprep.subr.bf16.mxu0 %v5347_v43  ;;  %5380 = vmatprep.subr.bf16.mxu1 %v5379_v44  ;;  %v2430_v39 = vld [vmem:[%s8392_s5 + $0x600] sm:$0xff]  ;;  %v2412_v43 = vld [vmem:[%s8392_s5 + $0x570] sm:$0xff] }
 0xc05   :  { %v2432_v44 = vld [vmem:[%s8392_s5 + $0x610] sm:$0xff]  ;;  %v5401_v49 = vpack.c.bf16 %v2430_v39, %v2410_v38  ;;  %v5451_v38 = vpack.c.bf16 %v2315_v30, %v2295_v29  ;;  %v5483_v39 = vpack.c.bf16 %v2317_v33, %v2297_v32  ;;  %v2517_v29 = vld [vmem:[%s8392_s5 + $0x8b8] sm:$0xff]  ;;  %v2494_v33 = vld [vmem:[%s8392_s5 + $0x800] sm:$0xff] }
 0xc06   :  { %v5433_v50 = vpack.c.bf16 %v2432_v44, %v2412_v43  ;;  %v2335_v43 = vld [vmem:[%s8392_s5 + $0x308] sm:$0xff] }
 0xc07   :  { %5350 = vmatpush1.bf16.msra.mxu0 %v5349_v51  ;;  %5382 = vmatpush1.bf16.msra.mxu1 %v5381_v52  ;;  %v2450_v51 = vld [vmem:[%s8392_s5 + $0x6a0] sm:$0xff]  ;;  %v2355_v44 = vld [vmem:[%s8392_s5 + $0x3a8] sm:$0xff] }
 0xc08   :  { %5384 = vmatprep.subr.bf16.mxu0 %v5383_v55  ;;  %5416 = vmatprep.subr.bf16.mxu1 %v5415_v56  ;;  %v2470_v52 = vld [vmem:[%s8392_s5 + $0x740] sm:$0xff]  ;;  %v2452_v55 = vld [vmem:[%s8392_s5 + $0x6b0] sm:$0xff] }
 0xc09   :  { %v2472_v56 = vld [vmem:[%s8392_s5 + $0x750] sm:$0xff]  ;;  %v5405_v62 = vpack.c.bf16 %v2470_v52, %v2450_v51  ;;  %v5455_v51 = vpack.c.bf16 %v2355_v44, %v2335_v43  ;;  %v5487_v52 = vpack.c.bf16 %v2357_v46, %v2337_v45  ;;  %v2557_v43 = vld [vmem:[%s8392_s5 + $0x9f8] sm:$0xff]  ;;  %v2534_v46 = vld [vmem:[%s8392_s5 + $0x940] sm:$0xff] }
 0xc0a   :  { %3013 = vmatmul.mubr.f32.vlgmr.msra.gmra.mrb[26].mxu0 %v7541_v61  ;;  %3084 = vmatmul.mubr.f32.vlgmr.msra.gmra.mrb[26].mxu1 %v7541_v61  ;;  %v5437_v63 = vpack.c.bf16 %v2472_v56, %v2452_v55  ;;  %v2375_v55 = vld [vmem:[%s8392_s5 + $0x448] sm:$0xff] }
 0xc0b   :  { %5386 = vmatpush1.bf16.msra.mxu0 %v5385_v31  ;;  %5418 = vmatpush1.bf16.msra.mxu1 %v5417_v0  ;;  %v2490_v31 = vld [vmem:[%s8392_s5 + $0x7e0] sm:$0xff]  ;;  %v2395_v56 = vld [vmem:[%s8392_s5 + $0x4e8] sm:$0xff] }
 0xc0c   :  { %5388 = vmatprep.subr.bf16.mxu0 %v5387_v3  ;;  %5420 = vmatprep.subr.bf16.mxu1 %v5419_v4  ;;  %v2510_v0 = vld [vmem:[%s8392_s5 + $0x880] sm:$0xff]  ;;  %v2492_v3 = vld [vmem:[%s8392_s5 + $0x7f0] sm:$0xff] }
 0xc0d   :  { %3154 = vmatprep.mubr.f32.mxu0 %v5515_v41  ;;  %3225 = vmatprep.mubr.f32.mxu1 %v5515_v41  ;;  %v2512_v4 = vld [vmem:[%s8392_s5 + $0x890] sm:$0xff]  ;;  %v5409_v9 = vpack.c.bf16 %v2510_v0, %v2490_v31  ;;  %v5459_v31 = vpack.c.bf16 %v2395_v56, %v2375_v55  ;;  %v5491_v0 = vpack.c.bf16 %v2397_v58, %v2377_v57  ;;  %v2558_v58 = vld [vmem:[%s8393_s6] sm:$0xff] }
 0xc0e   :  { %v5441_v10 = vpack.c.bf16 %v2512_v4, %v2492_v3  ;;  %v2435_v3 = vld [vmem:[%s8392_s5 + $0x628] sm:$0xff]  ;;  %v2417_v4 = vld [vmem:[%s8392_s5 + $0x598] sm:$0xff] }
 0xc0f   :  { %5390 = vmatpush1.bf16.msra.mxu0 %v5389_v11  ;;  %5422 = vmatpush1.bf16.msra.mxu1 %v5421_v12  ;;  %v2530_v11 = vld [vmem:[%s8392_s5 + $0x920] sm:$0xff] }
 0xc10   :  { %5392 = vmatprep.subr.bf16.mxu0 %v5391_v15  ;;  %5424 = vmatprep.subr.bf16.mxu1 %v5423_v16  ;;  %v2550_v12 = vld [vmem:[%s8392_s5 + $0x9c0] sm:$0xff]  ;;  %v2532_v15 = vld [vmem:[%s8392_s5 + $0x930] sm:$0xff] }
 0xc11   :  { %v2552_v16 = vld [vmem:[%s8392_s5 + $0x9d0] sm:$0xff]  ;;  %v5413_v21 = vpack.c.bf16 %v2550_v12, %v2530_v11  ;;  %v5495_v11 = vpack.c.bf16 %v2437_v5, %v2417_v4 }
 0xc12   :  { %v5445_v22 = vpack.c.bf16 %v2552_v16, %v2532_v15  ;;  %v2416_v12 = vld [vmem:[%s8392_s5 + $0x590] sm:$0xff]  ;;  %v2475_v15 = vld [vmem:[%s8392_s5 + $0x768] sm:$0xff]  ;;  %v2457_v16 = vld [vmem:[%s8392_s5 + $0x6d8] sm:$0xff] }
 0xc13   :  { %5394 = vmatpush1.bf16.msra.mxu0 %v5393_v23  ;;  %5426 = vmatpush1.bf16.msra.mxu1 %v5425_v24  ;;  %v2254_v23 = vld [vmem:[%s8392_s5 + $0x80] sm:$0xff] }
 0xc14   :  { %5396 = vmatprep.subr.bf16.mxu0 %v5395_v27  ;;  %5428 = vmatprep.subr.bf16.mxu1 %v5427_v28  ;;  %v2274_v24 = vld [vmem:[%s8392_s5 + $0x120] sm:$0xff]  ;;  %v2256_v27 = vld [vmem:[%s8392_s5 + $0x90] sm:$0xff] }
 0xc15   :  { %v2276_v28 = vld [vmem:[%s8392_s5 + $0x130] sm:$0xff]  ;;  %v5449_v34 = vpack.c.bf16 %v2274_v24, %v2254_v23  ;;  %v5499_v23 = vpack.c.bf16 %v2477_v17, %v2457_v16 }
 0xc16   :  { %v5481_v35 = vpack.c.bf16 %v2276_v28, %v2256_v27  ;;  %v2456_v24 = vld [vmem:[%s8392_s5 + $0x6d0] sm:$0xff]  ;;  %v2515_v27 = vld [vmem:[%s8392_s5 + $0x8a8] sm:$0xff]  ;;  %v2497_v28 = vld [vmem:[%s8392_s5 + $0x818] sm:$0xff] }
 0xc17   :  { %5398 = vmatpush1.bf16.msra.mxu0 %v5397_v36  ;;  %5430 = vmatpush1.bf16.msra.mxu1 %v5429_v37  ;;  %v2294_v36 = vld [vmem:[%s8392_s5 + $0x1c0] sm:$0xff] }
 0xc18   :  { %5400 = vmatprep.subr.bf16.mxu0 %v5399_v40  ;;  %5432 = vmatprep.subr.bf16.mxu1 %v5431_v42  ;;  %v2314_v37 = vld [vmem:[%s8392_s5 + $0x260] sm:$0xff]  ;;  %v2296_v40 = vld [vmem:[%s8392_s5 + $0x1d0] sm:$0xff] }
 0xc19   :  { %v2316_v42 = vld [vmem:[%s8392_s5 + $0x270] sm:$0xff]  ;;  %v5453_v47 = vpack.c.bf16 %v2314_v37, %v2294_v36  ;;  %v5503_v36 = vpack.c.bf16 %v2517_v29, %v2497_v28 }
 0xc1a   :  { %v5485_v48 = vpack.c.bf16 %v2316_v42, %v2296_v40  ;;  %v2496_v37 = vld [vmem:[%s8392_s5 + $0x810] sm:$0xff]  ;;  %v2555_v40 = vld [vmem:[%s8392_s5 + $0x9e8] sm:$0xff]  ;;  %v2537_v42 = vld [vmem:[%s8392_s5 + $0x958] sm:$0xff] }
 0xc1b   :  { %5402 = vmatpush1.bf16.msra.mxu0 %v5401_v49  ;;  %5434 = vmatpush1.bf16.msra.mxu1 %v5433_v50  ;;  %v2334_v49 = vld [vmem:[%s8392_s5 + $0x300] sm:$0xff] }
 0xc1c   :  { %5404 = vmatprep.subr.bf16.mxu0 %v5403_v53  ;;  %5436 = vmatprep.subr.bf16.mxu1 %v5435_v54  ;;  %v2354_v50 = vld [vmem:[%s8392_s5 + $0x3a0] sm:$0xff]  ;;  %v2336_v53 = vld [vmem:[%s8392_s5 + $0x310] sm:$0xff] }
 0xc1d   :  { %v2356_v54 = vld [vmem:[%s8392_s5 + $0x3b0] sm:$0xff]  ;;  %v5457_v59 = vpack.c.bf16 %v2354_v50, %v2334_v49  ;;  %v2554_v49 = vld [vmem:[%s8392_s5 + $0x9e0] sm:$0xff] }
 0xc1e   :  { %v5489_v60 = vpack.c.bf16 %v2356_v54, %v2336_v53  ;;  %v2536_v50 = vld [vmem:[%s8392_s5 + $0x950] sm:$0xff]  ;;  %v2564_v54 = vlaneseq }
 0xc1f   :  { %5406 = vmatpush1.bf16.msra.mxu0 %v5405_v62  ;;  %5438 = vmatpush1.bf16.msra.mxu1 %v5437_v63  ;;  %v2374_v62 = vld [vmem:[%s8392_s5 + $0x440] sm:$0xff] }
 0xc20   :  { %5408 = vmatprep.subr.bf16.mxu0 %v5407_v1  ;;  %5440 = vmatprep.subr.bf16.mxu1 %v5439_v2  ;;  %v2394_v63 = vld [vmem:[%s8392_s5 + $0x4e0] sm:$0xff]  ;;  %v2396_v1 = vld [vmem:[%s8392_s5 + $0x4f0] sm:$0xff]  ;;  %v2415_v2 = vld [vmem:[%s8392_s5 + $0x588] sm:$0xff]  ;;  %v8287_v55 = vshrl.u32 %v2564_v54, 7 }
 0xc21   :  { %v5461_v6 = vpack.c.bf16 %v2394_v63, %v2374_v62 }
 0xc22   :  { %v8290_v56 = vsub.s32 0, %v8287_v55  ;;  %v8293_v57 = vsub.s32 2, %v8287_v55  ;;  %v2590_v16 = vsub.s32 6, %v8287_v55  ;;  %v2586_v17 = vsub.s32 5, %v8287_v55 }
 0xc23   :  { %5410 = vmatpush1.bf16.msra.mxu0 %v5409_v9  ;;  %5442 = vmatpush1.bf16.msra.mxu1 %v5441_v10  ;;  %v2434_v9 = vld [vmem:[%s8392_s5 + $0x620] sm:$0xff]  ;;  %v5463_v10 = vpack.c.bf16 %v2435_v3, %v2415_v2 }
 0xc24   :  { %5412 = vmatprep.subr.bf16.mxu0 %v5411_v13  ;;  %5444 = vmatprep.subr.bf16.mxu1 %v5443_v14  ;;  %v2436_v13 = vld [vmem:[%s8392_s5 + $0x630] sm:$0xff]  ;;  %v2455_v14 = vld [vmem:[%s8392_s5 + $0x6c8] sm:$0xff]  ;;  %v5465_v18 = vpack.c.bf16 %v2434_v9, %v2414_v8  ;;  %v2575_v62 = vrot.slane %v2558_v58, %v8293_v57 }
 0xc25   :  { %v5497_v19 = vpack.c.bf16 %v2436_v13, %v2416_v12 }
 0xc27   :  { %5414 = vmatpush1.bf16.msra.mxu0 %v5413_v21  ;;  %5446 = vmatpush1.bf16.msra.mxu1 %v5445_v22  ;;  %v2474_v21 = vld [vmem:[%s8392_s5 + $0x760] sm:$0xff]  ;;  %v5467_v22 = vpack.c.bf16 %v2475_v15, %v2455_v14  ;;  %v2582_v15 = vsub.s32 4, %v8287_v55 }
 0xc28   :  { %5448 = vmatprep.subr.bf16.mxu0 %v5447_v25  ;;  %5480 = vmatprep.subr.bf16.mxu1 %v5479_v26  ;;  %v2476_v25 = vld [vmem:[%s8392_s5 + $0x770] sm:$0xff]  ;;  %v2495_v26 = vld [vmem:[%s8392_s5 + $0x808] sm:$0xff]  ;;  %v5469_v30 = vpack.c.bf16 %v2474_v21, %v2454_v20  ;;  %v2591_v20 = vrot.slane %v2558_v58, %v2590_v16  ;;  %v2587_v21 = vrot.slane %v2558_v58, %v2586_v17 }
 0xc29   :  { %v5501_v32 = vpack.c.bf16 %v2476_v25, %v2456_v24 }
 0xc2a   :  { %3155 = vmatmul.mubr.f32.vlgmr.msra.gmra.mrb[28].mxu0 %v7541_v61  ;;  %3226 = vmatmul.mubr.f32.vlgmr.msra.gmra.mrb[28].mxu1 %v7541_v61 }
 0xc2b   :  { %5450 = vmatpush1.bf16.msra.mxu0 %v5449_v34  ;;  %5482 = vmatpush1.bf16.msra.mxu1 %v5481_v35  ;;  %v2514_v34 = vld [vmem:[%s8392_s5 + $0x8a0] sm:$0xff]  ;;  %v5471_v35 = vpack.c.bf16 %v2515_v27, %v2495_v26 }
 0xc2c   :  { %5452 = vmatprep.subr.bf16.mxu0 %v5451_v38  ;;  %5484 = vmatprep.subr.bf16.mxu1 %v5483_v39  ;;  %v2516_v38 = vld [vmem:[%s8392_s5 + $0x8b0] sm:$0xff]  ;;  %v2535_v39 = vld [vmem:[%s8392_s5 + $0x948] sm:$0xff]  ;;  %v5473_v44 = vpack.c.bf16 %v2514_v34, %v2494_v33 }
 0xc2d   :  { %3296 = vmatprep.mubr.f32.mxu0 %v5515_v41  ;;  %3367 = vmatprep.mubr.f32.mxu1 %v5515_v41  ;;  %v2376_v41 = vld [vmem:[%s8392_s5 + $0x450] sm:$0xff]  ;;  %v5505_v45 = vpack.c.bf16 %v2516_v38, %v2496_v37 }
 0xc2e   :  { %v5493_v7 = vpack.c.bf16 %v2396_v1, %v2376_v41 }
 0xc2f   :  { %5454 = vmatpush1.bf16.msra.mxu0 %v5453_v47  ;;  %5486 = vmatpush1.bf16.msra.mxu1 %v5485_v48  ;;  %v5475_v47 = vpack.c.bf16 %v2555_v40, %v2535_v39  ;;  %v5507_v48 = vpack.c.bf16 %v2557_v43, %v2537_v42  ;;  %v2559_v40 = vld [vmem:[%s8393_s6 + $0x8] sm:$0xff] }
 0xc30   :  { %5456 = vmatprep.subr.bf16.mxu0 %v5455_v51  ;;  %5488 = vmatprep.subr.bf16.mxu1 %v5487_v52  ;;  %v2556_v51 = vld [vmem:[%s8392_s5 + $0x9f0] sm:$0xff]  ;;  %v5477_v52 = vpack.c.bf16 %v2554_v49, %v2534_v46  ;;  %v2599_v42 = vrot.slane %v2559_v40, %v8290_v56  ;;  %v2607_v43 = vrot.slane %v2559_v40, %v8293_v57 }
 0xc31   :  { %v5509_v53 = vpack.c.bf16 %v2556_v51, %v2536_v50 }
 0xc33   :  { %5458 = vmatpush1.bf16.msra.mxu0 %v5457_v59  ;;  %5490 = vmatpush1.bf16.msra.mxu1 %v5489_v60  ;;  %v8299_v59 = vsub.s32 1, %v8287_v55  ;;  %v8302_v60 = vsub.s32 3, %v8287_v55 }
 0xc34   :  { %5460 = vmatprep.subr.bf16.mxu0 %v5459_v31  ;;  %5492 = vmatprep.subr.bf16.mxu1 %v5491_v0 }
 0xc35   :  { %v2571_v63 = vrot.slane %v2558_v58, %v8299_v59  ;;  %v2579_v31 = vrot.slane %v2558_v58, %v8302_v60 }
 0xc37   :  { %5462 = vmatpush1.bf16.msra.mxu0 %v5461_v6  ;;  %5494 = vmatpush1.bf16.msra.mxu1 %v5493_v7 }
 0xc38   :  { %5464 = vmatprep.subr.bf16.mxu0 %v5463_v10  ;;  %5496 = vmatprep.subr.bf16.mxu1 %v5495_v11 }
 0xc3b   :  { %5466 = vmatpush1.bf16.msra.mxu0 %v5465_v18  ;;  %5498 = vmatpush1.bf16.msra.mxu1 %v5497_v19  ;;  %v2594_v18 = vsub.s32 7, %v8287_v55  ;;  %v2583_v19 = vrot.slane %v2558_v58, %v2582_v15 }
 0xc3c   :  { %5468 = vmatprep.subr.bf16.mxu0 %v5467_v22  ;;  %5500 = vmatprep.subr.bf16.mxu1 %v5499_v23 }
 0xc3d   :  { %v2595_v22 = vrot.slane %v2558_v58, %v2594_v18 }
 0xc3f   :  { %5470 = vmatpush1.bf16.msra.mxu0 %v5469_v30  ;;  %5502 = vmatpush1.bf16.msra.mxu1 %v5501_v32 }
 0xc40   :  { %5472 = vmatprep.subr.bf16.mxu0 %v5471_v35  ;;  %5504 = vmatprep.subr.bf16.mxu1 %v5503_v36 }
 0xc43   :  { %5474 = vmatpush1.bf16.msra.mxu0 %v5473_v44  ;;  %5506 = vmatpush1.bf16.msra.mxu1 %v5505_v45  ;;  %v2603_v44 = vrot.slane %v2559_v40, %v8299_v59  ;;  %v2611_v45 = vrot.slane %v2559_v40, %v8302_v60 }
 0xc44   :  { %5476 = vmatprep.subr.bf16.mxu0 %v5475_v47  ;;  %5508 = vmatprep.subr.bf16.mxu1 %v5507_v48 }
 0xc47   :  { %5478 = vmatpush1.bf16.msra.mxu0 %v5477_v52  ;;  %5510 = vmatpush1.bf16.msra.mxu1 %v5509_v53 }
 0xc4a   :  { %3297 = vmatmul.mubr.f32.vlgmr.msra.gmra.mrb[30].mxu0 %v7541_v61  ;;  %3368 = vmatmul.mubr.f32.vlgmr.msra.gmra.mrb[30].mxu1 %v7541_v61  ;;  %v2567_v61 = vrot.slane %v2558_v58, %v8290_v56 }
 0xc9d   :  { %v2730_v0 = vpop.f32.mrb[22].mxu0  ;;  %v2801_v41 = vpop.f32.mrb[22].mxu1 }
 0xc9e   :  { %v2731_v1 = vadd.f32 %v2730_v0, %v2567_v61  ;;  %v2802_v2 = vadd.f32 %v2801_v41, %v2575_v62  ;;  %v2732_v3 = vpop.f32.mrb[23].mxu0  ;;  %v2803_v4 = vpop.f32.mrb[23].mxu1  ;;  %v2615_v41 = vrot.slane %v2559_v40, %v2582_v15  ;;  %v2560_v15 = vld [vmem:[%s8393_s6 + $0x10] sm:$0xf] }
 0xc9f   :  { %v2733_v5 = vadd.f32 %v2732_v3, %v2571_v63  ;;  %v2804_v6 = vadd.f32 %v2803_v4, %v2579_v31  ;;  %v2627_v3 = vrot.slane %v2559_v40, %v2594_v18  ;;  %v2635_v18 = vrot.slane %v2560_v15, %v8299_v59 }
 0xca0   :  { %v3374_v7 = vmul.f32 0.01, %v2731_v1  ;;  %v3376_v8 = vmul.f32 0.01, %v2802_v2 }
 0xca1   :  { %v3375_v9 = vmul.f32 0.01, %v2733_v5  ;;  %v3377_v10 = vmul.f32 0.01, %v2804_v6 }
 0xca2   :  { %v3394_v11 = vmax.f32 %v2731_v1, %v3374_v7  ;;  %v3396_v12 = vmax.f32 %v2802_v2, %v3376_v8  ;;  %v2623_v1 = vrot.slane %v2559_v40, %v2590_v16  ;;  %v2619_v2 = vrot.slane %v2559_v40, %v2586_v17 }
 0xca3   :  { %v3395_v13 = vmax.f32 %v2733_v5, %v3375_v9  ;;  %v3397_v14 = vmax.f32 %v2804_v6, %v3377_v10  ;;  %v2631_v16 = vrot.slane %v2560_v15, %v8290_v56  ;;  %v2639_v17 = vrot.slane %v2560_v15, %v8293_v57 }
 0xca4   :  { %3414 = vst [vmem:[%s8394_s7] sm:$0xff] %v3394_v11  ;;  %3416 = vst [vmem:[%s8394_s7 + $0x10] sm:$0xff] %v3396_v12 }
 0xca5   :  { %3415 = vst [vmem:[%s8394_s7 + $0x8] sm:$0xff] %v3395_v13  ;;  %3417 = vst [vmem:[%s8394_s7 + $0x18] sm:$0xff] %v3397_v14 }
 0xcbd   :  { %v2872_v23 = vpop.f32.mrb[24].mxu0  ;;  %v2943_v24 = vpop.f32.mrb[24].mxu1 }
 0xcbe   :  { %v2873_v25 = vadd.f32 %v2872_v23, %v2583_v19  ;;  %v2944_v26 = vadd.f32 %v2943_v24, %v2591_v20  ;;  %v2874_v27 = vpop.f32.mrb[25].mxu0  ;;  %v2945_v28 = vpop.f32.mrb[25].mxu1  ;;  %v2643_v24 = vrot.slane %v2560_v15, %v8302_v60 }
 0xcbf   :  { %v2875_v29 = vadd.f32 %v2874_v27, %v2587_v21  ;;  %v2946_v30 = vadd.f32 %v2945_v28, %v2595_v22 }
 0xcc0   :  { %v3378_v32 = vmul.f32 0.01, %v2873_v25  ;;  %v3380_v33 = vmul.f32 0.01, %v2944_v26 }
 0xcc1   :  { %v3379_v34 = vmul.f32 0.01, %v2875_v29  ;;  %v3381_v35 = vmul.f32 0.01, %v2946_v30 }
 0xcc2   :  { %v3398_v36 = vmax.f32 %v2873_v25, %v3378_v32  ;;  %v3400_v37 = vmax.f32 %v2944_v26, %v3380_v33 }
 0xcc3   :  { %v3399_v38 = vmax.f32 %v2875_v29, %v3379_v34  ;;  %v3401_v39 = vmax.f32 %v2946_v30, %v3381_v35 }
 0xcc4   :  { %3418 = vst [vmem:[%s8394_s7 + $0x20] sm:$0xff] %v3398_v36  ;;  %3420 = vst [vmem:[%s8394_s7 + $0x30] sm:$0xff] %v3400_v37 }
 0xcc5   :  { %3419 = vst [vmem:[%s8394_s7 + $0x28] sm:$0xff] %v3399_v38  ;;  %3421 = vst [vmem:[%s8394_s7 + $0x38] sm:$0xff] %v3401_v39 }
 0xcdd   :  { %v3014_v46 = vpop.f32.mrb[26].mxu0  ;;  %v3085_v47 = vpop.f32.mrb[26].mxu1 }
 0xcde   :  { %v3015_v48 = vadd.f32 %v3014_v46, %v2599_v42  ;;  %v3086_v49 = vadd.f32 %v3085_v47, %v2607_v43  ;;  %v3016_v50 = vpop.f32.mrb[27].mxu0  ;;  %v3087_v51 = vpop.f32.mrb[27].mxu1 }
 0xcdf   :  { %v3017_v52 = vadd.f32 %v3016_v50, %v2603_v44  ;;  %v3088_v53 = vadd.f32 %v3087_v51, %v2611_v45 }
 0xce0   :  { %v3382_v54 = vmul.f32 0.01, %v3015_v48  ;;  %v3384_v55 = vmul.f32 0.01, %v3086_v49 }
 0xce1   :  { %v3383_v58 = vmul.f32 0.01, %v3017_v52  ;;  %v3385_v61 = vmul.f32 0.01, %v3088_v53 }
 0xce2   :  { %v3402_v62 = vmax.f32 %v3015_v48, %v3382_v54  ;;  %v3404_v63 = vmax.f32 %v3086_v49, %v3384_v55 }
 0xce3   :  { %v3403_v31 = vmax.f32 %v3017_v52, %v3383_v58  ;;  %v3405_v0 = vmax.f32 %v3088_v53, %v3385_v61 }
 0xce4   :  { %3422 = vst [vmem:[%s8394_s7 + $0x40] sm:$0xff] %v3402_v62  ;;  %3424 = vst [vmem:[%s8394_s7 + $0x50] sm:$0xff] %v3404_v63 }
 0xce5   :  { %3423 = vst [vmem:[%s8394_s7 + $0x48] sm:$0xff] %v3403_v31  ;;  %3425 = vst [vmem:[%s8394_s7 + $0x58] sm:$0xff] %v3405_v0 }
 0xcfd   :  { %v3156_v4 = vpop.f32.mrb[28].mxu0  ;;  %v3227_v5 = vpop.f32.mrb[28].mxu1 }
 0xcfe   :  { %v3157_v6 = vadd.f32 %v3156_v4, %v2615_v41  ;;  %v3228_v7 = vadd.f32 %v3227_v5, %v2623_v1  ;;  %v3158_v8 = vpop.f32.mrb[29].mxu0  ;;  %v3229_v9 = vpop.f32.mrb[29].mxu1 }
 0xcff   :  { %v3159_v10 = vadd.f32 %v3158_v8, %v2619_v2  ;;  %v3230_v11 = vadd.f32 %v3229_v9, %v2627_v3 }
 0xd00   :  { %v3386_v12 = vmul.f32 0.01, %v3157_v6  ;;  %v3388_v13 = vmul.f32 0.01, %v3228_v7 }
 0xd01   :  { %v3387_v14 = vmul.f32 0.01, %v3159_v10  ;;  %v3389_v19 = vmul.f32 0.01, %v3230_v11 }
 0xd02   :  { %v3406_v20 = vmax.f32 %v3157_v6, %v3386_v12  ;;  %v3408_v21 = vmax.f32 %v3228_v7, %v3388_v13 }
 0xd03   :  { %v3407_v22 = vmax.f32 %v3159_v10, %v3387_v14  ;;  %v3409_v23 = vmax.f32 %v3230_v11, %v3389_v19 }
 0xd04   :  { %3426 = vst [vmem:[%s8394_s7 + $0x60] sm:$0xff] %v3406_v20  ;;  %3428 = vst [vmem:[%s8394_s7 + $0x70] sm:$0xff] %v3408_v21 }
 0xd05   :  { %3427 = vst [vmem:[%s8394_s7 + $0x68] sm:$0xff] %v3407_v22  ;;  %3429 = vst [vmem:[%s8394_s7 + $0x78] sm:$0xff] %v3409_v23 }
 0xd1d   :  { %v3298_v25 = vpop.f32.mrb[30].mxu0  ;;  %v3369_v26 = vpop.f32.mrb[30].mxu1 }
 0xd1e   :  { %v3299_v27 = vadd.f32 %v3298_v25, %v2631_v16  ;;  %v3370_v28 = vadd.f32 %v3369_v26, %v2639_v17  ;;  %v3300_v29 = vpop.f32.mrb[31].mxu0  ;;  %v3371_v30 = vpop.f32.mrb[31].mxu1 }
 0xd1f   :  { %v3301_v32 = vadd.f32 %v3300_v29, %v2635_v18  ;;  %v3372_v33 = vadd.f32 %v3371_v30, %v2643_v24 }
 0xd20   :  { %v3390_v34 = vmul.f32 0.01, %v3299_v27  ;;  %v3392_v35 = vmul.f32 0.01, %v3370_v28 }
 0xd21   :  { %v3391_v36 = vmul.f32 0.01, %v3301_v32  ;;  %v3393_v37 = vmul.f32 0.01, %v3372_v33 }
 0xd22   :  { %v3410_v38 = vmax.f32 %v3299_v27, %v3390_v34  ;;  %v3412_v56 = vmax.f32 %v3370_v28, %v3392_v35 }
 0xd23   :  { %v3411_v39 = vmax.f32 %v3301_v32, %v3391_v36  ;;  %v3413_v57 = vmax.f32 %v3372_v33, %v3393_v37 }
 0xd24   :  { %3430 = vst [vmem:[%s8394_s7 + $0x80] sm:$0xff] %v3410_v38  ;;  %3432 = vst [vmem:[%s8394_s7 + $0x90] sm:$0xff] %v3412_v56 }
 0xd25   :  { %3431 = vst [vmem:[%s8394_s7 + $0x88] sm:$0xff] %v3411_v39  ;;  %3433 = vst.msk [vmem:[%s8394_s7 + $0x98] sm:$0xff] %vm366_vm0, %v3413_v57 }

</bundles_post_ra>
